<compile_context>
chip_gen: v6e
topology: v6e:2x2x1
jax: 0.10.0
libtpu: 0.0.40
codegen_flags: <defaults>
</compile_context>

<pallas_src>
import functools

import jax
import jax.numpy as jnp
from jax.experimental import pallas as pl
from jax.experimental.pallas import tpu as pltpu


def _round_up(n, m):
    return ((n + m - 1) // m) * m


def _pick_h_chunk(H):
    # Prefer multiples of 256 so each MXU pass is fully packed (H=1536 -> 512).
    for cand in (512, 768, 256, 128):
        if H % cand == 0:
            return cand
    return H


def _ffn_kernel(x_ref, w1_ref, b1_ref, w2_ref, b2_ref, o_ref, *, h_chunk):
    """One (block_m, C) token tile: relu(x @ W1 + b1) @ W2 + b2, H-chunked."""
    H = w1_ref.shape[-1]
    block_m = x_ref.shape[0]
    C = o_ref.shape[-1]

    x = x_ref[...]  # bf16 (block_m, C)
    acc = jnp.zeros((block_m, C), jnp.float32)

    # Static unroll over a handful of H chunks (static ref slices are free views).
    for k in range(H // h_chunk):
        sl = pl.ds(k * h_chunk, h_chunk)
        # First matmul chunk: bf16 MXU inputs, f32 accumulation.
        h = jnp.dot(x, w1_ref[:, sl], preferred_element_type=jnp.float32)
        # Bias-add + ReLU in f32 on the accumulator output (no bf16 VPU work).
        h = jnp.maximum(h + b1_ref[:, sl], 0.0)
        # Second matmul chunk, accumulated into the f32 output tile.
        acc = acc + jnp.dot(
            h.astype(jnp.bfloat16), w2_ref[sl, :],
            preferred_element_type=jnp.float32)

    # TODO(synk): training-mode dropout would mask `acc` here; eval-mode = identity.
    o_ref[...] = (acc + b2_ref[...]).astype(o_ref.dtype)


def _build_ffn_call(Mp, C, H, block_m, h_chunk, out_dtype, single_buffer_resident):
    resident_kwargs = {}
    if single_buffer_resident:
        # Grid-invariant operands (index_map is constant): one VMEM buffer is
        # enough, no need for the default double-buffering.
        resident_kwargs = dict(pipeline_mode=pl.Buffered(1))

    def resident(shape):
        return pl.BlockSpec(shape, lambda i: (0, 0), **resident_kwargs)

    return pl.pallas_call(
        functools.partial(_ffn_kernel, h_chunk=h_chunk),
        out_shape=jax.ShapeDtypeStruct((Mp, C), out_dtype),
        grid_spec=pltpu.PrefetchScalarGridSpec(
            num_scalar_prefetch=0,
            grid=(Mp // block_m,),
            in_specs=[
                pl.BlockSpec((block_m, C), lambda i: (i, 0)),  # x tile (streamed)
                resident((C, H)),                              # W1 (bf16, resident)
                resident((1, H)),                              # b1 (f32, resident)
                resident((H, C)),                              # W2 (bf16, resident)
                resident((1, C)),                              # b2 (f32, resident)
            ],
            out_specs=pl.BlockSpec((block_m, C), lambda i: (i, 0)),
        ),
        compiler_params=pltpu.CompilerParams(
            # "parallel" lets v7x shard grid steps across both TensorCores.
            dimension_semantics=("parallel",),
            # 32 MiB fits every generation (v7x physical VMEM = 64 MiB) and
            # raises v5e's 16 MiB default for larger block_m.
            vmem_limit_bytes=32 * 1024 * 1024,
        ),
    )


def feed_forward(x, w1, b1, w2, b2, *, block_m=None):
    """x: (B, T, C) float32; w1: (C, H); b1: (H,); w2: (H, C); b2: (C,)."""
    B, T, C = x.shape
    H = w1.shape[1]
    M = B * T

    # bf16 matmul operands (halves HBM/VMEM traffic); biases stay f32.
    x2 = x.reshape(M, C).astype(jnp.bfloat16)
    w1b = w1.astype(jnp.bfloat16)
    w2b = w2.astype(jnp.bfloat16)
    b1_2d = b1.reshape(1, H).astype(jnp.float32)
    b2_2d = b2.reshape(1, C).astype(jnp.float32)

    # Token-axis tiling: 512 rows amortizes per-step overhead while the
    # streaming x/out tiles + resident bf16 weights + f32 accumulator stay well
    # under the 32 MiB VMEM budget (re-derived for v7x's 64 MiB physical VMEM).
    # Large M therefore gets >= 2 grid steps for the v7x dual TensorCores;
    # small M (like the demo's M=16) knowingly runs as a single program.
    if block_m is None:
        block_m = min(512, _round_up(M, 16))
    Mp = _round_up(M, block_m)
    if Mp != M:
        x2 = jnp.pad(x2, ((0, Mp - M), (0, 0)))  # ragged tail -> zero padding

    h_chunk = _pick_h_chunk(H)

    try:
        call = _build_ffn_call(Mp, C, H, block_m, h_chunk, x.dtype, True)
        out = call(x2, w1b, b1_2d, w2b, b2_2d)
    except Exception:
        # Graceful degradation if this JAX build doesn't accept pipeline_mode on
        # top-level pallas_call BlockSpecs: default double-buffered weights.
        call = _build_ffn_call(Mp, C, H, block_m, h_chunk, x.dtype, False)
        out = call(x2, w1b, b1_2d, w2b, b2_2d)

    return out[:M].reshape(B, T, C)


def feed_forward_ref(x, w1, b1, w2, b2):
    """Pure f32 reference (original module numerics)."""
    h = jnp.maximum(x @ w1 + b1, 0.0)
    return h @ w2 + b2


def feed_forward_bf16_ref(x, w1, b1, w2, b2):
    """Reference with matching bf16-matmul / f32-accumulation numerics."""
    B, T, C = x.shape
    xb = x.reshape(B * T, C).astype(jnp.bfloat16)
    h = jnp.dot(xb, w1.astype(jnp.bfloat16),
                preferred_element_type=jnp.float32) + b1
    h = jnp.maximum(h, 0.0)
    y = jnp.dot(h.astype(jnp.bfloat16), w2.astype(jnp.bfloat16),
                preferred_element_type=jnp.float32) + b2
    return y.reshape(B, T, C)


if __name__ == "__main__":
    n_embd = 384
    hidden = 4 * n_embd
    batch, seq = 2, 8

    key = jax.random.PRNGKey(0)
    k_x, k_w1, k_b1, k_w2, k_b2 = jax.random.split(key, 5)

    # Deterministic synthetic parameters (torch Linear-ish uniform init scale).
    x = jax.random.normal(k_x, (batch, seq, n_embd), dtype=jnp.float32)
    lim1 = 1.0 / (n_embd ** 0.5)
    lim2 = 1.0 / (hidden ** 0.5)
    w1 = jax.random.uniform(k_w1, (n_embd, hidden), jnp.float32, -lim1, lim1)
    b1 = jax.random.uniform(k_b1, (hidden,), jnp.float32, -lim1, lim1)
    w2 = jax.random.uniform(k_w2, (hidden, n_embd), jnp.float32, -lim2, lim2)
    b2 = jax.random.uniform(k_b2, (n_embd,), jnp.float32, -lim2, lim2)

    y = feed_forward(x, w1, b1, w2, b2)
    jax.block_until_ready(y)

    assert y.shape == (batch, seq, n_embd)

    # Check against a reference with identical bf16/f32-accum numerics (tight)...
    y_bf16 = feed_forward_bf16_ref(x, w1, b1, w2, b2)
    assert jnp.allclose(y, y_bf16, atol=2e-3, rtol=2e-3), "mismatch vs bf16 reference"
    # ...and against the original pure-f32 module numerics (bf16-rounding tolerance).
    y_f32 = feed_forward_ref(x, w1, b1, w2, b2)
    assert jnp.allclose(y, y_f32, atol=2e-2, rtol=2e-2), "mismatch vs f32 reference"

    print("KERNEL_OK")
</pallas_src>

<mosaic_0001>
module attributes {stable_mosaic.version = 11 : i64} {
  func.func @_ffn_kernel(%arg0: i32, %arg1: memref<16x384xbf16, #tpu.memory_space<vmem>>, %arg2: memref<384x1536xbf16, #tpu.memory_space<vmem>>, %arg3: memref<1x1536xf32, #tpu.memory_space<vmem>>, %arg4: memref<1536x384xbf16, #tpu.memory_space<vmem>>, %arg5: memref<1x384xf32, #tpu.memory_space<vmem>>, %arg6: memref<16x384xf32, #tpu.memory_space<vmem>>) attributes {dimension_semantics = [#tpu.dimension_semantics<parallel>], iteration_bounds = array<i64: 1>, scalar_prefetch = 0 : i64, scratch_operands = 0 : i64, tpu.core_type = #tpu.core_type<tc>, window_params = [{transform_indices = @transform_0, window_bounds = array<i64: 16, 384>}, {pipeline_mode = #tpu.pipeline_mode<synchronous>, transform_indices = @transform_1, window_bounds = array<i64: 384, 1536>}, {pipeline_mode = #tpu.pipeline_mode<synchronous>, transform_indices = @transform_2, window_bounds = array<i64: 1, 1536>}, {pipeline_mode = #tpu.pipeline_mode<synchronous>, transform_indices = @transform_3, window_bounds = array<i64: 1536, 384>}, {pipeline_mode = #tpu.pipeline_mode<synchronous>, transform_indices = @transform_4, window_bounds = array<i64: 1, 384>}, {transform_indices = @transform_5, window_bounds = array<i64: 16, 384>}]} {
    %c0 = arith.constant 0 : index
    %c0_0 = arith.constant 0 : index
    %0 = vector.load %arg1[%c0, %c0_0] : memref<16x384xbf16, #tpu.memory_space<vmem>>, vector<16x384xbf16>
    %cst = arith.constant 0.000000e+00 : f32
    %1 = vector.broadcast %cst : f32 to vector<16x384xf32>
    %c0_1 = arith.constant 0 : index
    %c0_2 = arith.constant 0 : index
    %2 = vector.load %arg2[%c0_1, %c0_2] : memref<384x1536xbf16, #tpu.memory_space<vmem>>, vector<384x512xbf16>
    %cst_3 = arith.constant dense<0.000000e+00> : vector<16x512xf32>
    %3 = tpu.matmul %0, %2, %cst_3 {dimension_numbers = #tpu.dot_dimension_numbers<[1], [0], [0], [1], [0, 0, 1, 1], [], []>} : vector<16x384xbf16>, vector<384x512xbf16>, vector<16x512xf32> -> vector<16x512xf32>
    %c0_4 = arith.constant 0 : index
    %c0_5 = arith.constant 0 : index
    %4 = vector.load %arg3[%c0_4, %c0_5] : memref<1x1536xf32, #tpu.memory_space<vmem>>, vector<1x512xf32>
    %5 = vector.broadcast %4 : vector<1x512xf32> to vector<16x512xf32>
    %6 = arith.addf %3, %5 : vector<16x512xf32>
    %cst_6 = arith.constant 0.000000e+00 : f32
    %7 = vector.broadcast %cst_6 : f32 to vector<16x512xf32>
    %8 = arith.maximumf %6, %7 : vector<16x512xf32>
    %9 = arith.truncf %8 : vector<16x512xf32> to vector<16x512xbf16>
    %c0_7 = arith.constant 0 : index
    %c0_8 = arith.constant 0 : index
    %10 = vector.load %arg4[%c0_7, %c0_8] : memref<1536x384xbf16, #tpu.memory_space<vmem>>, vector<512x384xbf16>
    %cst_9 = arith.constant dense<0.000000e+00> : vector<16x384xf32>
    %11 = tpu.matmul %9, %10, %cst_9 {dimension_numbers = #tpu.dot_dimension_numbers<[1], [0], [0], [1], [0, 0, 1, 1], [], []>} : vector<16x512xbf16>, vector<512x384xbf16>, vector<16x384xf32> -> vector<16x384xf32>
    %12 = arith.addf %1, %11 : vector<16x384xf32>
    %c0_10 = arith.constant 0 : index
    %c512 = arith.constant 512 : index
    %13 = vector.load %arg2[%c0_10, %c512] : memref<384x1536xbf16, #tpu.memory_space<vmem>>, vector<384x512xbf16>
    %cst_11 = arith.constant dense<0.000000e+00> : vector<16x512xf32>
    %14 = tpu.matmul %0, %13, %cst_11 {dimension_numbers = #tpu.dot_dimension_numbers<[1], [0], [0], [1], [0, 0, 1, 1], [], []>} : vector<16x384xbf16>, vector<384x512xbf16>, vector<16x512xf32> -> vector<16x512xf32>
    %c0_12 = arith.constant 0 : index
    %c512_13 = arith.constant 512 : index
    %15 = vector.load %arg3[%c0_12, %c512_13] : memref<1x1536xf32, #tpu.memory_space<vmem>>, vector<1x512xf32>
    %16 = vector.broadcast %15 : vector<1x512xf32> to vector<16x512xf32>
    %17 = arith.addf %14, %16 : vector<16x512xf32>
    %cst_14 = arith.constant 0.000000e+00 : f32
    %18 = vector.broadcast %cst_14 : f32 to vector<16x512xf32>
    %19 = arith.maximumf %17, %18 : vector<16x512xf32>
    %20 = arith.truncf %19 : vector<16x512xf32> to vector<16x512xbf16>
    %c512_15 = arith.constant 512 : index
    %c0_16 = arith.constant 0 : index
    %21 = vector.load %arg4[%c512_15, %c0_16] : memref<1536x384xbf16, #tpu.memory_space<vmem>>, vector<512x384xbf16>
    %cst_17 = arith.constant dense<0.000000e+00> : vector<16x384xf32>
    %22 = tpu.matmul %20, %21, %cst_17 {dimension_numbers = #tpu.dot_dimension_numbers<[1], [0], [0], [1], [0, 0, 1, 1], [], []>} : vector<16x512xbf16>, vector<512x384xbf16>, vector<16x384xf32> -> vector<16x384xf32>
    %23 = arith.addf %12, %22 : vector<16x384xf32>
    %c0_18 = arith.constant 0 : index
    %c1024 = arith.constant 1024 : index
    %24 = vector.load %arg2[%c0_18, %c1024] : memref<384x1536xbf16, #tpu.memory_space<vmem>>, vector<384x512xbf16>
    %cst_19 = arith.constant dense<0.000000e+00> : vector<16x512xf32>
    %25 = tpu.matmul %0, %24, %cst_19 {dimension_numbers = #tpu.dot_dimension_numbers<[1], [0], [0], [1], [0, 0, 1, 1], [], []>} : vector<16x384xbf16>, vector<384x512xbf16>, vector<16x512xf32> -> vector<16x512xf32>
    %c0_20 = arith.constant 0 : index
    %c1024_21 = arith.constant 1024 : index
    %26 = vector.load %arg3[%c0_20, %c1024_21] : memref<1x1536xf32, #tpu.memory_space<vmem>>, vector<1x512xf32>
    %27 = vector.broadcast %26 : vector<1x512xf32> to vector<16x512xf32>
    %28 = arith.addf %25, %27 : vector<16x512xf32>
    %cst_22 = arith.constant 0.000000e+00 : f32
    %29 = vector.broadcast %cst_22 : f32 to vector<16x512xf32>
    %30 = arith.maximumf %28, %29 : vector<16x512xf32>
    %31 = arith.truncf %30 : vector<16x512xf32> to vector<16x512xbf16>
    %c1024_23 = arith.constant 1024 : index
    %c0_24 = arith.constant 0 : index
    %32 = vector.load %arg4[%c1024_23, %c0_24] : memref<1536x384xbf16, #tpu.memory_space<vmem>>, vector<512x384xbf16>
    %cst_25 = arith.constant dense<0.000000e+00> : vector<16x384xf32>
    %33 = tpu.matmul %31, %32, %cst_25 {dimension_numbers = #tpu.dot_dimension_numbers<[1], [0], [0], [1], [0, 0, 1, 1], [], []>} : vector<16x512xbf16>, vector<512x384xbf16>, vector<16x384xf32> -> vector<16x384xf32>
    %34 = arith.addf %23, %33 : vector<16x384xf32>
    %c0_26 = arith.constant 0 : index
    %c0_27 = arith.constant 0 : index
    %35 = vector.load %arg5[%c0_26, %c0_27] : memref<1x384xf32, #tpu.memory_space<vmem>>, vector<1x384xf32>
    %36 = vector.broadcast %35 : vector<1x384xf32> to vector<16x384xf32>
    %37 = arith.addf %34, %36 : vector<16x384xf32>
    %c0_28 = arith.constant 0 : index
    %c0_29 = arith.constant 0 : index
    %38 = vector.load %arg6[%c0_28, %c0_29] : memref<16x384xf32, #tpu.memory_space<vmem>>, vector<16x384xf32>
    tpu.vector_store %arg6[%c0_28, %c0_29], %37 {strides = array<i32>} : memref<16x384xf32, #tpu.memory_space<vmem>>, vector<16x384xf32>,
    return
  }
  func.func @transform_0(%arg0: i32) -> (i32, i32) {
    %c0_i32 = arith.constant 0 : i32
    %c0_i32_0 = arith.constant 0 : i32
    return %arg0, %c0_i32 : i32, i32
  }
  func.func @transform_1(%arg0: i32) -> (i32, i32) {
    %c0_i32 = arith.constant 0 : i32
    %c0_i32_0 = arith.constant 0 : i32
    %c0_i32_1 = arith.constant 0 : i32
    return %c0_i32, %c0_i32_0 : i32, i32
  }
  func.func @transform_2(%arg0: i32) -> (i32, i32) {
    %c0_i32 = arith.constant 0 : i32
    %c0_i32_0 = arith.constant 0 : i32
    %c0_i32_1 = arith.constant 0 : i32
    return %c0_i32, %c0_i32_0 : i32, i32
  }
  func.func @transform_3(%arg0: i32) -> (i32, i32) {
    %c0_i32 = arith.constant 0 : i32
    %c0_i32_0 = arith.constant 0 : i32
    %c0_i32_1 = arith.constant 0 : i32
    return %c0_i32, %c0_i32_0 : i32, i32
  }
  func.func @transform_4(%arg0: i32) -> (i32, i32) {
    %c0_i32 = arith.constant 0 : i32
    %c0_i32_0 = arith.constant 0 : i32
    %c0_i32_1 = arith.constant 0 : i32
    return %c0_i32, %c0_i32_0 : i32, i32
  }
  func.func @transform_5(%arg0: i32) -> (i32, i32) {
    %c0_i32 = arith.constant 0 : i32
    %c0_i32_0 = arith.constant 0 : i32
    return %arg0, %c0_i32 : i32, i32
  }
}

module attributes {stable_mosaic.version = 11 : i64} {
  func.func @_ffn_kernel(%arg0: i32, %arg1: memref<16x384xbf16, #tpu.memory_space<vmem>>, %arg2: memref<384x1536xbf16, #tpu.memory_space<vmem>>, %arg3: memref<1x1536xf32, #tpu.memory_space<vmem>>, %arg4: memref<1536x384xbf16, #tpu.memory_space<vmem>>, %arg5: memref<1x384xf32, #tpu.memory_space<vmem>>, %arg6: memref<16x384xf32, #tpu.memory_space<vmem>>) attributes {dimension_semantics = [#tpu.dimension_semantics<parallel>], iteration_bounds = array<i64: 1>, scalar_prefetch = 0 : i64, scratch_operands = 0 : i64, tpu.core_type = #tpu.core_type<tc>, window_params = [{transform_indices = @transform_0, window_bounds = array<i64: 16, 384>}, {pipeline_mode = #tpu.pipeline_mode<synchronous>, transform_indices = @transform_1, window_bounds = array<i64: 384, 1536>}, {pipeline_mode = #tpu.pipeline_mode<synchronous>, transform_indices = @transform_2, window_bounds = array<i64: 1, 1536>}, {pipeline_mode = #tpu.pipeline_mode<synchronous>, transform_indices = @transform_3, window_bounds = array<i64: 1536, 384>}, {pipeline_mode = #tpu.pipeline_mode<synchronous>, transform_indices = @transform_4, window_bounds = array<i64: 1, 384>}, {transform_indices = @transform_5, window_bounds = array<i64: 16, 384>}]} {
    %c0 = arith.constant 0 : index
    %c0_0 = arith.constant 0 : index
    %0 = vector.load %arg1[%c0, %c0_0] : memref<16x384xbf16, #tpu.memory_space<vmem>>, vector<16x384xbf16>
    %cst = arith.constant 0.000000e+00 : f32
    %1 = vector.broadcast %cst : f32 to vector<16x384xf32>
    %c0_1 = arith.constant 0 : index
    %c0_2 = arith.constant 0 : index
    %2 = vector.load %arg2[%c0_1, %c0_2] : memref<384x1536xbf16, #tpu.memory_space<vmem>>, vector<384x512xbf16>
    %cst_3 = arith.constant dense<0.000000e+00> : vector<16x512xf32>
    %3 = tpu.matmul %0, %2, %cst_3 {dimension_numbers = #tpu.dot_dimension_numbers<[1], [0], [0], [1], [0, 0, 1, 1], [], []>} : vector<16x384xbf16>, vector<384x512xbf16>, vector<16x512xf32> -> vector<16x512xf32>
    %c0_4 = arith.constant 0 : index
    %c0_5 = arith.constant 0 : index
    %4 = vector.load %arg3[%c0_4, %c0_5] : memref<1x1536xf32, #tpu.memory_space<vmem>>, vector<1x512xf32>
    %5 = vector.broadcast %4 : vector<1x512xf32> to vector<16x512xf32>
    %6 = arith.addf %3, %5 : vector<16x512xf32>
    %cst_6 = arith.constant 0.000000e+00 : f32
    %7 = vector.broadcast %cst_6 : f32 to vector<16x512xf32>
    %8 = arith.maximumf %6, %7 : vector<16x512xf32>
    %9 = arith.truncf %8 : vector<16x512xf32> to vector<16x512xbf16>
    %c0_7 = arith.constant 0 : index
    %c0_8 = arith.constant 0 : index
    %10 = vector.load %arg4[%c0_7, %c0_8] : memref<1536x384xbf16, #tpu.memory_space<vmem>>, vector<512x384xbf16>
    %cst_9 = arith.constant dense<0.000000e+00> : vector<16x384xf32>
    %11 = tpu.matmul %9, %10, %cst_9 {dimension_numbers = #tpu.dot_dimension_numbers<[1], [0], [0], [1], [0, 0, 1, 1], [], []>} : vector<16x512xbf16>, vector<512x384xbf16>, vector<16x384xf32> -> vector<16x384xf32>
    %12 = arith.addf %1, %11 : vector<16x384xf32>
    %c0_10 = arith.constant 0 : index
    %c512 = arith.constant 512 : index
    %13 = vector.load %arg2[%c0_10, %c512] : memref<384x1536xbf16, #tpu.memory_space<vmem>>, vector<384x512xbf16>
    %cst_11 = arith.constant dense<0.000000e+00> : vector<16x512xf32>
    %14 = tpu.matmul %0, %13, %cst_11 {dimension_numbers = #tpu.dot_dimension_numbers<[1], [0], [0], [1], [0, 0, 1, 1], [], []>} : vector<16x384xbf16>, vector<384x512xbf16>, vector<16x512xf32> -> vector<16x512xf32>
    %c0_12 = arith.constant 0 : index
    %c512_13 = arith.constant 512 : index
    %15 = vector.load %arg3[%c0_12, %c512_13] : memref<1x1536xf32, #tpu.memory_space<vmem>>, vector<1x512xf32>
    %16 = vector.broadcast %15 : vector<1x512xf32> to vector<16x512xf32>
    %17 = arith.addf %14, %16 : vector<16x512xf32>
    %cst_14 = arith.constant 0.000000e+00 : f32
    %18 = vector.broadcast %cst_14 : f32 to vector<16x512xf32>
    %19 = arith.maximumf %17, %18 : vector<16x512xf32>
    %20 = arith.truncf %19 : vector<16x512xf32> to vector<16x512xbf16>
    %c512_15 = arith.constant 512 : index
    %c0_16 = arith.constant 0 : index
    %21 = vector.load %arg4[%c512_15, %c0_16] : memref<1536x384xbf16, #tpu.memory_space<vmem>>, vector<512x384xbf16>
    %cst_17 = arith.constant dense<0.000000e+00> : vector<16x384xf32>
    %22 = tpu.matmul %20, %21, %cst_17 {dimension_numbers = #tpu.dot_dimension_numbers<[1], [0], [0], [1], [0, 0, 1, 1], [], []>} : vector<16x512xbf16>, vector<512x384xbf16>, vector<16x384xf32> -> vector<16x384xf32>
    %23 = arith.addf %12, %22 : vector<16x384xf32>
    %c0_18 = arith.constant 0 : index
    %c1024 = arith.constant 1024 : index
    %24 = vector.load %arg2[%c0_18, %c1024] : memref<384x1536xbf16, #tpu.memory_space<vmem>>, vector<384x512xbf16>
    %cst_19 = arith.constant dense<0.000000e+00> : vector<16x512xf32>
    %25 = tpu.matmul %0, %24, %cst_19 {dimension_numbers = #tpu.dot_dimension_numbers<[1], [0], [0], [1], [0, 0, 1, 1], [], []>} : vector<16x384xbf16>, vector<384x512xbf16>, vector<16x512xf32> -> vector<16x512xf32>
    %c0_20 = arith.constant 0 : index
    %c1024_21 = arith.constant 1024 : index
    %26 = vector.load %arg3[%c0_20, %c1024_21] : memref<1x1536xf32, #tpu.memory_space<vmem>>, vector<1x512xf32>
    %27 = vector.broadcast %26 : vector<1x512xf32> to vector<16x512xf32>
    %28 = arith.addf %25, %27 : vector<16x512xf32>
    %cst_22 = arith.constant 0.000000e+00 : f32
    %29 = vector.broadcast %cst_22 : f32 to vector<16x512xf32>
    %30 = arith.maximumf %28, %29 : vector<16x512xf32>
    %31 = arith.truncf %30 : vector<16x512xf32> to vector<16x512xbf16>
    %c1024_23 = arith.constant 1024 : index
    %c0_24 = arith.constant 0 : index
    %32 = vector.load %arg4[%c1024_23, %c0_24] : memref<1536x384xbf16, #tpu.memory_space<vmem>>, vector<512x384xbf16>
    %cst_25 = arith.constant dense<0.000000e+00> : vector<16x384xf32>
    %33 = tpu.matmul %31, %32, %cst_25 {dimension_numbers = #tpu.dot_dimension_numbers<[1], [0], [0], [1], [0, 0, 1, 1], [], []>} : vector<16x512xbf16>, vector<512x384xbf16>, vector<16x384xf32> -> vector<16x384xf32>
    %34 = arith.addf %23, %33 : vector<16x384xf32>
    %c0_26 = arith.constant 0 : index
    %c0_27 = arith.constant 0 : index
    %35 = vector.load %arg5[%c0_26, %c0_27] : memref<1x384xf32, #tpu.memory_space<vmem>>, vector<1x384xf32>
    %36 = vector.broadcast %35 : vector<1x384xf32> to vector<16x384xf32>
    %37 = arith.addf %34, %36 : vector<16x384xf32>
    %c0_28 = arith.constant 0 : index
    %c0_29 = arith.constant 0 : index
    %38 = vector.load %arg6[%c0_28, %c0_29] : memref<16x384xf32, #tpu.memory_space<vmem>>, vector<16x384xf32>
    tpu.vector_store %arg6[%c0_28, %c0_29], %37 {strides = array<i32>} : memref<16x384xf32, #tpu.memory_space<vmem>>, vector<16x384xf32>,
    return
  }
  func.func @transform_0(%arg0: i32) -> (i32, i32) {
    %c0_i32 = arith.constant 0 : i32
    %c0_i32_0 = arith.constant 0 : i32
    return %arg0, %c0_i32 : i32, i32
  }
  func.func @transform_1(%arg0: i32) -> (i32, i32) {
    %c0_i32 = arith.constant 0 : i32
    %c0_i32_0 = arith.constant 0 : i32
    %c0_i32_1 = arith.constant 0 : i32
    return %c0_i32, %c0_i32_0 : i32, i32
  }
  func.func @transform_2(%arg0: i32) -> (i32, i32) {
    %c0_i32 = arith.constant 0 : i32
    %c0_i32_0 = arith.constant 0 : i32
    %c0_i32_1 = arith.constant 0 : i32
    return %c0_i32, %c0_i32_0 : i32, i32
  }
  func.func @transform_3(%arg0: i32) -> (i32, i32) {
    %c0_i32 = arith.constant 0 : i32
    %c0_i32_0 = arith.constant 0 : i32
    %c0_i32_1 = arith.constant 0 : i32
    return %c0_i32, %c0_i32_0 : i32, i32
  }
  func.func @transform_4(%arg0: i32) -> (i32, i32) {
    %c0_i32 = arith.constant 0 : i32
    %c0_i32_0 = arith.constant 0 : i32
    %c0_i32_1 = arith.constant 0 : i32
    return %c0_i32, %c0_i32_0 : i32, i32
  }
  func.func @transform_5(%arg0: i32) -> (i32, i32) {
    %c0_i32 = arith.constant 0 : i32
    %c0_i32_0 = arith.constant 0 : i32
    return %arg0, %c0_i32 : i32, i32
  }
}

</mosaic_0001>

<bundles_post_ra>
// kernel: tpu_custom_call.1
= control target key start
LH: loop header
LB: loop body
LE: loop exit
PB: predicated region body
PF: predicated region fallthrough
CT: control target
= control target key end

     0   :  { %10 = vsyncpa [#allocation3], 0  ;;  %s6815_s0 = inlined_call_operand.hbm [shape: bf16[16,384], index: 0, kind: input, shape index: {}]   ;;  %s6816_s1 = inlined_call_operand.hbm [shape: bf16[384,1536], index: 1, kind: input, shape index: {}]   ;;  %s6817_s2 = inlined_call_operand.hbm [shape: f32[1,1536], index: 2, kind: input, shape index: {}]   ;;  %s6818_s3 = inlined_call_operand.hbm [shape: bf16[1536,384], index: 3, kind: input, shape index: {}]   ;;  %s6819_s4 = inlined_call_operand.hbm [shape: f32[1,384], index: 4, kind: input, shape index: {}]   ;;  %s6820_s5 = inlined_call_operand.hbm [shape: f32[16,384], index: 5, kind: output, shape index: {}]  }
   0x1   :  { %11 = vsyncpa [#allocation6], 0 }
   0x2   :  { %12 = vsyncpa [#allocation9], 0 }
   0x3   :  { %13 = vsyncpa [#allocation4], 0  ;;  %s6607_s18 = smov [#allocation5]  }
   0x4   :  { %s31_s19 = sshll.u32 %s6607_s18, 4  ;;  %s32_s19 = int_to_ptr.vmem [resolvable:$true] %s31_s19 }
   0x5   :  { %s6487_s20 = scalar_lea.vmem %s32_s19, 36864  ;;  %p6492_p1 = scmp.lt.s32.totalorder %s32_s19, %s32_s19 }
   0x6   :  { %p6488_p0 = scmp.ne.s32.totalorder %s32_s19, %s6487_s20  ;;  %p6493_p2 = scmp.lt.s32.totalorder %s6487_s20, %s6487_s20 }
   0x8   :  { %p6494_p3 = por %p6493_p2, %p6492_p1 }
   0xa   :  { %p6495_p4 = pnand %p6494_p3, %p6488_p0 }
   0xc   :  { %6498 = shalt.err (!%p6495_p4)
}
   0xd   :  { %s6608_s21 = smov 768   ;;  %s6609_s22 = smov 48  }
   0xe   :  { %37 = dma.hbm_to_vmem [thread:$0]  %s6816_s1, 36864, %s32_s19, [#allocation6], %s6608_s21, %s6608_s21, %s6609_s22  }
   0xf   :  { %s6610_s25 = smov [#allocation8]   ;;  %s6611_s27 = smov [#allocation2]  }
  0x10   :  { %s53_s26 = sshll.u32 %s6610_s25, 4  ;;  %s19_s28 = sshll.u32 %s6611_s27, 4  ;;  %s54_s26 = int_to_ptr.vmem [resolvable:$true] %s53_s26  ;;  %s20_s28 = int_to_ptr.vmem [resolvable:$true] %s19_s28 }
  0x11   :  { %s6507_s29 = scalar_lea.vmem %s54_s26, 36864  ;;  %p6512_p6 = scmp.lt.s32.totalorder %s54_s26, %s54_s26 }
  0x12   :  { %p6508_p5 = scmp.ne.s32.totalorder %s54_s26, %s6507_s29  ;;  %p6513_p7 = scmp.lt.s32.totalorder %s6507_s29, %s6507_s29 }
  0x14   :  { %p6514_p8 = por %p6513_p7, %p6512_p6 }
  0x16   :  { %p6515_p9 = pnand %p6514_p8, %p6508_p5 }
  0x18   :  { %6518 = shalt.err (!%p6515_p9)
}
  0x19   :  { %s6612_s30 = smov 192   ;;  %s6613_s6 = smov 12  }
  0x1a   :  { %59 = dma.hbm_to_vmem [thread:$0]  %s6818_s3, 36864, %s54_s26, [#allocation9], %s6612_s30, %s6612_s30, %s6613_s6  }
  0x1b   :  { %s6527_s1 = scalar_lea.vmem %s20_s28, 384  ;;  %p6532_p11 = scmp.lt.s32.totalorder %s20_s28, %s20_s28 }
  0x1c   :  { %p6528_p10 = scmp.ne.s32.totalorder %s20_s28, %s6527_s1  ;;  %p6533_p12 = scmp.lt.s32.totalorder %s6527_s1, %s6527_s1 }
  0x1e   :  { %p6534_p13 = por %p6533_p12, %p6532_p11 }
  0x20   :  { %p6535_p0 = pnand %p6534_p13, %p6528_p10 }
  0x22   :  { %6538 = shalt.err (!%p6535_p0)
}
  0x23   :  { %25 = dma.hbm_to_vmem [thread:$0]  %s6815_s0, 384, %s20_s28, [#allocation3], %s6612_s30, %s6612_s30, %s6613_s6  }
  0x24   :  { %s6614_s11 = smov [#allocation7]   ;;  %s6615_s13 = smov [#allocation10]  }
  0x25   :  { %s44_s12 = sshll.u32 %s6614_s11, 4  ;;  %s66_s14 = sshll.u32 %s6615_s13, 4  ;;  %s45_s12 = int_to_ptr.vmem [resolvable:$true] %s44_s12  ;;  %s67_s14 = int_to_ptr.vmem [resolvable:$true] %s66_s14 }
  0x26   :  { %s6547_s15 = scalar_lea.vmem %s45_s12, 192  ;;  %p6552_p2 = scmp.lt.s32.totalorder %s45_s12, %s45_s12 }
  0x27   :  { %p6548_p1 = scmp.ne.s32.totalorder %s45_s12, %s6547_s15  ;;  %p6553_p3 = scmp.lt.s32.totalorder %s6547_s15, %s6547_s15 }
  0x29   :  { %p6554_p4 = por %p6553_p3, %p6552_p2 }
  0x2b   :  { %p6555_p5 = pnand %p6554_p4, %p6548_p1 }
  0x2d   :  { %6558 = shalt.err (!%p6555_p5)
}
  0x2e   :  { %47 = dma.hbm_to_vmem [thread:$0]  %s6817_s2, 192, %s45_s12, [#allocation6]  }
  0x2f   :  { %s6567_s17 = scalar_lea.vmem %s67_s14, 48  ;;  %s6571_s0 = scalar_lea.vmem %s67_s14, 64 }
  0x30   :  { %p6568_p6 = scmp.ne.s32.totalorder %s67_s14, %s6567_s17  ;;  %p6572_p7 = scmp.lt.s32.totalorder %s67_s14, %s67_s14 }
  0x31   :  { %p6573_p8 = scmp.lt.s32.totalorder %s6571_s0, %s6567_s17 }
  0x33   :  { %p6574_p9 = por %p6573_p8, %p6572_p7 }
  0x35   :  { %p6575_p10 = pnand %p6574_p9, %p6568_p6 }
  0x37   :  { %6578 = shalt.err (!%p6575_p10)
}
  0x38   :  { %69 = dma.hbm_to_vmem [thread:$0]  %s6819_s4, 48, %s67_s14, [#allocation9]  }
  0x39   :  { %6599 = dma.done.wait [#allocation3], 384  }
  0x3a   :  { %6600 = vsyncadd [#allocation3], 4294966912 }
  0x3b   :  { %6601 = dma.done.wait [#allocation6], 37056  }
  0x3c   :  { %6602 = vsyncadd [#allocation6], 4294930240 }
  0x3d   :  { %6603 = dma.done.wait [#allocation9], 36912  }
  0x3e   :  { %6604 = vsyncadd [#allocation9], 4294930384  ;;  %v6616_v0 = vmov 0   ;;  %v5654_v1 = vld [vmem:[#allocation5 + $0x2a4] ss:$48 sps:$4 sm:$0xff]   ;;  %s6617_s2 = smov [#allocation11]  }
  0x3f   :  { %779 = vmatprep.mubr.bf16.mxu1 %v6616_v0  ;;  %v5656_v2 = vld [vmem:[#allocation5 + $0x8a4] ss:$48 sps:$4 sm:$0xff]   ;;  %704 = vmatprep.subr.bf16.mxu0 %v5654_v1  ;;  %v5658_v3 = vld [vmem:[#allocation5 + $0x2a0] ss:$48 sps:$4 sm:$0xff]   ;;  %v5707_v34 = vld [vmem:[#allocation5 + $0x2ac] ss:$48 sps:$4 sm:$0xff]  }
  0x40   :  { %v5659_v4 = vld [vmem:[#allocation5 + $0x8a0] ss:$48 sps:$4 sm:$0xff]   ;;  %747 = vmatprep.subr.bf16.mxu1 %v5656_v2  ;;  %v5660_v5 = vld [vmem:[#allocation5 + $0x244] ss:$48 sps:$4 sm:$0xff]   ;;  %705 = vmatpush1.bf16.msra.mxu0 %v5658_v3  ;;  %v5705_v36 = vld [vmem:[#allocation5 + $0x2a8] ss:$48 sps:$4 sm:$0xff]  }
  0x41   :  { %748 = vmatpush1.bf16.msra.mxu1 %v5659_v4  ;;  %v5662_v6 = vld [vmem:[#allocation5 + $0x844] ss:$48 sps:$4 sm:$0xff]   ;;  %v5664_v7 = vld [vmem:[#allocation5 + $0x240] ss:$48 sps:$4 sm:$0xff]   ;;  %706 = vmatprep.subr.bf16.mxu0 %v5660_v5  ;;  %v5713_v39 = vld [vmem:[#allocation5 + $0x24c] ss:$48 sps:$4 sm:$0xff]  }
  0x42   :  { %v5665_v8 = vld [vmem:[#allocation5 + $0x840] ss:$48 sps:$4 sm:$0xff]   ;;  %749 = vmatprep.subr.bf16.mxu1 %v5662_v6  ;;  %v5666_v9 = vld [vmem:[#allocation5 + $0x1e4] ss:$48 sps:$4 sm:$0xff]   ;;  %v5711_v40 = vld [vmem:[#allocation5 + $0x248] ss:$48 sps:$4 sm:$0xff]  }
  0x43   :  { %v5668_v10 = vld [vmem:[#allocation5 + $0x7e4] ss:$48 sps:$4 sm:$0xff]   ;;  %v5670_v11 = vld [vmem:[#allocation5 + $0x1e0] ss:$48 sps:$4 sm:$0xff]   ;;  %v5719_v43 = vld [vmem:[#allocation5 + $0x1ec] ss:$48 sps:$4 sm:$0xff]  }
  0x44   :  { %v5671_v12 = vld [vmem:[#allocation5 + $0x7e0] ss:$48 sps:$4 sm:$0xff]   ;;  %707 = vmatpush1.bf16.msra.mxu0 %v5664_v7  ;;  %v5672_v13 = vld [vmem:[#allocation5 + $0x184] ss:$48 sps:$4 sm:$0xff]   ;;  %v5717_v44 = vld [vmem:[#allocation5 + $0x1e8] ss:$48 sps:$4 sm:$0xff]  }
  0x45   :  { %750 = vmatpush1.bf16.msra.mxu1 %v5665_v8  ;;  %708 = vmatprep.subr.bf16.mxu0 %v5666_v9  ;;  %v5674_v14 = vld [vmem:[#allocation5 + $0x784] ss:$48 sps:$4 sm:$0xff]   ;;  %v5676_v15 = vld [vmem:[#allocation5 + $0x180] ss:$48 sps:$4 sm:$0xff]   ;;  %v5725_v47 = vld [vmem:[#allocation5 + $0x18c] ss:$48 sps:$4 sm:$0xff]  }
  0x46   :  { %751 = vmatprep.subr.bf16.mxu1 %v5668_v10  ;;  %v5677_v16 = vld [vmem:[#allocation5 + $0x780] ss:$48 sps:$4 sm:$0xff]   ;;  %v5678_v17 = vld [vmem:[#allocation5 + $0x124] ss:$48 sps:$4 sm:$0xff]   ;;  %v5723_v48 = vld [vmem:[#allocation5 + $0x188] ss:$48 sps:$4 sm:$0xff]  }
  0x47   :  { %v5680_v18 = vld [vmem:[#allocation5 + $0x724] ss:$48 sps:$4 sm:$0xff]   ;;  %v5682_v19 = vld [vmem:[#allocation5 + $0x120] ss:$48 sps:$4 sm:$0xff]   ;;  %v6669_v51 = vld [vmem:[#allocation2 + $0x4] ss:$12 sps:$4 sm:$0xff]  }
  0x48   :  { %709 = vmatpush1.bf16.msra.mxu0 %v5670_v11  ;;  %v5683_v20 = vld [vmem:[#allocation5 + $0x720] ss:$48 sps:$4 sm:$0xff]   ;;  %v5684_v21 = vld [vmem:[#allocation5 + $0xc4] ss:$48 sps:$4 sm:$0xff]   ;;  %v5731_v52 = vld [vmem:[#allocation5 + $0x12c] ss:$48 sps:$4 sm:$0xff]   ;;  %736 = vmatprep.mubr.bf16.mxu0 %v6669_v51 }
  0x49   :  { %752 = vmatpush1.bf16.msra.mxu1 %v5671_v12  ;;  %710 = vmatprep.subr.bf16.mxu0 %v5672_v13  ;;  %v5686_v22 = vld [vmem:[#allocation5 + $0x6c4] ss:$48 sps:$4 sm:$0xff]   ;;  %v5688_v23 = vld [vmem:[#allocation5 + $0xc0] ss:$48 sps:$4 sm:$0xff]   ;;  %v5729_v53 = vld [vmem:[#allocation5 + $0x128] ss:$48 sps:$4 sm:$0xff]  }
  0x4a   :  { %753 = vmatprep.subr.bf16.mxu1 %v5674_v14  ;;  %v5689_v24 = vld [vmem:[#allocation5 + $0x6c0] ss:$48 sps:$4 sm:$0xff]   ;;  %v5690_v25 = vld [vmem:[#allocation5 + $0x64] ss:$48 sps:$4 sm:$0xff]   ;;  %v5737_v56 = vld [vmem:[#allocation5 + $0xcc] ss:$48 sps:$4 sm:$0xff]  }
  0x4b   :  { %v5692_v26 = vld [vmem:[#allocation5 + $0x664] ss:$48 sps:$4 sm:$0xff]   ;;  %v5694_v27 = vld [vmem:[#allocation5 + $0x60] ss:$48 sps:$4 sm:$0xff]   ;;  %v5735_v57 = vld [vmem:[#allocation5 + $0xc8] ss:$48 sps:$4 sm:$0xff]  }
  0x4c   :  { %711 = vmatpush1.bf16.msra.mxu0 %v5676_v15  ;;  %v5695_v28 = vld [vmem:[#allocation5 + $0x660] ss:$48 sps:$4 sm:$0xff]   ;;  %v5696_v29 = vld [vmem:[#allocation5 + $0x4] ss:$48 sps:$4 sm:$0xff]   ;;  %v5743_v60 = vld [vmem:[#allocation5 + $0x6c] ss:$48 sps:$4 sm:$0xff]  }
  0x4d   :  { %754 = vmatpush1.bf16.msra.mxu1 %v5677_v16  ;;  %712 = vmatprep.subr.bf16.mxu0 %v5678_v17  ;;  %v5698_v30 = vld [vmem:[#allocation5 + $0x604] ss:$48 sps:$4 sm:$0xff]   ;;  %v5700_v31 = vld [vmem:[#allocation5] ss:$48 sps:$4 sm:$0xff]   ;;  %v5741_v61 = vld [vmem:[#allocation5 + $0x68] ss:$48 sps:$4 sm:$0xff]  }
  0x4e   :  { %755 = vmatprep.subr.bf16.mxu1 %v5680_v18  ;;  %v5701_v32 = vld [vmem:[#allocation5 + $0x600] ss:$48 sps:$4 sm:$0xff]   ;;  %v5702_v33 = vld [vmem:[#allocation5 + $0x5a4] ss:$48 sps:$4 sm:$0xff]   ;;  %v5749_v1 = vld [vmem:[#allocation5 + $0xc] ss:$48 sps:$4 sm:$0xff]  }
  0x4f   :  { %v6666_v35 = vld [vmem:[#allocation2 + $0x8] ss:$12 sps:$4 sm:$0xff]   ;;  %v5709_v38 = vld [vmem:[#allocation5 + $0x544] ss:$48 sps:$4 sm:$0xff]   ;;  %v5747_v2 = vld [vmem:[#allocation5 + $0x8] ss:$48 sps:$4 sm:$0xff]  }
  0x50   :  { %713 = vmatpush1.bf16.msra.mxu0 %v5682_v19  ;;  %v5708_v37 = vld [vmem:[#allocation5 + $0x5a0] ss:$48 sps:$4 sm:$0xff]   ;;  %v5715_v42 = vld [vmem:[#allocation5 + $0x4e4] ss:$48 sps:$4 sm:$0xff]   ;;  %v5756_v4 = vld [vmem:[#allocation5 + $0x5ac] ss:$48 sps:$4 sm:$0xff]  }
  0x51   :  { %756 = vmatpush1.bf16.msra.mxu1 %v5683_v20  ;;  %714 = vmatprep.subr.bf16.mxu0 %v5684_v21  ;;  %v5714_v41 = vld [vmem:[#allocation5 + $0x540] ss:$48 sps:$4 sm:$0xff]   ;;  %v5721_v46 = vld [vmem:[#allocation5 + $0x484] ss:$48 sps:$4 sm:$0xff]   ;;  %v5759_v5 = vld [vmem:[#allocation5 + $0x8ac] ss:$48 sps:$4 sm:$0xff]  }
  0x52   :  { %757 = vmatprep.subr.bf16.mxu1 %v5686_v22  ;;  %v5720_v45 = vld [vmem:[#allocation5 + $0x4e0] ss:$48 sps:$4 sm:$0xff]   ;;  %v5727_v50 = vld [vmem:[#allocation5 + $0x424] ss:$48 sps:$4 sm:$0xff]   ;;  %v5754_v7 = vld [vmem:[#allocation5 + $0x5a8] ss:$48 sps:$4 sm:$0xff]  }
  0x53   :  { %v5726_v49 = vld [vmem:[#allocation5 + $0x480] ss:$48 sps:$4 sm:$0xff]   ;;  %v5733_v55 = vld [vmem:[#allocation5 + $0x3c4] ss:$48 sps:$4 sm:$0xff]   ;;  %v5757_v8 = vld [vmem:[#allocation5 + $0x8a8] ss:$48 sps:$4 sm:$0xff]  }
  0x54   :  { %715 = vmatpush1.bf16.msra.mxu0 %v5688_v23  ;;  %v5732_v54 = vld [vmem:[#allocation5 + $0x420] ss:$48 sps:$4 sm:$0xff]   ;;  %v5739_v59 = vld [vmem:[#allocation5 + $0x364] ss:$48 sps:$4 sm:$0xff]   ;;  %v5762_v9 = vld [vmem:[#allocation5 + $0x54c] ss:$48 sps:$4 sm:$0xff]  }
  0x55   :  { %758 = vmatpush1.bf16.msra.mxu1 %v5689_v24  ;;  %716 = vmatprep.subr.bf16.mxu0 %v5690_v25  ;;  %v5738_v58 = vld [vmem:[#allocation5 + $0x3c0] ss:$48 sps:$4 sm:$0xff]   ;;  %v5745_v63 = vld [vmem:[#allocation5 + $0x304] ss:$48 sps:$4 sm:$0xff]   ;;  %v5765_v10 = vld [vmem:[#allocation5 + $0x84c] ss:$48 sps:$4 sm:$0xff]  }
  0x56   :  { %759 = vmatprep.subr.bf16.mxu1 %v5692_v26  ;;  %v5744_v62 = vld [vmem:[#allocation5 + $0x360] ss:$48 sps:$4 sm:$0xff]   ;;  %v6673_v6 = vld [vmem:[#allocation2] ss:$12 sps:$4 sm:$0xff]   ;;  %v5768_v13 = vld [vmem:[#allocation5 + $0x4ec] ss:$48 sps:$4 sm:$0xff]  }
  0x57   :  { %v5750_v3 = vld [vmem:[#allocation5 + $0x300] ss:$48 sps:$4 sm:$0xff]   ;;  %v5760_v11 = vld [vmem:[#allocation5 + $0x548] ss:$48 sps:$4 sm:$0xff]   ;;  %v5771_v14 = vld [vmem:[#allocation5 + $0x7ec] ss:$48 sps:$4 sm:$0xff]  }
  0x58   :  { %717 = vmatpush1.bf16.msra.mxu0 %v5694_v27  ;;  %v5763_v12 = vld [vmem:[#allocation5 + $0x848] ss:$48 sps:$4 sm:$0xff]   ;;  %v5774_v17 = vld [vmem:[#allocation5 + $0x48c] ss:$48 sps:$4 sm:$0xff]   ;;  %s4916_s4 = sshll.u32 %s6617_s2, 4  ;;  %s4917_s4 = int_to_ptr.vmem [resolvable:$true] %s4916_s4 }
  0x59   :  { %760 = vmatpush1.bf16.msra.mxu1 %v5695_v28  ;;  %718 = vmatprep.subr.bf16.mxu0 %v5696_v29  ;;  %v5766_v15 = vld [vmem:[#allocation5 + $0x4e8] ss:$48 sps:$4 sm:$0xff]   ;;  %v5777_v18 = vld [vmem:[#allocation5 + $0x78c] ss:$48 sps:$4 sm:$0xff]   ;;  %s6579_s20 = scalar_lea.vmem %s4917_s4, 768  ;;  %p6584_p12 = scmp.lt.s32.totalorder %s4917_s4, %s4917_s4 }
  0x5a   :  { %761 = vmatprep.subr.bf16.mxu1 %v5698_v30  ;;  %v5769_v16 = vld [vmem:[#allocation5 + $0x7e8] ss:$48 sps:$4 sm:$0xff]   ;;  %v5780_v21 = vld [vmem:[#allocation5 + $0x42c] ss:$48 sps:$4 sm:$0xff]   ;;  %p6580_p11 = scmp.ne.s32.totalorder %s4917_s4, %s6579_s20  ;;  %p6585_p13 = scmp.lt.s32.totalorder %s6579_s20, %s6579_s20 }
  0x5b   :  { %v5772_v19 = vld [vmem:[#allocation5 + $0x488] ss:$48 sps:$4 sm:$0xff]   ;;  %v5783_v22 = vld [vmem:[#allocation5 + $0x72c] ss:$48 sps:$4 sm:$0xff]  }
  0x5c   :  { %719 = vmatpush1.bf16.msra.mxu0 %v5700_v31  ;;  %v5775_v20 = vld [vmem:[#allocation5 + $0x788] ss:$48 sps:$4 sm:$0xff]   ;;  %v5786_v25 = vld [vmem:[#allocation5 + $0x3cc] ss:$48 sps:$4 sm:$0xff]   ;;  %p6586_p0 = por %p6585_p13, %p6584_p12 }
  0x5d   :  { %762 = vmatpush1.bf16.msra.mxu1 %v5701_v32  ;;  %720 = vmatprep.subr.bf16.mxu0 %v5702_v33  ;;  %v5778_v23 = vld [vmem:[#allocation5 + $0x428] ss:$48 sps:$4 sm:$0xff]   ;;  %v5789_v26 = vld [vmem:[#allocation5 + $0x6cc] ss:$48 sps:$4 sm:$0xff]  }
  0x5e   :  { %790 = vmatprep.subr.bf16.mxu1 %v5707_v34  ;;  %v5781_v24 = vld [vmem:[#allocation5 + $0x728] ss:$48 sps:$4 sm:$0xff]   ;;  %v5792_v29 = vld [vmem:[#allocation5 + $0x36c] ss:$48 sps:$4 sm:$0xff]   ;;  %p6587_p1 = pnand %p6586_p0, %p6580_p11 }
  0x5f   :  { %v5784_v27 = vld [vmem:[#allocation5 + $0x3c8] ss:$48 sps:$4 sm:$0xff]   ;;  %v5795_v30 = vld [vmem:[#allocation5 + $0x66c] ss:$48 sps:$4 sm:$0xff]  }
  0x60   :  { %780 = vmatmul.mubr.bf16.vlgmr.msra.gmra.mxu1 %v6666_v35  ;;  %721 = vmatpush2.bf16.msra.mxu0 %v5708_v37  ;;  %v5787_v28 = vld [vmem:[#allocation5 + $0x6c8] ss:$48 sps:$4 sm:$0xff]   ;;  %v5798_v33 = vld [vmem:[#allocation5 + $0x30c] ss:$48 sps:$4 sm:$0xff]  }
  0x61   :  { %791 = vmatpush1.bf16.msra.mxu1 %v5705_v36  ;;  %722 = vmatprep.subr.bf16.mxu0 %v5709_v38  ;;  %v5790_v31 = vld [vmem:[#allocation5 + $0x368] ss:$48 sps:$4 sm:$0xff]   ;;  %v5801_v34 = vld [vmem:[#allocation5 + $0x60c] ss:$48 sps:$4 sm:$0xff]   ;;  %v5804_v38 = vld [vmem:[#allocation5 + $0x2b4] ss:$48 sps:$4 sm:$0xff]  }
  0x62   :  { %792 = vmatprep.subr.bf16.mxu1 %v5713_v39  ;;  %822 = vmatprep.mubr.bf16.mxu1 %v6669_v51  ;;  %v5793_v32 = vld [vmem:[#allocation5 + $0x668] ss:$48 sps:$4 sm:$0xff]   ;;  %v5807_v39 = vld [vmem:[#allocation5 + $0x8b4] ss:$48 sps:$4 sm:$0xff]  }
  0x63   :  { %v5796_v36 = vld [vmem:[#allocation5 + $0x308] ss:$48 sps:$4 sm:$0xff]  }
  0x64   :  { %723 = vmatpush2.bf16.msra.mxu0 %v5714_v41  ;;  %v5799_v37 = vld [vmem:[#allocation5 + $0x608] ss:$48 sps:$4 sm:$0xff]   ;;  %v5805_v41 = vld [vmem:[#allocation5 + $0x8b0] ss:$48 sps:$4 sm:$0xff]  }
  0x65   :  { %793 = vmatpush1.bf16.msra.mxu1 %v5711_v40  ;;  %724 = vmatprep.subr.bf16.mxu0 %v5715_v42  ;;  %v5802_v40 = vld [vmem:[#allocation5 + $0x2b0] ss:$48 sps:$4 sm:$0xff]   ;;  %v5810_v42 = vld [vmem:[#allocation5 + $0x254] ss:$48 sps:$4 sm:$0xff]  }
  0x66   :  { %794 = vmatprep.subr.bf16.mxu1 %v5719_v43  ;;  %v5813_v43 = vld [vmem:[#allocation5 + $0x854] ss:$48 sps:$4 sm:$0xff]  }
  0x68   :  { %725 = vmatpush2.bf16.msra.mxu0 %v5720_v45  ;;  %v5811_v45 = vld [vmem:[#allocation5 + $0x850] ss:$48 sps:$4 sm:$0xff]  }
  0x69   :  { %795 = vmatpush1.bf16.msra.mxu1 %v5717_v44  ;;  %726 = vmatprep.subr.bf16.mxu0 %v5721_v46  ;;  %v5808_v44 = vld [vmem:[#allocation5 + $0x250] ss:$48 sps:$4 sm:$0xff]   ;;  %v5816_v46 = vld [vmem:[#allocation5 + $0x1f4] ss:$48 sps:$4 sm:$0xff]  }
  0x6a   :  { %796 = vmatprep.subr.bf16.mxu1 %v5725_v47  ;;  %v5819_v47 = vld [vmem:[#allocation5 + $0x7f4] ss:$48 sps:$4 sm:$0xff]  }
  0x6c   :  { %727 = vmatpush2.bf16.msra.mxu0 %v5726_v49  ;;  %v5817_v49 = vld [vmem:[#allocation5 + $0x7f0] ss:$48 sps:$4 sm:$0xff]  }
  0x6d   :  { %797 = vmatpush1.bf16.msra.mxu1 %v5723_v48  ;;  %728 = vmatprep.subr.bf16.mxu0 %v5727_v50  ;;  %v5814_v48 = vld [vmem:[#allocation5 + $0x1f0] ss:$48 sps:$4 sm:$0xff]   ;;  %v5822_v50 = vld [vmem:[#allocation5 + $0x194] ss:$48 sps:$4 sm:$0xff]  }
  0x6e   :  { %798 = vmatprep.subr.bf16.mxu1 %v5731_v52  ;;  %v5825_v52 = vld [vmem:[#allocation5 + $0x794] ss:$48 sps:$4 sm:$0xff]  }
  0x70   :  { %729 = vmatpush2.bf16.msra.mxu0 %v5732_v54  ;;  %v5823_v54 = vld [vmem:[#allocation5 + $0x790] ss:$48 sps:$4 sm:$0xff]  }
  0x71   :  { %799 = vmatpush1.bf16.msra.mxu1 %v5729_v53  ;;  %730 = vmatprep.subr.bf16.mxu0 %v5733_v55  ;;  %v5820_v53 = vld [vmem:[#allocation5 + $0x190] ss:$48 sps:$4 sm:$0xff]   ;;  %v5828_v55 = vld [vmem:[#allocation5 + $0x134] ss:$48 sps:$4 sm:$0xff]  }
  0x72   :  { %800 = vmatprep.subr.bf16.mxu1 %v5737_v56  ;;  %v5831_v56 = vld [vmem:[#allocation5 + $0x734] ss:$48 sps:$4 sm:$0xff]  }
  0x74   :  { %731 = vmatpush2.bf16.msra.mxu0 %v5738_v58  ;;  %v5829_v58 = vld [vmem:[#allocation5 + $0x730] ss:$48 sps:$4 sm:$0xff]  }
  0x75   :  { %801 = vmatpush1.bf16.msra.mxu1 %v5735_v57  ;;  %732 = vmatprep.subr.bf16.mxu0 %v5739_v59  ;;  %v5826_v57 = vld [vmem:[#allocation5 + $0x130] ss:$48 sps:$4 sm:$0xff]   ;;  %v5834_v59 = vld [vmem:[#allocation5 + $0xd4] ss:$48 sps:$4 sm:$0xff]  }
  0x76   :  { %802 = vmatprep.subr.bf16.mxu1 %v5743_v60  ;;  %v5837_v60 = vld [vmem:[#allocation5 + $0x6d4] ss:$48 sps:$4 sm:$0xff]  }
  0x78   :  { %733 = vmatpush2.bf16.msra.mxu0 %v5744_v62  ;;  %v5835_v62 = vld [vmem:[#allocation5 + $0x6d0] ss:$48 sps:$4 sm:$0xff]  }
  0x79   :  { %803 = vmatpush1.bf16.msra.mxu1 %v5741_v61  ;;  %734 = vmatprep.subr.bf16.mxu0 %v5745_v63  ;;  %v5832_v61 = vld [vmem:[#allocation5 + $0xd0] ss:$48 sps:$4 sm:$0xff]   ;;  %v5840_v63 = vld [vmem:[#allocation5 + $0x74] ss:$48 sps:$4 sm:$0xff]  }
  0x7a   :  { %804 = vmatprep.subr.bf16.mxu1 %v5749_v1  ;;  %v5843_v1 = vld [vmem:[#allocation5 + $0x674] ss:$48 sps:$4 sm:$0xff]  }
  0x7c   :  { %735 = vmatpush2.bf16.msra.mxu0 %v5750_v3  ;;  %v5841_v3 = vld [vmem:[#allocation5 + $0x670] ss:$48 sps:$4 sm:$0xff]  }
  0x7d   :  { %805 = vmatpush1.bf16.msra.mxu1 %v5747_v2  ;;  %833 = vmatprep.subr.bf16.mxu0 %v5759_v5  ;;  %v5838_v2 = vld [vmem:[#allocation5 + $0x70] ss:$48 sps:$4 sm:$0xff]   ;;  %v5849_v5 = vld [vmem:[#allocation5 + $0x614] ss:$48 sps:$4 sm:$0xff]  }
  0x7e   :  { %806 = vmatprep.subr.bf16.mxu1 %v5756_v4  ;;  %v5846_v4 = vld [vmem:[#allocation5 + $0x14] ss:$48 sps:$4 sm:$0xff]  }
  0x7f   :  { %737 = vmatmul.mubr.bf16.vlgmr.msra.gmra.mxu0 %v6673_v6 }
  0x80   :  { %834 = vmatpush1.bf16.msra.mxu0 %v5757_v8  ;;  %865 = vmatprep.mubr.bf16.mxu0 %v6616_v0  ;;  %v5847_v8 = vld [vmem:[#allocation5 + $0x610] ss:$48 sps:$4 sm:$0xff]  }
  0x81   :  { %807 = vmatpush2.bf16.msra.mxu1 %v5754_v7  ;;  %835 = vmatprep.subr.bf16.mxu0 %v5765_v10  ;;  %v5844_v7 = vld [vmem:[#allocation5 + $0x10] ss:$48 sps:$4 sm:$0xff]   ;;  %v5855_v10 = vld [vmem:[#allocation5 + $0x2bc] ss:$48 sps:$4 sm:$0xff]  }
  0x82   :  { %808 = vmatprep.subr.bf16.mxu1 %v5762_v9  ;;  %v5852_v9 = vld [vmem:[#allocation5 + $0x5b4] ss:$48 sps:$4 sm:$0xff]  }
  0x84   :  { %836 = vmatpush1.bf16.msra.mxu0 %v5763_v12  ;;  %v5853_v12 = vld [vmem:[#allocation5 + $0x2b8] ss:$48 sps:$4 sm:$0xff]  }
  0x85   :  { %809 = vmatpush2.bf16.msra.mxu1 %v5760_v11  ;;  %837 = vmatprep.subr.bf16.mxu0 %v5771_v14  ;;  %v5850_v11 = vld [vmem:[#allocation5 + $0x5b0] ss:$48 sps:$4 sm:$0xff]   ;;  %v5861_v14 = vld [vmem:[#allocation5 + $0x25c] ss:$48 sps:$4 sm:$0xff]  }
  0x86   :  { %810 = vmatprep.subr.bf16.mxu1 %v5768_v13  ;;  %v5858_v13 = vld [vmem:[#allocation5 + $0x554] ss:$48 sps:$4 sm:$0xff]  }
  0x88   :  { %838 = vmatpush1.bf16.msra.mxu0 %v5769_v16  ;;  %v5859_v16 = vld [vmem:[#allocation5 + $0x258] ss:$48 sps:$4 sm:$0xff]  }
  0x89   :  { %811 = vmatpush2.bf16.msra.mxu1 %v5766_v15  ;;  %839 = vmatprep.subr.bf16.mxu0 %v5777_v18  ;;  %v5856_v15 = vld [vmem:[#allocation5 + $0x550] ss:$48 sps:$4 sm:$0xff]   ;;  %v5867_v18 = vld [vmem:[#allocation5 + $0x1fc] ss:$48 sps:$4 sm:$0xff]  }
  0x8a   :  { %812 = vmatprep.subr.bf16.mxu1 %v5774_v17  ;;  %v5864_v17 = vld [vmem:[#allocation5 + $0x4f4] ss:$48 sps:$4 sm:$0xff]  }
  0x8c   :  { %840 = vmatpush1.bf16.msra.mxu0 %v5775_v20  ;;  %v5865_v20 = vld [vmem:[#allocation5 + $0x1f8] ss:$48 sps:$4 sm:$0xff]  }
  0x8d   :  { %813 = vmatpush2.bf16.msra.mxu1 %v5772_v19  ;;  %841 = vmatprep.subr.bf16.mxu0 %v5783_v22  ;;  %v5862_v19 = vld [vmem:[#allocation5 + $0x4f0] ss:$48 sps:$4 sm:$0xff]   ;;  %v5873_v22 = vld [vmem:[#allocation5 + $0x19c] ss:$48 sps:$4 sm:$0xff]  }
  0x8e   :  { %814 = vmatprep.subr.bf16.mxu1 %v5780_v21  ;;  %v5870_v21 = vld [vmem:[#allocation5 + $0x494] ss:$48 sps:$4 sm:$0xff]  }
  0x90   :  { %842 = vmatpush1.bf16.msra.mxu0 %v5781_v24  ;;  %v5871_v24 = vld [vmem:[#allocation5 + $0x198] ss:$48 sps:$4 sm:$0xff]  }
  0x91   :  { %815 = vmatpush2.bf16.msra.mxu1 %v5778_v23  ;;  %843 = vmatprep.subr.bf16.mxu0 %v5789_v26  ;;  %v5868_v23 = vld [vmem:[#allocation5 + $0x490] ss:$48 sps:$4 sm:$0xff]  }
  0x92   :  { %816 = vmatprep.subr.bf16.mxu1 %v5786_v25  ;;  %v5876_v25 = vld [vmem:[#allocation5 + $0x434] ss:$48 sps:$4 sm:$0xff]   ;;  %v5874_v26 = vld [vmem:[#allocation5 + $0x430] ss:$48 sps:$4 sm:$0xff]  }
  0x94   :  { %844 = vmatpush1.bf16.msra.mxu0 %v5787_v28  ;;  %v5882_v28 = vld [vmem:[#allocation5 + $0x3d4] ss:$48 sps:$4 sm:$0xff]  }
  0x95   :  { %817 = vmatpush2.bf16.msra.mxu1 %v5784_v27  ;;  %845 = vmatprep.subr.bf16.mxu0 %v5795_v30  ;;  %v5877_v27 = vld [vmem:[#allocation5 + $0x138] ss:$48 sps:$4 sm:$0xff]  }
  0x96   :  { %818 = vmatprep.subr.bf16.mxu1 %v5792_v29  ;;  %v5885_v29 = vld [vmem:[#allocation5 + $0xdc] ss:$48 sps:$4 sm:$0xff]   ;;  %v5883_v30 = vld [vmem:[#allocation5 + $0xd8] ss:$48 sps:$4 sm:$0xff]  }
  0x98   :  { %846 = vmatpush1.bf16.msra.mxu0 %v5793_v32  ;;  %v5891_v32 = vld [vmem:[#allocation5 + $0x7c] ss:$48 sps:$4 sm:$0xff]  }
  0x99   :  { %819 = vmatpush2.bf16.msra.mxu1 %v5790_v31  ;;  %847 = vmatprep.subr.bf16.mxu0 %v5801_v34  ;;  %v5888_v31 = vld [vmem:[#allocation5 + $0x374] ss:$48 sps:$4 sm:$0xff]   ;;  %v5889_v34 = vld [vmem:[#allocation5 + $0x78] ss:$48 sps:$4 sm:$0xff]  }
  0x9a   :  { %820 = vmatprep.subr.bf16.mxu1 %v5798_v33  ;;  %v5886_v33 = vld [vmem:[#allocation5 + $0x370] ss:$48 sps:$4 sm:$0xff]  }
  0x9c   :  { %848 = vmatpush1.bf16.msra.mxu0 %v5799_v37  ;;  %v5897_v37 = vld [vmem:[#allocation5 + $0x1c] ss:$48 sps:$4 sm:$0xff]  }
  0x9d   :  { %821 = vmatpush2.bf16.msra.mxu1 %v5796_v36  ;;  %1614 = vmatprep.subr.bf16.mxu0 %v5804_v38  ;;  %v5894_v36 = vld [vmem:[#allocation5 + $0x314] ss:$48 sps:$4 sm:$0xff]   ;;  %v5892_v38 = vld [vmem:[#allocation5 + $0x310] ss:$48 sps:$4 sm:$0xff]  }
  0x9e   :  { %1657 = vmatprep.subr.bf16.mxu1 %v5807_v39  ;;  %v5895_v39 = vld [vmem:[#allocation5 + $0x18] ss:$48 sps:$4 sm:$0xff]  }
  0x9f   :  { %866 = vmatmul.mubr.bf16.vlgmr.msra.gmra.mxu0 %v6666_v35 }
  0xa0   :  { %823 = vmatmul.mubr.bf16.vlgmr.msra.gmra.mxu1 %v6673_v6  ;;  %1615 = vmatpush1.bf16.msra.mxu0 %v5802_v40  ;;  %v5900_v40 = vld [vmem:[#allocation5 + $0x5bc] ss:$48 sps:$4 sm:$0xff]  }
  0xa1   :  { %1658 = vmatpush1.bf16.msra.mxu1 %v5805_v41  ;;  %1616 = vmatprep.subr.bf16.mxu0 %v5810_v42  ;;  %v5903_v41 = vld [vmem:[#allocation5 + $0x8bc] ss:$48 sps:$4 sm:$0xff]   ;;  %v5898_v42 = vld [vmem:[#allocation5 + $0x5b8] ss:$48 sps:$4 sm:$0xff]  }
  0xa2   :  { %1659 = vmatprep.subr.bf16.mxu1 %v5813_v43  ;;  %1689 = vmatprep.mubr.bf16.mxu1 %v6616_v0  ;;  %v5901_v43 = vld [vmem:[#allocation5 + $0x8b8] ss:$48 sps:$4 sm:$0xff]  }
  0xa3   :  { %1646 = vmatprep.mubr.bf16.mxu0 %v6669_v51 }
  0xa4   :  { %1617 = vmatpush1.bf16.msra.mxu0 %v5808_v44  ;;  %v5906_v44 = vld [vmem:[#allocation5 + $0x55c] ss:$48 sps:$4 sm:$0xff]  }
  0xa5   :  { %1660 = vmatpush1.bf16.msra.mxu1 %v5811_v45  ;;  %1618 = vmatprep.subr.bf16.mxu0 %v5816_v46  ;;  %v5909_v45 = vld [vmem:[#allocation5 + $0x85c] ss:$48 sps:$4 sm:$0xff]   ;;  %v5904_v46 = vld [vmem:[#allocation5 + $0x558] ss:$48 sps:$4 sm:$0xff]  }
  0xa6   :  { %1661 = vmatprep.subr.bf16.mxu1 %v5819_v47  ;;  %v5907_v47 = vld [vmem:[#allocation5 + $0x858] ss:$48 sps:$4 sm:$0xff]  }
  0xa8   :  { %1619 = vmatpush1.bf16.msra.mxu0 %v5814_v48  ;;  %v5912_v48 = vld [vmem:[#allocation5 + $0x4fc] ss:$48 sps:$4 sm:$0xff]  }
  0xa9   :  { %1662 = vmatpush1.bf16.msra.mxu1 %v5817_v49  ;;  %1620 = vmatprep.subr.bf16.mxu0 %v5822_v50  ;;  %v5915_v49 = vld [vmem:[#allocation5 + $0x7fc] ss:$48 sps:$4 sm:$0xff]   ;;  %v5910_v50 = vld [vmem:[#allocation5 + $0x4f8] ss:$48 sps:$4 sm:$0xff]  }
  0xaa   :  { %1663 = vmatprep.subr.bf16.mxu1 %v5825_v52  ;;  %v5913_v52 = vld [vmem:[#allocation5 + $0x7f8] ss:$48 sps:$4 sm:$0xff]  }
  0xac   :  { %1621 = vmatpush1.bf16.msra.mxu0 %v5820_v53  ;;  %v5918_v53 = vld [vmem:[#allocation5 + $0x49c] ss:$48 sps:$4 sm:$0xff]  }
  0xad   :  { %1664 = vmatpush1.bf16.msra.mxu1 %v5823_v54  ;;  %1622 = vmatprep.subr.bf16.mxu0 %v5828_v55  ;;  %v5921_v54 = vld [vmem:[#allocation5 + $0x79c] ss:$48 sps:$4 sm:$0xff]   ;;  %v5916_v55 = vld [vmem:[#allocation5 + $0x498] ss:$48 sps:$4 sm:$0xff]  }
  0xae   :  { %1665 = vmatprep.subr.bf16.mxu1 %v5831_v56  ;;  %v5919_v56 = vld [vmem:[#allocation5 + $0x798] ss:$48 sps:$4 sm:$0xff]  }
  0xb0   :  { %1623 = vmatpush1.bf16.msra.mxu0 %v5826_v57  ;;  %v5924_v57 = vld [vmem:[#allocation5 + $0x43c] ss:$48 sps:$4 sm:$0xff]  }
  0xb1   :  { %1666 = vmatpush1.bf16.msra.mxu1 %v5829_v58  ;;  %1624 = vmatprep.subr.bf16.mxu0 %v5834_v59  ;;  %v5922_v58 = vld [vmem:[#allocation5 + $0x438] ss:$48 sps:$4 sm:$0xff]  }
  0xb2   :  { %1667 = vmatprep.subr.bf16.mxu1 %v5837_v60  ;;  %v5925_v59 = vld [vmem:[#allocation5 + $0x738] ss:$48 sps:$4 sm:$0xff]   ;;  %v5930_v60 = vld [vmem:[#allocation5 + $0x3dc] ss:$48 sps:$4 sm:$0xff]  }
  0xb4   :  { %1625 = vmatpush1.bf16.msra.mxu0 %v5832_v61  ;;  %v5933_v61 = vld [vmem:[#allocation5 + $0x6dc] ss:$48 sps:$4 sm:$0xff]  }
  0xb5   :  { %1668 = vmatpush1.bf16.msra.mxu1 %v5835_v62  ;;  %1626 = vmatprep.subr.bf16.mxu0 %v5840_v63  ;;  %v5928_v62 = vld [vmem:[#allocation5 + $0x3d8] ss:$48 sps:$4 sm:$0xff]  }
  0xb6   :  { %1669 = vmatprep.subr.bf16.mxu1 %v5843_v1  ;;  %v5931_v63 = vld [vmem:[#allocation5 + $0x6d8] ss:$48 sps:$4 sm:$0xff]   ;;  %v5936_v1 = vld [vmem:[#allocation5 + $0x37c] ss:$48 sps:$4 sm:$0xff]  }
  0xb8   :  { %1627 = vmatpush1.bf16.msra.mxu0 %v5838_v2  ;;  %v5939_v2 = vld [vmem:[#allocation5 + $0x67c] ss:$48 sps:$4 sm:$0xff]  }
  0xb9   :  { %1670 = vmatpush1.bf16.msra.mxu1 %v5841_v3  ;;  %1628 = vmatprep.subr.bf16.mxu0 %v5846_v4  ;;  %v5934_v3 = vld [vmem:[#allocation5 + $0x378] ss:$48 sps:$4 sm:$0xff]  }
  0xba   :  { %1671 = vmatprep.subr.bf16.mxu1 %v5849_v5  ;;  %v5937_v4 = vld [vmem:[#allocation5 + $0x678] ss:$48 sps:$4 sm:$0xff]   ;;  %v5942_v5 = vld [vmem:[#allocation5 + $0x31c] ss:$48 sps:$4 sm:$0xff]  }
  0xbc   :  { %1629 = vmatpush1.bf16.msra.mxu0 %v5844_v7  ;;  %v5945_v7 = vld [vmem:[#allocation5 + $0x61c] ss:$48 sps:$4 sm:$0xff]  }
  0xbd   :  { %1672 = vmatpush1.bf16.msra.mxu1 %v5847_v8  ;;  %1630 = vmatprep.subr.bf16.mxu0 %v5852_v9  ;;  %v5940_v8 = vld [vmem:[#allocation5 + $0x318] ss:$48 sps:$4 sm:$0xff]  }
  0xbe   :  { %1700 = vmatprep.subr.bf16.mxu1 %v5855_v10  ;;  %v5943_v9 = vld [vmem:[#allocation5 + $0x618] ss:$48 sps:$4 sm:$0xff]  }
  0xbf   :  { %v5948_v10 = vld [vmem:[#allocation8 + $0x3ac] ss:$12 sps:$4 sm:$0xff]  }
  0xc0   :  { %1690 = vmatmul.mubr.bf16.vlgmr.msra.gmra.mxu1 %v6666_v35  ;;  %1631 = vmatpush2.bf16.msra.mxu0 %v5850_v11  ;;  %v5879_v35 = vld [vmem:[#allocation5 + $0x13c] ss:$48 sps:$4 sm:$0xff]   ;;  %v5946_v11 = vld [vmem:[#allocation8 + $0x3a8] ss:$12 sps:$4 sm:$0xff]  }
  0xc1   :  { %1701 = vmatpush1.bf16.msra.mxu1 %v5853_v12  ;;  %1632 = vmatprep.subr.bf16.mxu0 %v5858_v13  ;;  %v5951_v12 = vld [vmem:[#allocation8 + $0x394] ss:$12 sps:$4 sm:$0xff]   ;;  %v6474_v13 = vld [vmem:[#allocation2] ss:$12 sps:$4 sm:$0xff]  }
  0xc2   :  { %1702 = vmatprep.subr.bf16.mxu1 %v5861_v14  ;;  %1732 = vmatprep.mubr.bf16.mxu1 %v6669_v51  ;;  %v5880_v51 = vld [vmem:[#allocation5 + $0x3d0] ss:$48 sps:$4 sm:$0xff]  }
  0xc3   :  { %v6475_v14 = vld [vmem:[#allocation2 + $0x8] ss:$12 sps:$4 sm:$0xff]  }
  0xc4   :  { %1633 = vmatpush2.bf16.msra.mxu0 %v5856_v15  ;;  %v5949_v15 = vld [vmem:[#allocation8 + $0x390] ss:$12 sps:$4 sm:$0xff]  }
  0xc5   :  { %1703 = vmatpush1.bf16.msra.mxu1 %v5859_v16  ;;  %1634 = vmatprep.subr.bf16.mxu0 %v5864_v17  ;;  %v5954_v16 = vld [vmem:[#allocation8 + $0x37c] ss:$12 sps:$4 sm:$0xff]   ;;  %v5952_v17 = vld [vmem:[#allocation8 + $0x378] ss:$12 sps:$4 sm:$0xff]  }
  0xc6   :  { %1704 = vmatprep.subr.bf16.mxu1 %v5867_v18  ;;  %v5957_v18 = vld [vmem:[#allocation8 + $0x364] ss:$12 sps:$4 sm:$0xff]  }
  0xc8   :  { %1635 = vmatpush2.bf16.msra.mxu0 %v5862_v19  ;;  %v5973_v19 = vld [vmem:[#allocation8 + $0x528] ss:$12 sps:$4 sm:$0xff]  }
  0xc9   :  { %1705 = vmatpush1.bf16.msra.mxu1 %v5865_v20  ;;  %1636 = vmatprep.subr.bf16.mxu0 %v5870_v21  ;;  %v5975_v20 = vld [vmem:[#allocation8 + $0x52c] ss:$12 sps:$4 sm:$0xff]  }
  0xca   :  { %1706 = vmatprep.subr.bf16.mxu1 %v5873_v22  ;;  %v5955_v21 = vld [vmem:[#allocation8 + $0x360] ss:$12 sps:$4 sm:$0xff]  }
  0xcb   :  { %v5981_v22 = vld [vmem:[#allocation8 + $0x514] ss:$12 sps:$4 sm:$0xff]  }
  0xcc   :  { %1637 = vmatpush2.bf16.msra.mxu0 %v5868_v23  ;;  %v5960_v23 = vld [vmem:[#allocation8 + $0x34c] ss:$12 sps:$4 sm:$0xff]  }
  0xcd   :  { %1707 = vmatpush1.bf16.msra.mxu1 %v5871_v24  ;;  %1638 = vmatprep.subr.bf16.mxu0 %v5876_v25  ;;  %v5979_v24 = vld [vmem:[#allocation8 + $0x510] ss:$12 sps:$4 sm:$0xff]  }
  0xce   :  { %1708 = vmatprep.subr.bf16.mxu1 %v5879_v35  ;;  %v5987_v25 = vld [vmem:[#allocation8 + $0x4fc] ss:$12 sps:$4 sm:$0xff]  }
  0xcf   :  { %v5958_v35 = vld [vmem:[#allocation8 + $0x348] ss:$12 sps:$4 sm:$0xff]  }
  0xd0   :  { %1639 = vmatpush2.bf16.msra.mxu0 %v5874_v26  ;;  %v5963_v26 = vld [vmem:[#allocation8 + $0x334] ss:$12 sps:$4 sm:$0xff]  }
  0xd1   :  { %1709 = vmatpush1.bf16.msra.mxu1 %v5877_v27  ;;  %1640 = vmatprep.subr.bf16.mxu0 %v5882_v28  ;;  %v5985_v27 = vld [vmem:[#allocation8 + $0x4f8] ss:$12 sps:$4 sm:$0xff]  }
  0xd2   :  { %1710 = vmatprep.subr.bf16.mxu1 %v5885_v29  ;;  %v5993_v28 = vld [vmem:[#allocation8 + $0x4e4] ss:$12 sps:$4 sm:$0xff]  }
  0xd3   :  { %v5961_v29 = vld [vmem:[#allocation8 + $0x330] ss:$12 sps:$4 sm:$0xff]  }
  0xd4   :  { %1641 = vmatpush2.bf16.msra.mxu0 %v5880_v51  ;;  %v5966_v51 = vld [vmem:[#allocation8 + $0x31c] ss:$12 sps:$4 sm:$0xff]  }
  0xd5   :  { %1711 = vmatpush1.bf16.msra.mxu1 %v5883_v30  ;;  %1642 = vmatprep.subr.bf16.mxu0 %v5888_v31  ;;  %v5991_v30 = vld [vmem:[#allocation8 + $0x4e0] ss:$12 sps:$4 sm:$0xff]  }
  0xd6   :  { %1712 = vmatprep.subr.bf16.mxu1 %v5891_v32  ;;  %v5999_v31 = vld [vmem:[#allocation8 + $0x4cc] ss:$12 sps:$4 sm:$0xff]  }
  0xd7   :  { %v5964_v32 = vld [vmem:[#allocation8 + $0x318] ss:$12 sps:$4 sm:$0xff]  }
  0xd8   :  { %1643 = vmatpush2.bf16.msra.mxu0 %v5886_v33  ;;  %v5969_v33 = vld [vmem:[#allocation8 + $0x304] ss:$12 sps:$4 sm:$0xff]  }
  0xd9   :  { %1713 = vmatpush1.bf16.msra.mxu1 %v5889_v34  ;;  %1644 = vmatprep.subr.bf16.mxu0 %v5894_v36  ;;  %v5997_v34 = vld [vmem:[#allocation8 + $0x4c8] ss:$12 sps:$4 sm:$0xff]   ;;  %v5967_v36 = vld [vmem:[#allocation8 + $0x300] ss:$12 sps:$4 sm:$0xff]  }
  0xda   :  { %1714 = vmatprep.subr.bf16.mxu1 %v5897_v37  ;;  %v5972_v37 = vld [vmem:[#allocation8 + $0x46c] ss:$12 sps:$4 sm:$0xff]  }
  0xdc   :  { %1645 = vmatpush2.bf16.msra.mxu0 %v5892_v38  ;;  %v5970_v38 = vld [vmem:[#allocation8 + $0x468] ss:$12 sps:$4 sm:$0xff]  }
  0xdd   :  { %1715 = vmatpush1.bf16.msra.mxu1 %v5895_v39  ;;  %1743 = vmatprep.subr.bf16.mxu0 %v5903_v41  ;;  %v5978_v39 = vld [vmem:[#allocation8 + $0x454] ss:$12 sps:$4 sm:$0xff]  }
  0xde   :  { %1716 = vmatprep.subr.bf16.mxu1 %v5900_v40  ;;  %v5976_v40 = vld [vmem:[#allocation8 + $0x450] ss:$12 sps:$4 sm:$0xff]   ;;  %v6005_v41 = vld [vmem:[#allocation8 + $0x4b4] ss:$12 sps:$4 sm:$0xff]  }
  0xdf   :  { %1647 = vmatmul.mubr.bf16.vlgmr.msra.gmra.mxu0 %v6673_v6  ;;  %v5927_v6 = vld [vmem:[#allocation5 + $0x73c] ss:$48 sps:$4 sm:$0xff]  }
  0xe0   :  { %1744 = vmatpush1.bf16.msra.mxu0 %v5901_v43  ;;  %1775 = vmatprep.mubr.bf16.mxu0 %v6616_v0  ;;  %v6003_v43 = vld [vmem:[#allocation8 + $0x4b0] ss:$12 sps:$4 sm:$0xff]  }
  0xe1   :  { %1717 = vmatpush2.bf16.msra.mxu1 %v5898_v42  ;;  %1745 = vmatprep.subr.bf16.mxu0 %v5909_v45  ;;  %v5984_v42 = vld [vmem:[#allocation8 + $0x43c] ss:$12 sps:$4 sm:$0xff]  }
  0xe2   :  { %1718 = vmatprep.subr.bf16.mxu1 %v5906_v44  ;;  %v5982_v44 = vld [vmem:[#allocation8 + $0x438] ss:$12 sps:$4 sm:$0xff]   ;;  %v6011_v45 = vld [vmem:[#allocation8 + $0x49c] ss:$12 sps:$4 sm:$0xff]  }
  0xe4   :  { %1746 = vmatpush1.bf16.msra.mxu0 %v5907_v47  ;;  %v6009_v47 = vld [vmem:[#allocation8 + $0x498] ss:$12 sps:$4 sm:$0xff]  }
  0xe5   :  { %1719 = vmatpush2.bf16.msra.mxu1 %v5904_v46  ;;  %1747 = vmatprep.subr.bf16.mxu0 %v5915_v49  ;;  %v5990_v46 = vld [vmem:[#allocation8 + $0x424] ss:$12 sps:$4 sm:$0xff]  }
  0xe6   :  { %1720 = vmatprep.subr.bf16.mxu1 %v5912_v48  ;;  %v5988_v48 = vld [vmem:[#allocation8 + $0x420] ss:$12 sps:$4 sm:$0xff]   ;;  %v6017_v49 = vld [vmem:[#allocation8 + $0x484] ss:$12 sps:$4 sm:$0xff]  }
  0xe8   :  { %1748 = vmatpush1.bf16.msra.mxu0 %v5913_v52  ;;  %v6015_v52 = vld [vmem:[#allocation8 + $0x480] ss:$12 sps:$4 sm:$0xff]  }
  0xe9   :  { %1721 = vmatpush2.bf16.msra.mxu1 %v5910_v50  ;;  %1749 = vmatprep.subr.bf16.mxu0 %v5921_v54  ;;  %v5996_v50 = vld [vmem:[#allocation8 + $0x40c] ss:$12 sps:$4 sm:$0xff]  }
  0xea   :  { %1722 = vmatprep.subr.bf16.mxu1 %v5918_v53  ;;  %v5994_v53 = vld [vmem:[#allocation8 + $0x408] ss:$12 sps:$4 sm:$0xff]   ;;  %v6020_v54 = vld [vmem:[#allocation8 + $0x5ec] ss:$12 sps:$4 sm:$0xff]  }
  0xec   :  { %1750 = vmatpush1.bf16.msra.mxu0 %v5919_v56  ;;  %v6018_v56 = vld [vmem:[#allocation8 + $0x5e8] ss:$12 sps:$4 sm:$0xff]  }
  0xed   :  { %1723 = vmatpush2.bf16.msra.mxu1 %v5916_v55  ;;  %1751 = vmatprep.subr.bf16.mxu0 %v5927_v6  ;;  %v6002_v55 = vld [vmem:[#allocation8 + $0x3f4] ss:$12 sps:$4 sm:$0xff]   ;;  %v6000_v6 = vld [vmem:[#allocation8 + $0x3f0] ss:$12 sps:$4 sm:$0xff]  }
  0xee   :  { %1724 = vmatprep.subr.bf16.mxu1 %v5924_v57  ;;  %v188_v57 = vlaneseq }
  0xf0   :  { %1752 = vmatpush1.bf16.msra.mxu0 %v5925_v59  ;;  %v6025_v59 = vld [vmem:[#allocation8 + $0x5d4] ss:$12 sps:$4 sm:$0xff]  }
  0xf1   :  { %1725 = vmatpush2.bf16.msra.mxu1 %v5922_v58  ;;  %1753 = vmatprep.subr.bf16.mxu0 %v5933_v61  ;;  %v6023_v58 = vld [vmem:[#allocation8 + $0x5d0] ss:$12 sps:$4 sm:$0xff]   ;;  %v6685_v61 = vshrl.u32 %v188_v57, 7 }
  0xf2   :  { %1726 = vmatprep.subr.bf16.mxu1 %v5930_v60  ;;  %v6008_v60 = vld [vmem:[#allocation8 + $0x3dc] ss:$12 sps:$4 sm:$0xff]  }
  0xf4   :  { %1754 = vmatpush1.bf16.msra.mxu0 %v5931_v63  ;;  %v6028_v63 = vld [vmem:[#allocation8 + $0x5b8] ss:$12 sps:$4 sm:$0xff]  }
  0xf5   :  { %1727 = vmatpush2.bf16.msra.mxu1 %v5928_v62  ;;  %1755 = vmatprep.subr.bf16.mxu0 %v5939_v2  ;;  %v6006_v62 = vld [vmem:[#allocation8 + $0x3d8] ss:$12 sps:$4 sm:$0xff]  }
  0xf6   :  { %1728 = vmatprep.subr.bf16.mxu1 %v5936_v1  ;;  %v6030_v1 = vld [vmem:[#allocation8 + $0x5bc] ss:$12 sps:$4 sm:$0xff]   ;;  %v6014_v2 = vld [vmem:[#allocation8 + $0x3c4] ss:$12 sps:$4 sm:$0xff]  }
  0xf8   :  { %1756 = vmatpush1.bf16.msra.mxu0 %v5937_v4  ;;  %v6690_v4 = vsub.s32 0, %v6685_v61 }
  0xf9   :  { %1729 = vmatpush2.bf16.msra.mxu1 %v5934_v3  ;;  %1757 = vmatprep.subr.bf16.mxu0 %v5945_v7  ;;  %v6687_v3 = vld [vmem:[#allocation7] sm:$0xf]  ;;  %v6033_v7 = vld [vmem:[#allocation8 + $0x5a0] ss:$12 sps:$4 sm:$0xff]  }
  0xfa   :  { %1730 = vmatprep.subr.bf16.mxu1 %v5942_v5  ;;  %v6012_v5 = vld [vmem:[#allocation8 + $0x3c0] ss:$12 sps:$4 sm:$0xff]  }
  0xfc   :  { %1758 = vmatpush1.bf16.msra.mxu0 %v5943_v9  ;;  %v6021_v9 = vld [vmem:[#allocation8 + $0x470] ss:$12 sps:$4 sm:$0xff]  }
  0xfd   :  { %1731 = vmatpush2.bf16.msra.mxu1 %v5940_v8  ;;  %2438 = vmatprep.subr.bf16.mxu0 %v5948_v10  ;;  %v6035_v8 = vld [vmem:[#allocation8 + $0x5a4] ss:$12 sps:$4 sm:$0xff]   ;;  %v191_v10 = vrot.slane %v6687_v3, %v6690_v4 }
  0xfe   :  { %2481 = vmatprep.subr.bf16.mxu1 %v5975_v20  ;;  %v6043_v20 = vld [vmem:[#allocation8 + $0x570] ss:$12 sps:$4 sm:$0xff]  }
  0xff   :  { %1776 = vmatmul.mubr.bf16.vlgmr.msra.gmra.mxu0 %v6475_v14 }
 0x100   :  { %1733 = vmatmul.mubr.bf16.vlgmr.msra.gmra.mxu1 %v6474_v13  ;;  %2439 = vmatpush1.bf16.msra.mxu0 %v5946_v11  ;;  %v6038_v11 = vld [vmem:[#allocation8 + $0x588] ss:$12 sps:$4 sm:$0xff]  }
 0x101   :  { %2440 = vmatprep.subr.bf16.mxu0 %v5951_v12  ;;  %2482 = vmatpush1.bf16.msra.mxu1 %v5973_v19  ;;  %v6040_v12 = vld [vmem:[#allocation8 + $0x58c] ss:$12 sps:$4 sm:$0xff]  }
 0x102   :  { %2483 = vmatprep.subr.bf16.mxu1 %v5981_v22 }
 0x104   :  { %2441 = vmatpush1.bf16.msra.mxu0 %v5949_v15 }
 0x105   :  { %2442 = vmatprep.subr.bf16.mxu0 %v5954_v16  ;;  %2484 = vmatpush1.bf16.msra.mxu1 %v5979_v24  ;;  %v6050_v24 = vld [vmem:[#allocation8 + $0x55c] ss:$12 sps:$4 sm:$0xff]  }
 0x106   :  { %2485 = vmatprep.subr.bf16.mxu1 %v5987_v25 }
 0x108   :  { %2443 = vmatpush1.bf16.msra.mxu0 %v5952_v17 }
 0x109   :  { %2444 = vmatprep.subr.bf16.mxu0 %v5957_v18  ;;  %2486 = vmatpush1.bf16.msra.mxu1 %v5985_v27  ;;  %v6045_v18 = vld [vmem:[#allocation8 + $0x574] ss:$12 sps:$4 sm:$0xff]  }
 0x10a   :  { %2487 = vmatprep.subr.bf16.mxu1 %v5993_v28  ;;  %v6055_v28 = vld [vmem:[#allocation8 + $0x544] ss:$12 sps:$4 sm:$0xff]  }
 0x10c   :  { %2445 = vmatpush1.bf16.msra.mxu0 %v5955_v21 }
 0x10d   :  { %2446 = vmatprep.subr.bf16.mxu0 %v5960_v23  ;;  %2488 = vmatpush1.bf16.msra.mxu1 %v5991_v30  ;;  %v6058_v30 = vld [vmem:[#allocation8 + $0x5f0] ss:$12 sps:$4 sm:$0xff]  }
 0x10e   :  { %2489 = vmatprep.subr.bf16.mxu1 %v5999_v31  ;;  %v6701_v31 = vsub.s32 2, %v6685_v61 }
 0x110   :  { %2447 = vmatpush1.bf16.msra.mxu0 %v5958_v35  ;;  %v6048_v35 = vld [vmem:[#allocation8 + $0x558] ss:$12 sps:$4 sm:$0xff]  }
 0x111   :  { %2448 = vmatprep.subr.bf16.mxu0 %v5963_v26  ;;  %2490 = vmatpush1.bf16.msra.mxu1 %v5997_v34 }
 0x112   :  { %2491 = vmatprep.subr.bf16.mxu1 %v6005_v41 }
 0x114   :  { %2449 = vmatpush1.bf16.msra.mxu0 %v5961_v29 }
 0x115   :  { %2450 = vmatprep.subr.bf16.mxu0 %v5966_v51  ;;  %2492 = vmatpush1.bf16.msra.mxu1 %v6003_v43  ;;  %v6053_v51 = vld [vmem:[#allocation8 + $0x540] ss:$12 sps:$4 sm:$0xff]  }
 0x116   :  { %2493 = vmatprep.subr.bf16.mxu1 %v6011_v45 }
 0x118   :  { %2451 = vmatpush1.bf16.msra.mxu0 %v5964_v32  ;;  %v6704_v32 = vsub.s32 3, %v6685_v61 }
 0x119   :  { %2452 = vmatprep.subr.bf16.mxu0 %v5969_v33  ;;  %2494 = vmatpush1.bf16.msra.mxu1 %v6009_v47  ;;  %v199_v33 = vrot.slane %v6687_v3, %v6701_v31 }
 0x11a   :  { %2495 = vmatprep.subr.bf16.mxu1 %v6017_v49 }
 0x11c   :  { %2453 = vmatpush1.bf16.msra.mxu0 %v5967_v36 }
 0x11d   :  { %2454 = vmatprep.subr.bf16.mxu0 %v5972_v37  ;;  %2496 = vmatpush1.bf16.msra.mxu1 %v6015_v52  ;;  %v203_v37 = vrot.slane %v6687_v3, %v6704_v32 }
 0x11e   :  { %2497 = vmatprep.subr.bf16.mxu1 %v6020_v54 }
 0x120   :  { %2455 = vmatpush2.bf16.msra.mxu0 %v5970_v38  ;;  %v781_v13 = vpop.f32.mrf.mxu1 }
 0x121   :  { %2456 = vmatprep.subr.bf16.mxu0 %v5978_v39  ;;  %2498 = vmatpush2.bf16.msra.mxu1 %v6018_v56 }
 0x122   :  { %2499 = vmatprep.subr.bf16.mxu1 %v6025_v59  ;;  %v6694_v16 = vpop.f32.mrf.mxu1 }
 0x124   :  { %2457 = vmatpush2.bf16.msra.mxu0 %v5976_v40  ;;  %v785_v23 = vpop.f32.mrf.mxu1 }
 0x125   :  { %2458 = vmatprep.subr.bf16.mxu0 %v5984_v42  ;;  %2500 = vmatpush2.bf16.msra.mxu1 %v6023_v58 }
 0x126   :  { %2501 = vmatprep.subr.bf16.mxu1 %v6030_v1  ;;  %v6708_v34 = vpop.f32.mrf.mxu1 }
 0x128   :  { %2459 = vmatpush2.bf16.msra.mxu0 %v5982_v44 }
 0x129   :  { %2460 = vmatprep.subr.bf16.mxu0 %v5990_v46  ;;  %2502 = vmatpush2.bf16.msra.mxu1 %v6028_v63  ;;  %v1112_v63 = vld [vmem:[#allocation7 + $0x4] sm:$0xf] }
 0x12a   :  { %2503 = vmatprep.subr.bf16.mxu1 %v6035_v8 }
 0x12c   :  { %2461 = vmatpush2.bf16.msra.mxu0 %v5988_v48 }
 0x12d   :  { %2462 = vmatprep.subr.bf16.mxu0 %v5996_v50  ;;  %2504 = vmatpush2.bf16.msra.mxu1 %v6033_v7 }
 0x12e   :  { %2505 = vmatprep.subr.bf16.mxu1 %v6040_v12 }
 0x130   :  { %2463 = vmatpush2.bf16.msra.mxu0 %v5994_v53 }
 0x131   :  { %2464 = vmatprep.subr.bf16.mxu0 %v6002_v55  ;;  %2506 = vmatpush2.bf16.msra.mxu1 %v6038_v11 }
 0x132   :  { %2507 = vmatprep.subr.bf16.mxu1 %v6045_v18 }
 0x134   :  { %2465 = vmatpush2.bf16.msra.mxu0 %v6000_v6 }
 0x135   :  { %2466 = vmatprep.subr.bf16.mxu0 %v6008_v60  ;;  %2508 = vmatpush2.bf16.msra.mxu1 %v6043_v20 }
 0x136   :  { %2509 = vmatprep.subr.bf16.mxu1 %v6050_v24 }
 0x138   :  { %2467 = vmatpush2.bf16.msra.mxu0 %v6006_v62  ;;  %v6719_v62 = vsub.s32 1, %v6685_v61 }
 0x139   :  { %2468 = vmatprep.subr.bf16.mxu0 %v6014_v2  ;;  %2510 = vmatpush2.bf16.msra.mxu1 %v6048_v35 }
 0x13a   :  { %2511 = vmatprep.subr.bf16.mxu1 %v6055_v28  ;;  %v1121_v1 = vrot.slane %v1112_v63, %v6719_v62  ;;  %v6026_v28 = vld [vmem:[#allocation8 + $0x458] ss:$12 sps:$4 sm:$0xff]  }
 0x13c   :  { %2469 = vmatpush2.bf16.msra.mxu0 %v6012_v5  ;;  %v1117_v5 = vrot.slane %v1112_v63, %v6690_v4 }
 0x13d   :  { %5509 = vmatprep.subr.bf16.mxu0 %v6021_v9  ;;  %2512 = vmatpush2.bf16.msra.mxu1 %v6053_v51  ;;  %v6027_v51 = vld [vmem:[#allocation8 + $0x398] ss:$12 sps:$4 sm:$0xff]  }
 0x13e   :  { %5531 = vmatprep.subr.bf16.mxu1 %v6058_v30  ;;  %v6031_v30 = vld [vmem:[#allocation8 + $0x440] ss:$12 sps:$4 sm:$0xff]  }
 0x13f   :  { %v738_v14 = vpop.f32.mrf.mxu0 }
 0x140   :  { %v739_v15 = vadd.f32 %v738_v14, %v191_v10 }
 0x141   :  { %v6696_v17 = vpop.f32.mrf.mxu0 }
 0x142   :  { %v782_v19 = vadd.f32 %v781_v13, %v739_v15 }
 0x143   :  { %v742_v21 = vpop.f32.mrf.mxu0 }
 0x144   :  { %v743_v22 = vadd.f32 %v742_v21, %v191_v10  ;;  %v876_v26 = vmax.f32 %v782_v19, 0.0 }
 0x145   :  { %v6710_v36 = vpop.f32.mrf.mxu0 }
 0x146   :  { %v786_v25 = vadd.f32 %v785_v23, %v743_v22 }
 0x148   :  { %v880_v27 = vmax.f32 %v786_v25, 0.0 }
 0x14a   :  { %v6698_v29 = vpack.c.bf16 %v880_v27, %v876_v26  ;;  %v6022_v26 = vld [vmem:[#allocation8 + $0x3b0] ss:$12 sps:$4 sm:$0xff]  }
 0x15f   :  { %v867_v39 = vpop.f32.mrf.mxu0 }
 0x160   :  { %v824_v38 = vpop.f32.mrf.mxu1 }
 0x161   :  { %v825_v40 = vadd.f32 %v824_v38, %v199_v33  ;;  %v869_v42 = vpop.f32.mrf.mxu0  ;;  %v6037_v38 = vld [vmem:[#allocation8 + $0x368] ss:$12 sps:$4 sm:$0xff]  }
 0x162   :  { %v826_v41 = vpop.f32.mrf.mxu1 }
 0x163   :  { %v868_v43 = vadd.f32 %v867_v39, %v825_v40  ;;  %v827_v44 = vadd.f32 %v826_v41, %v203_v37  ;;  %v871_v46 = vpop.f32.mrf.mxu0  ;;  %v6041_v39 = vld [vmem:[#allocation8 + $0x410] ss:$12 sps:$4 sm:$0xff]   ;;  %v6046_v41 = vld [vmem:[#allocation8 + $0x3f8] ss:$12 sps:$4 sm:$0xff]  }
 0x164   :  { %v828_v45 = vpop.f32.mrf.mxu1  ;;  %v6042_v40 = vld [vmem:[#allocation8 + $0x350] ss:$12 sps:$4 sm:$0xff]  }
 0x165   :  { %v870_v47 = vadd.f32 %v869_v42, %v827_v44  ;;  %v829_v48 = vadd.f32 %v828_v45, %v199_v33  ;;  %v873_v53 = vpop.f32.mrf.mxu0  ;;  %v878_v54 = vmax.f32 %v868_v43, 0.0  ;;  %v6032_v33 = vld [vmem:[#allocation8 + $0x380] ss:$12 sps:$4 sm:$0xff]   ;;  %v1129_v42 = vrot.slane %v1112_v63, %v6704_v32 }
 0x166   :  { %v830_v49 = vpop.f32.mrf.mxu1  ;;  %v1125_v43 = vrot.slane %v1112_v63, %v6701_v31 }
 0x167   :  { %v872_v50 = vadd.f32 %v871_v46, %v829_v48  ;;  %v831_v52 = vadd.f32 %v830_v49, %v203_v37  ;;  %v879_v57 = vmax.f32 %v870_v47, 0.0  ;;  %v6036_v37 = vld [vmem:[#allocation8 + $0x428] ss:$12 sps:$4 sm:$0xff]   ;;  %v6047_v46 = vld [vmem:[#allocation8 + $0x338] ss:$12 sps:$4 sm:$0xff]   ;;  %v195_v47 = vrot.slane %v6687_v3, %v6719_v62 }
 0x169   :  { %v882_v55 = vmax.f32 %v872_v50, 0.0  ;;  %v874_v56 = vadd.f32 %v873_v53, %v831_v52  ;;  %v6051_v50 = vld [vmem:[#allocation8 + $0x3e0] ss:$12 sps:$4 sm:$0xff]   ;;  %v745_v53 = vadd.f32 %v6710_v36, %v195_v47  ;;  %v6057_v36 = vld [vmem:[#allocation8 + $0x308] ss:$12 sps:$4 sm:$0xff]  }
 0x16b   :  { %v6714_v6 = vpack.c.bf16 %v882_v55, %v878_v54  ;;  %v883_v58 = vmax.f32 %v874_v56, 0.0 }
 0x16d   :  { %v6716_v59 = vpack.c.bf16 %v883_v58, %v879_v57  ;;  %v6052_v58 = vld [vmem:[#allocation8 + $0x320] ss:$12 sps:$4 sm:$0xff]  }
 0x180   :  { %v1691_v60 = vpop.f32.mrf.mxu1 }
 0x182   :  { %v1693_v2 = vpop.f32.mrf.mxu1 }
 0x184   :  { %v1695_v10 = vpop.f32.mrf.mxu1 }
 0x186   :  { %v1697_v20 = vpop.f32.mrf.mxu1 }
 0x19f   :  { %v1648_v7 = vpop.f32.mrf.mxu0 }
 0x1a0   :  { %v1649_v11 = vadd.f32 %v1648_v7, %v1117_v5  ;;  %v788_v7 = vadd.f32 %v6708_v34, %v745_v53  ;;  %v6094_v53 = vld [vmem:[#allocation8] ss:$12 sps:$4 sm:$0xff]  }
 0x1a1   :  { %v1650_v8 = vpop.f32.mrf.mxu0 }
 0x1a2   :  { %v1651_v9 = vadd.f32 %v1650_v8, %v1121_v1  ;;  %v1692_v61 = vadd.f32 %v1691_v60, %v1649_v11  ;;  %v741_v60 = vadd.f32 %v6696_v17, %v195_v47  ;;  %v6091_v47 = vld [vmem:[#allocation8 + $0x1c] ss:$12 sps:$4 sm:$0xff]  }
 0x1a3   :  { %v1652_v12 = vpop.f32.mrf.mxu0 }
 0x1a4   :  { %v1653_v13 = vadd.f32 %v1652_v12, %v1117_v5  ;;  %v1694_v15 = vadd.f32 %v1693_v2, %v1651_v9  ;;  %v1786_v25 = vmax.f32 %v1692_v61, 0.0  ;;  %v784_v11 = vadd.f32 %v6694_v16, %v741_v60  ;;  %v6062_v61 = vld [vmem:[#allocation8 + $0x530] ss:$12 sps:$4 sm:$0xff]   ;;  %v6106_v60 = vld [vmem:[#allocation8 + $0x154] ss:$12 sps:$4 sm:$0xff]  }
 0x1a5   :  { %v1654_v14 = vpop.f32.mrf.mxu0 }
 0x1a6   :  { %v1696_v18 = vadd.f32 %v1695_v10, %v1653_v13  ;;  %v1655_v19 = vadd.f32 %v1654_v14, %v1121_v1  ;;  %v1787_v23 = vmax.f32 %v1694_v15, 0.0  ;;  %v6056_v1 = vld [vmem:[#allocation8 + $0x3c8] ss:$12 sps:$4 sm:$0xff]   ;;  %v6061_v13 = vld [vmem:[#allocation8 + $0xac] ss:$12 sps:$4 sm:$0xff]   ;;  %v881_v15 = vmax.f32 %v788_v7, 0.0 }
 0x1a7   :  { %v6110_v7 = vld [vmem:[#allocation8 + $0x138] ss:$12 sps:$4 sm:$0xff]  }
 0x1a8   :  { %v1698_v21 = vadd.f32 %v1697_v20, %v1655_v19  ;;  %v1790_v22 = vmax.f32 %v1696_v18, 0.0  ;;  %v6059_v20 = vld [vmem:[#allocation8 + $0xa8] ss:$12 sps:$4 sm:$0xff]  }
 0x1aa   :  { %v1791_v24 = vmax.f32 %v1698_v21, 0.0  ;;  %v6723_v27 = vpack.c.bf16 %v1790_v22, %v1786_v25  ;;  %v877_v21 = vmax.f32 %v784_v11, 0.0  ;;  %v6063_v22 = vld [vmem:[#allocation8 + $0x5d8] ss:$12 sps:$4 sm:$0xff]   ;;  %v6119_v11 = vld [vmem:[#allocation8 + $0x1e0] ss:$12 sps:$4 sm:$0xff]  }
 0x1ab   :  { %v6067_v25 = vld [vmem:[#allocation8 + $0x518] ss:$12 sps:$4 sm:$0xff]  }
 0x1ac   :  { %v1795_v35 = vpack.c.bf16 %v1791_v24, %v1787_v23  ;;  %v6066_v23 = vld [vmem:[#allocation8 + $0x94] ss:$12 sps:$4 sm:$0xff]   ;;  %v6738_v16 = vpack.c.bf16 %v881_v15, %v877_v21  ;;  %v6064_v24 = vld [vmem:[#allocation8 + $0x90] ss:$12 sps:$4 sm:$0xff]  }
 0x1ad   :  { %v6130_v15 = vld [vmem:[#allocation8 + $0xf4] ss:$12 sps:$4 sm:$0xff]   ;;  %v6139_v21 = vld [vmem:[#allocation8 + $0x19c] ss:$12 sps:$4 sm:$0xff]  }
 0x1ae   :  { %2470 = vmatprep.mubr.bf16.mxu0 %v1795_v35 }
 0x1af   :  { %2471 = vmatmul.mubr.bf16.vlgmr.msra.gmra.mxu0 %v6723_v27 }
 0x1b0   :  { %5510 = vmatpush3.bf16.msra.mxu0 %v6022_v26  ;;  %2556 = vmatprep.mubr.bf16.mxu0 %v1795_v35  ;;  %v6068_v35 = vld [vmem:[#allocation8 + $0x5c0] ss:$12 sps:$4 sm:$0xff]   ;;  %v6071_v26 = vld [vmem:[#allocation8 + $0x7c] ss:$12 sps:$4 sm:$0xff]  }
 0x1b1   :  { %5511 = vmatprep.subr.bf16.mxu0 %v6026_v28  ;;  %v6069_v28 = vld [vmem:[#allocation8 + $0x78] ss:$12 sps:$4 sm:$0xff]  }
 0x1b4   :  { %5512 = vmatpush3.bf16.msra.mxu0 %v6027_v51  ;;  %v6072_v51 = vld [vmem:[#allocation8 + $0x500] ss:$12 sps:$4 sm:$0xff]  }
 0x1b5   :  { %5513 = vmatprep.subr.bf16.mxu0 %v6031_v30  ;;  %v6076_v30 = vld [vmem:[#allocation8 + $0x64] ss:$12 sps:$4 sm:$0xff]  }
 0x1b8   :  { %5514 = vmatpush3.bf16.msra.mxu0 %v6032_v33  ;;  %v6074_v33 = vld [vmem:[#allocation8 + $0x60] ss:$12 sps:$4 sm:$0xff]  }
 0x1b9   :  { %5515 = vmatprep.subr.bf16.mxu0 %v6036_v37  ;;  %v6077_v37 = vld [vmem:[#allocation8 + $0x4e8] ss:$12 sps:$4 sm:$0xff]  }
 0x1bc   :  { %5516 = vmatpush3.bf16.msra.mxu0 %v6037_v38  ;;  %v6078_v38 = vld [vmem:[#allocation8 + $0x590] ss:$12 sps:$4 sm:$0xff]  }
 0x1bd   :  { %5517 = vmatprep.subr.bf16.mxu0 %v6041_v39  ;;  %v6081_v39 = vld [vmem:[#allocation8 + $0x4c] ss:$12 sps:$4 sm:$0xff]  }
 0x1bf   :  { %v1777_v45 = vpop.f32.mrf.mxu0 }
 0x1c0   :  { %v1734_v44 = vpop.f32.mrf.mxu1  ;;  %5518 = vmatpush3.bf16.msra.mxu0 %v6042_v40  ;;  %v6079_v40 = vld [vmem:[#allocation8 + $0x48] ss:$12 sps:$4 sm:$0xff]  }
 0x1c1   :  { %v1779_v49 = vpop.f32.mrf.mxu0  ;;  %5519 = vmatprep.subr.bf16.mxu0 %v6046_v41  ;;  %v1735_v54 = vadd.f32 %v1734_v44, %v1125_v43  ;;  %v6082_v41 = vld [vmem:[#allocation8 + $0x4d0] ss:$12 sps:$4 sm:$0xff]  }
 0x1c2   :  { %v1736_v48 = vpop.f32.mrf.mxu1  ;;  %v6084_v44 = vld [vmem:[#allocation8 + $0x30] ss:$12 sps:$4 sm:$0xff]  }
 0x1c3   :  { %v1737_v52 = vadd.f32 %v1736_v48, %v1129_v42  ;;  %v1781_v56 = vpop.f32.mrf.mxu0  ;;  %v1778_v8 = vadd.f32 %v1777_v45, %v1735_v54  ;;  %v6087_v45 = vld [vmem:[#allocation8 + $0x4b8] ss:$12 sps:$4 sm:$0xff]   ;;  %v6097_v54 = vld [vmem:[#allocation8 + $0x488] ss:$12 sps:$4 sm:$0xff]  }
 0x1c4   :  { %v1738_v55 = vpop.f32.mrf.mxu1  ;;  %5520 = vmatpush3.bf16.msra.mxu0 %v6047_v46  ;;  %v6088_v46 = vld [vmem:[#allocation8 + $0x560] ss:$12 sps:$4 sm:$0xff]   ;;  %v6089_v48 = vld [vmem:[#allocation8 + $0x18] ss:$12 sps:$4 sm:$0xff]  }
 0x1c5   :  { %v1739_v57 = vadd.f32 %v1738_v55, %v1125_v43  ;;  %5521 = vmatprep.subr.bf16.mxu0 %v6051_v50  ;;  %v1780_v2 = vadd.f32 %v1779_v49, %v1737_v52  ;;  %v1783_v9 = vpop.f32.mrf.mxu0  ;;  %v1788_v18 = vmax.f32 %v1778_v8, 0.0  ;;  %v6086_v43 = vld [vmem:[#allocation8 + $0x34] ss:$12 sps:$4 sm:$0xff]   ;;  %v6096_v52 = vld [vmem:[#allocation8 + $0x4] ss:$12 sps:$4 sm:$0xff]  }
 0x1c6   :  { %v1740_v63 = vpop.f32.mrf.mxu1  ;;  %v6092_v49 = vld [vmem:[#allocation8 + $0x4a0] ss:$12 sps:$4 sm:$0xff]   ;;  %v6093_v50 = vld [vmem:[#allocation8 + $0x548] ss:$12 sps:$4 sm:$0xff]   ;;  %v6113_v8 = vld [vmem:[#allocation8 + $0x1f8] ss:$12 sps:$4 sm:$0xff]  }
 0x1c7   :  { %v1782_v3 = vadd.f32 %v1781_v56, %v1739_v57  ;;  %v1741_v5 = vadd.f32 %v1740_v63, %v1129_v42  ;;  %v1789_v14 = vmax.f32 %v1780_v2, 0.0  ;;  %v6083_v42 = vld [vmem:[#allocation8 + $0x578] ss:$12 sps:$4 sm:$0xff]   ;;  %v6098_v57 = vld [vmem:[#allocation8 + $0x168] ss:$12 sps:$4 sm:$0xff]  }
 0x1c8   :  { %5522 = vmatpush3.bf16.msra.mxu0 %v6052_v58  ;;  %v6100_v55 = vld [vmem:[#allocation8 + $0x16c] ss:$12 sps:$4 sm:$0xff]   ;;  %v6101_v58 = vld [vmem:[#allocation8 + $0x228] ss:$12 sps:$4 sm:$0xff]   ;;  %v6107_v2 = vld [vmem:[#allocation8 + $0x210] ss:$12 sps:$4 sm:$0xff]  }
 0x1c9   :  { %v1784_v10 = vadd.f32 %v1783_v9, %v1741_v5  ;;  %v1792_v12 = vmax.f32 %v1782_v3, 0.0  ;;  %5523 = vmatprep.subr.bf16.mxu0 %v6056_v1  ;;  %v6103_v56 = vld [vmem:[#allocation8 + $0x22c] ss:$12 sps:$4 sm:$0xff]   ;;  %v6109_v63 = vld [vmem:[#allocation8 + $0x214] ss:$12 sps:$4 sm:$0xff]  }
 0x1ca   :  { %v6104_v1 = vld [vmem:[#allocation8 + $0x150] ss:$12 sps:$4 sm:$0xff]  }
 0x1cb   :  { %v1793_v17 = vmax.f32 %v1784_v10, 0.0  ;;  %v6734_v34 = vpack.c.bf16 %v1792_v12, %v1788_v18  ;;  %v6112_v3 = vld [vmem:[#allocation8 + $0x13c] ss:$12 sps:$4 sm:$0xff]   ;;  %v6118_v9 = vld [vmem:[#allocation8 + $0x124] ss:$12 sps:$4 sm:$0xff]  }
 0x1cc   :  { %5524 = vmatpush3.bf16.msra.mxu0 %v6057_v36  ;;  %v6115_v5 = vld [vmem:[#allocation8 + $0x1fc] ss:$12 sps:$4 sm:$0xff]   ;;  %v6121_v10 = vld [vmem:[#allocation8 + $0x1e4] ss:$12 sps:$4 sm:$0xff]   ;;  %v6116_v36 = vld [vmem:[#allocation8 + $0x120] ss:$12 sps:$4 sm:$0xff]  }
 0x1cd   :  { %v1797_v19 = vpack.c.bf16 %v1793_v17, %v1789_v14  ;;  %3118 = vmatprep.subr.bf16.mxu0 %v6061_v13  ;;  %v6124_v12 = vld [vmem:[#allocation8 + $0x10c] ss:$12 sps:$4 sm:$0xff]   ;;  %v6122_v14 = vld [vmem:[#allocation8 + $0x108] ss:$12 sps:$4 sm:$0xff]  }
 0x1ce   :  { %v6127_v13 = vld [vmem:[#allocation8 + $0x1cc] ss:$12 sps:$4 sm:$0xff]   ;;  %v6125_v17 = vld [vmem:[#allocation8 + $0x1c8] ss:$12 sps:$4 sm:$0xff]  }
 0x1cf   :  { %2513 = vmatprep.mubr.bf16.mxu1 %v1797_v19  ;;  %2557 = vmatmul.mubr.bf16.vlgmr.msra.gmra.mxu0 %v6723_v27  ;;  %v6073_v27 = vld [vmem:[#allocation8 + $0x5a8] ss:$12 sps:$4 sm:$0xff]  }
 0x1d0   :  { %2514 = vmatmul.mubr.bf16.vlgmr.msra.gmra.mxu1 %v6734_v34  ;;  %3119 = vmatpush1.bf16.msra.mxu0 %v6059_v20  ;;  %v6133_v18 = vld [vmem:[#allocation8 + $0x1b4] ss:$12 sps:$4 sm:$0xff]   ;;  %v6131_v20 = vld [vmem:[#allocation8 + $0x1b0] ss:$12 sps:$4 sm:$0xff]  }
 0x1d1   :  { %5532 = vmatpush3.bf16.msra.mxu1 %v6062_v61  ;;  %3150 = vmatprep.mubr.bf16.mxu0 %v6738_v16  ;;  %v6136_v61 = vld [vmem:[#allocation8 + $0xdc] ss:$12 sps:$4 sm:$0xff]  }
 0x1d2   :  { %2597 = vmatprep.mubr.bf16.mxu1 %v1797_v19  ;;  %5533 = vmatprep.subr.bf16.mxu1 %v6063_v22  ;;  %v6128_v19 = vld [vmem:[#allocation8 + $0xf0] ss:$12 sps:$4 sm:$0xff]   ;;  %v6137_v22 = vld [vmem:[#allocation8 + $0x198] ss:$12 sps:$4 sm:$0xff]  }
 0x1d3   :  { %3120 = vmatprep.subr.bf16.mxu0 %v6066_v23  ;;  %v6142_v23 = vld [vmem:[#allocation8 + $0xc4] ss:$12 sps:$4 sm:$0xff]  }
 0x1d4   :  { %3121 = vmatpush1.bf16.msra.mxu0 %v6064_v24  ;;  %v6145_v24 = vld [vmem:[#allocation8 + $0x184] ss:$12 sps:$4 sm:$0xff]  }
 0x1d5   :  { %5534 = vmatpush3.bf16.msra.mxu1 %v6067_v25  ;;  %3122 = vmatprep.subr.bf16.mxu0 %v6071_v26  ;;  %v6140_v25 = vld [vmem:[#allocation8 + $0xc0] ss:$12 sps:$4 sm:$0xff]  }
 0x1d6   :  { %5535 = vmatprep.subr.bf16.mxu1 %v6068_v35  ;;  %v6143_v35 = vld [vmem:[#allocation8 + $0x180] ss:$12 sps:$4 sm:$0xff]  }
 0x1d7   :  { %v6148_v26 = vld [vmem:[#allocation8 + $0x2ec] ss:$12 sps:$4 sm:$0xff]  }
 0x1d8   :  { %3123 = vmatpush1.bf16.msra.mxu0 %v6069_v28  ;;  %v6149_v28 = vld [vmem:[#allocation8 + $0x170] ss:$12 sps:$4 sm:$0xff]  }
 0x1d9   :  { %5536 = vmatpush3.bf16.msra.mxu1 %v6072_v51  ;;  %3124 = vmatprep.subr.bf16.mxu0 %v6076_v30  ;;  %v6146_v51 = vld [vmem:[#allocation8 + $0x2e8] ss:$12 sps:$4 sm:$0xff]  }
 0x1da   :  { %5537 = vmatprep.subr.bf16.mxu1 %v6073_v27  ;;  %v6150_v27 = vld [vmem:[#allocation8 + $0xb0] ss:$12 sps:$4 sm:$0xff]   ;;  %v6153_v30 = vld [vmem:[#allocation8 + $0x2d4] ss:$12 sps:$4 sm:$0xff]  }
 0x1dc   :  { %3125 = vmatpush1.bf16.msra.mxu0 %v6074_v33  ;;  %v6154_v33 = vld [vmem:[#allocation8 + $0x158] ss:$12 sps:$4 sm:$0xff]  }
 0x1dd   :  { %5538 = vmatpush3.bf16.msra.mxu1 %v6077_v37  ;;  %3126 = vmatprep.subr.bf16.mxu0 %v6081_v39  ;;  %v6151_v37 = vld [vmem:[#allocation8 + $0x2d0] ss:$12 sps:$4 sm:$0xff]  }
 0x1de   :  { %5539 = vmatprep.subr.bf16.mxu1 %v6078_v38  ;;  %v6155_v38 = vld [vmem:[#allocation8 + $0x98] ss:$12 sps:$4 sm:$0xff]   ;;  %v6158_v39 = vld [vmem:[#allocation8 + $0x2bc] ss:$12 sps:$4 sm:$0xff]  }
 0x1e0   :  { %3127 = vmatpush1.bf16.msra.mxu0 %v6079_v40  ;;  %v6159_v40 = vld [vmem:[#allocation8 + $0x140] ss:$12 sps:$4 sm:$0xff]  }
 0x1e1   :  { %5540 = vmatpush3.bf16.msra.mxu1 %v6082_v41  ;;  %3128 = vmatprep.subr.bf16.mxu0 %v6086_v43  ;;  %v6156_v41 = vld [vmem:[#allocation8 + $0x2b8] ss:$12 sps:$4 sm:$0xff]  }
 0x1e2   :  { %5541 = vmatprep.subr.bf16.mxu1 %v6083_v42  ;;  %v6160_v42 = vld [vmem:[#allocation8 + $0x80] ss:$12 sps:$4 sm:$0xff]   ;;  %v6163_v43 = vld [vmem:[#allocation8 + $0x2a4] ss:$12 sps:$4 sm:$0xff]  }
 0x1e4   :  { %3129 = vmatpush1.bf16.msra.mxu0 %v6084_v44  ;;  %v6164_v44 = vld [vmem:[#allocation8 + $0x128] ss:$12 sps:$4 sm:$0xff]  }
 0x1e5   :  { %5542 = vmatpush3.bf16.msra.mxu1 %v6087_v45  ;;  %3130 = vmatprep.subr.bf16.mxu0 %v6091_v47  ;;  %v6161_v45 = vld [vmem:[#allocation8 + $0x2a0] ss:$12 sps:$4 sm:$0xff]  }
 0x1e6   :  { %5543 = vmatprep.subr.bf16.mxu1 %v6088_v46  ;;  %v6165_v46 = vld [vmem:[#allocation8 + $0x68] ss:$12 sps:$4 sm:$0xff]   ;;  %v6168_v47 = vld [vmem:[#allocation8 + $0x28c] ss:$12 sps:$4 sm:$0xff]  }
 0x1e8   :  { %3131 = vmatpush1.bf16.msra.mxu0 %v6089_v48  ;;  %v6166_v48 = vld [vmem:[#allocation8 + $0x288] ss:$12 sps:$4 sm:$0xff]  }
 0x1e9   :  { %5544 = vmatpush3.bf16.msra.mxu1 %v6092_v49  ;;  %3132 = vmatprep.subr.bf16.mxu0 %v6096_v52  ;;  %v6170_v49 = vld [vmem:[#allocation8 + $0x50] ss:$12 sps:$4 sm:$0xff]   ;;  %v6174_v52 = vld [vmem:[#allocation8 + $0xf8] ss:$12 sps:$4 sm:$0xff]  }
 0x1ea   :  { %5545 = vmatprep.subr.bf16.mxu1 %v6093_v50  ;;  %v6173_v50 = vld [vmem:[#allocation8 + $0x274] ss:$12 sps:$4 sm:$0xff]  }
 0x1ec   :  { %3133 = vmatpush1.bf16.msra.mxu0 %v6094_v53  ;;  %v6171_v53 = vld [vmem:[#allocation8 + $0x270] ss:$12 sps:$4 sm:$0xff]  }
 0x1ed   :  { %5546 = vmatpush3.bf16.msra.mxu1 %v6097_v54  ;;  %3134 = vmatprep.subr.bf16.mxu0 %v6100_v55  ;;  %v6175_v54 = vld [vmem:[#allocation8 + $0x38] ss:$12 sps:$4 sm:$0xff]   ;;  %v6178_v55 = vld [vmem:[#allocation8 + $0x25c] ss:$12 sps:$4 sm:$0xff]  }
 0x1ee   :  { %3161 = vmatprep.subr.bf16.mxu1 %v6103_v56  ;;  %v6179_v56 = vld [vmem:[#allocation8 + $0xe0] ss:$12 sps:$4 sm:$0xff]  }
 0x1f0   :  { %2598 = vmatmul.mubr.bf16.vlgmr.msra.gmra.mxu1 %v6734_v34  ;;  %3135 = vmatpush2.bf16.msra.mxu0 %v6098_v57  ;;  %v6134_v34 = vld [vmem:[#allocation8 + $0xd8] ss:$12 sps:$4 sm:$0xff]  }
 0x1f1   :  { %3162 = vmatpush1.bf16.msra.mxu1 %v6101_v58  ;;  %3193 = vmatprep.mubr.bf16.mxu1 %v6716_v59  ;;  %v6176_v57 = vld [vmem:[#allocation8 + $0x258] ss:$12 sps:$4 sm:$0xff]   ;;  %v6180_v58 = vld [vmem:[#allocation8 + $0x20] ss:$12 sps:$4 sm:$0xff]  }
 0x1f2   :  { %3136 = vmatprep.subr.bf16.mxu0 %v6106_v60  ;;  %3163 = vmatprep.subr.bf16.mxu1 %v6109_v63  ;;  %v6183_v60 = vld [vmem:[#allocation8 + $0x244] ss:$12 sps:$4 sm:$0xff]   ;;  %v6184_v63 = vld [vmem:[#allocation8 + $0xc8] ss:$12 sps:$4 sm:$0xff]  }
 0x1f4   :  { %3137 = vmatpush2.bf16.msra.mxu0 %v6104_v1  ;;  %v6181_v1 = vld [vmem:[#allocation8 + $0x240] ss:$12 sps:$4 sm:$0xff]  }
 0x1f5   :  { %3164 = vmatpush1.bf16.msra.mxu1 %v6107_v2  ;;  %3138 = vmatprep.subr.bf16.mxu0 %v6112_v3  ;;  %v6185_v2 = vld [vmem:[#allocation8 + $0x8] ss:$12 sps:$4 sm:$0xff]   ;;  %v6186_v3 = vld [vmem:[#allocation8 + $0x2f0] ss:$12 sps:$4 sm:$0xff]  }
 0x1f6   :  { %3165 = vmatprep.subr.bf16.mxu1 %v6115_v5  ;;  %v6189_v5 = vld [vmem:[#allocation5 + $0x2c4] ss:$48 sps:$4 sm:$0xff]  }
 0x1f8   :  { %3139 = vmatpush2.bf16.msra.mxu0 %v6110_v7  ;;  %v6190_v7 = vld [vmem:[#allocation8 + $0x230] ss:$12 sps:$4 sm:$0xff]  }
 0x1f9   :  { %3166 = vmatpush1.bf16.msra.mxu1 %v6113_v8  ;;  %3140 = vmatprep.subr.bf16.mxu0 %v6118_v9  ;;  %v6187_v8 = vld [vmem:[#allocation5 + $0x2c0] ss:$48 sps:$4 sm:$0xff]  }
 0x1fa   :  { %3167 = vmatprep.subr.bf16.mxu1 %v6121_v10  ;;  %v6191_v9 = vld [vmem:[#allocation8 + $0x2d8] ss:$12 sps:$4 sm:$0xff]  }
 0x1fb   :  { %v6194_v10 = vld [vmem:[#allocation5 + $0x264] ss:$48 sps:$4 sm:$0xff]  }
 0x1fc   :  { %3141 = vmatpush2.bf16.msra.mxu0 %v6116_v36  ;;  %v6195_v36 = vld [vmem:[#allocation8 + $0x218] ss:$12 sps:$4 sm:$0xff]  }
 0x1fd   :  { %3168 = vmatpush1.bf16.msra.mxu1 %v6119_v11  ;;  %3142 = vmatprep.subr.bf16.mxu0 %v6124_v12  ;;  %v6192_v11 = vld [vmem:[#allocation5 + $0x260] ss:$48 sps:$4 sm:$0xff]   ;;  %v6196_v12 = vld [vmem:[#allocation8 + $0x2c0] ss:$12 sps:$4 sm:$0xff]  }
 0x1fe   :  { %3169 = vmatprep.subr.bf16.mxu1 %v6127_v13  ;;  %v6199_v13 = vld [vmem:[#allocation5 + $0x204] ss:$48 sps:$4 sm:$0xff]  }
 0x200   :  { %3143 = vmatpush2.bf16.msra.mxu0 %v6122_v14  ;;  %v6748_v14 = vld [vmem:[#allocation2 + $0x4] ss:$12 sps:$4 sm:$0xff]  }
 0x201   :  { %3170 = vmatpush1.bf16.msra.mxu1 %v6125_v17  ;;  %3144 = vmatprep.subr.bf16.mxu0 %v6130_v15  ;;  %v6200_v17 = vld [vmem:[#allocation8 + $0x200] ss:$12 sps:$4 sm:$0xff]   ;;  %v6197_v15 = vld [vmem:[#allocation5 + $0x200] ss:$48 sps:$4 sm:$0xff]  }
 0x202   :  { %3171 = vmatprep.subr.bf16.mxu1 %v6133_v18  ;;  %v6204_v18 = vld [vmem:[#allocation5 + $0x1a4] ss:$48 sps:$4 sm:$0xff]  }
 0x204   :  { %3145 = vmatpush2.bf16.msra.mxu0 %v6128_v19  ;;  %v6202_v19 = vld [vmem:[#allocation5 + $0x1a0] ss:$48 sps:$4 sm:$0xff]  }
 0x205   :  { %3172 = vmatpush1.bf16.msra.mxu1 %v6131_v20  ;;  %3146 = vmatprep.subr.bf16.mxu0 %v6136_v61  ;;  %v6206_v20 = vld [vmem:[#allocation8 + $0x290] ss:$12 sps:$4 sm:$0xff]   ;;  %v6209_v61 = vld [vmem:[#allocation5 + $0x144] ss:$48 sps:$4 sm:$0xff]  }
 0x206   :  { %3173 = vmatprep.subr.bf16.mxu1 %v6139_v21  ;;  %v6210_v21 = vld [vmem:[#allocation8 + $0x1d0] ss:$12 sps:$4 sm:$0xff]  }
 0x208   :  { %3147 = vmatpush2.bf16.msra.mxu0 %v6134_v34  ;;  %v6207_v34 = vld [vmem:[#allocation5 + $0x140] ss:$48 sps:$4 sm:$0xff]  }
 0x209   :  { %3174 = vmatpush1.bf16.msra.mxu1 %v6137_v22  ;;  %3148 = vmatprep.subr.bf16.mxu0 %v6142_v23  ;;  %v6211_v22 = vld [vmem:[#allocation8 + $0x278] ss:$12 sps:$4 sm:$0xff]  }
 0x20a   :  { %3175 = vmatprep.subr.bf16.mxu1 %v6145_v24  ;;  %v6214_v23 = vld [vmem:[#allocation5 + $0xe4] ss:$48 sps:$4 sm:$0xff]  }
 0x20b   :  { %v6215_v24 = vld [vmem:[#allocation8 + $0x1b8] ss:$12 sps:$4 sm:$0xff]  }
 0x20c   :  { %3149 = vmatpush2.bf16.msra.mxu0 %v6140_v25  ;;  %v6212_v25 = vld [vmem:[#allocation5 + $0xe0] ss:$48 sps:$4 sm:$0xff]  }
 0x20d   :  { %3176 = vmatpush1.bf16.msra.mxu1 %v6143_v35  ;;  %5553 = vmatprep.subr.bf16.mxu0 %v6149_v28  ;;  %v6216_v35 = vld [vmem:[#allocation8 + $0x260] ss:$12 sps:$4 sm:$0xff]  }
 0x20e   :  { %3177 = vmatprep.subr.bf16.mxu1 %v6148_v26  ;;  %v6219_v26 = vld [vmem:[#allocation5 + $0x84] ss:$48 sps:$4 sm:$0xff]   ;;  %v6220_v28 = vld [vmem:[#allocation8 + $0x1a0] ss:$12 sps:$4 sm:$0xff]  }
 0x20f   :  { %3151 = vmatmul.mubr.bf16.vlgmr.msra.gmra.mxu0 %v6698_v29 }
 0x210   :  { %5554 = vmatpush3.bf16.msra.mxu0 %v6150_v27  ;;  %3236 = vmatprep.mubr.bf16.mxu0 %v6738_v16  ;;  %v6169_v16 = vld [vmem:[#allocation8 + $0x110] ss:$12 sps:$4 sm:$0xff]   ;;  %v6221_v27 = vld [vmem:[#allocation8 + $0x248] ss:$12 sps:$4 sm:$0xff]  }
 0x211   :  { %3178 = vmatpush2.bf16.msra.mxu1 %v6146_v51  ;;  %5555 = vmatprep.subr.bf16.mxu0 %v6154_v33  ;;  %v6217_v51 = vld [vmem:[#allocation5 + $0x80] ss:$48 sps:$4 sm:$0xff]  }
 0x212   :  { %3179 = vmatprep.subr.bf16.mxu1 %v6153_v30  ;;  %v6224_v30 = vld [vmem:[#allocation5 + $0x24] ss:$48 sps:$4 sm:$0xff]  }
 0x213   :  { %v6225_v33 = vld [vmem:[#allocation8 + $0x188] ss:$12 sps:$4 sm:$0xff]  }
 0x214   :  { %5556 = vmatpush3.bf16.msra.mxu0 %v6155_v38  ;;  %v6231_v38 = vld [vmem:[#allocation5 + $0x8c4] ss:$48 sps:$4 sm:$0xff]  }
 0x215   :  { %3180 = vmatpush2.bf16.msra.mxu1 %v6151_v37  ;;  %5557 = vmatprep.subr.bf16.mxu0 %v6159_v40  ;;  %v6222_v37 = vld [vmem:[#allocation5 + $0x20] ss:$48 sps:$4 sm:$0xff]  }
 0x216   :  { %3181 = vmatprep.subr.bf16.mxu1 %v6158_v39  ;;  %v6228_v39 = vld [vmem:[#allocation5 + $0x5c4] ss:$48 sps:$4 sm:$0xff]   ;;  %v6229_v40 = vld [vmem:[#allocation5 + $0x8c0] ss:$48 sps:$4 sm:$0xff]  }
 0x218   :  { %5558 = vmatpush3.bf16.msra.mxu0 %v6160_v42  ;;  %v6237_v42 = vld [vmem:[#allocation5 + $0x864] ss:$48 sps:$4 sm:$0xff]  }
 0x219   :  { %3182 = vmatpush2.bf16.msra.mxu1 %v6156_v41  ;;  %5559 = vmatprep.subr.bf16.mxu0 %v6164_v44  ;;  %v6226_v41 = vld [vmem:[#allocation5 + $0x5c0] ss:$48 sps:$4 sm:$0xff]  }
 0x21a   :  { %3183 = vmatprep.subr.bf16.mxu1 %v6163_v43  ;;  %v6234_v43 = vld [vmem:[#allocation5 + $0x564] ss:$48 sps:$4 sm:$0xff]   ;;  %v6235_v44 = vld [vmem:[#allocation5 + $0x860] ss:$48 sps:$4 sm:$0xff]  }
 0x21c   :  { %5560 = vmatpush3.bf16.msra.mxu0 %v6165_v46  ;;  %v6243_v46 = vld [vmem:[#allocation5 + $0x804] ss:$48 sps:$4 sm:$0xff]  }
 0x21d   :  { %3184 = vmatpush2.bf16.msra.mxu1 %v6161_v45  ;;  %5561 = vmatprep.subr.bf16.mxu0 %v6169_v16  ;;  %v6232_v45 = vld [vmem:[#allocation5 + $0x560] ss:$48 sps:$4 sm:$0xff]  }
 0x21e   :  { %3185 = vmatprep.subr.bf16.mxu1 %v6168_v47  ;;  %v6240_v47 = vld [vmem:[#allocation5 + $0x504] ss:$48 sps:$4 sm:$0xff]   ;;  %v6241_v16 = vld [vmem:[#allocation5 + $0x800] ss:$48 sps:$4 sm:$0xff]  }
 0x220   :  { %5562 = vmatpush3.bf16.msra.mxu0 %v6170_v49  ;;  %v6249_v49 = vld [vmem:[#allocation5 + $0x7a4] ss:$48 sps:$4 sm:$0xff]  }
 0x221   :  { %3186 = vmatpush2.bf16.msra.mxu1 %v6166_v48  ;;  %5563 = vmatprep.subr.bf16.mxu0 %v6174_v52  ;;  %v6238_v48 = vld [vmem:[#allocation5 + $0x500] ss:$48 sps:$4 sm:$0xff]  }
 0x222   :  { %3187 = vmatprep.subr.bf16.mxu1 %v6173_v50  ;;  %v6246_v50 = vld [vmem:[#allocation5 + $0x4a4] ss:$48 sps:$4 sm:$0xff]   ;;  %v6244_v52 = vld [vmem:[#allocation5 + $0x4a0] ss:$48 sps:$4 sm:$0xff]  }
 0x224   :  { %5564 = vmatpush3.bf16.msra.mxu0 %v6175_v54  ;;  %v6252_v54 = vld [vmem:[#allocation5 + $0x444] ss:$48 sps:$4 sm:$0xff]  }
 0x225   :  { %3188 = vmatpush2.bf16.msra.mxu1 %v6171_v53  ;;  %5565 = vmatprep.subr.bf16.mxu0 %v6179_v56  ;;  %v6255_v53 = vld [vmem:[#allocation5 + $0x744] ss:$48 sps:$4 sm:$0xff]   ;;  %v6250_v56 = vld [vmem:[#allocation5 + $0x440] ss:$48 sps:$4 sm:$0xff]  }
 0x226   :  { %3189 = vmatprep.subr.bf16.mxu1 %v6178_v55  ;;  %v6253_v55 = vld [vmem:[#allocation5 + $0x740] ss:$48 sps:$4 sm:$0xff]  }
 0x228   :  { %5566 = vmatpush3.bf16.msra.mxu0 %v6180_v58  ;;  %v6258_v58 = vld [vmem:[#allocation5 + $0x3e4] ss:$48 sps:$4 sm:$0xff]  }
 0x229   :  { %3190 = vmatpush2.bf16.msra.mxu1 %v6176_v57  ;;  %5567 = vmatprep.subr.bf16.mxu0 %v6184_v63  ;;  %v6261_v57 = vld [vmem:[#allocation5 + $0x6e4] ss:$48 sps:$4 sm:$0xff]   ;;  %v6256_v63 = vld [vmem:[#allocation5 + $0x3e0] ss:$48 sps:$4 sm:$0xff]  }
 0x22a   :  { %3191 = vmatprep.subr.bf16.mxu1 %v6183_v60  ;;  %v6259_v60 = vld [vmem:[#allocation5 + $0x6e0] ss:$48 sps:$4 sm:$0xff]  }
 0x22c   :  { %5568 = vmatpush3.bf16.msra.mxu0 %v6185_v2  ;;  %v6264_v2 = vld [vmem:[#allocation5 + $0x384] ss:$48 sps:$4 sm:$0xff]  }
 0x22d   :  { %3192 = vmatpush2.bf16.msra.mxu1 %v6181_v1  ;;  %3884 = vmatprep.subr.bf16.mxu0 %v6189_v5  ;;  %v6267_v1 = vld [vmem:[#allocation5 + $0x684] ss:$48 sps:$4 sm:$0xff]   ;;  %v6262_v5 = vld [vmem:[#allocation5 + $0x380] ss:$48 sps:$4 sm:$0xff]  }
 0x22e   :  { %5575 = vmatprep.subr.bf16.mxu1 %v6186_v3  ;;  %v6265_v3 = vld [vmem:[#allocation5 + $0x680] ss:$48 sps:$4 sm:$0xff]  }
 0x22f   :  { %3237 = vmatmul.mubr.bf16.vlgmr.msra.gmra.mxu0 %v6698_v29  ;;  %v6201_v29 = vld [vmem:[#allocation8 + $0x2a8] ss:$12 sps:$4 sm:$0xff]  }
 0x230   :  { %3194 = vmatmul.mubr.bf16.vlgmr.msra.gmra.mxu1 %v6714_v6  ;;  %3885 = vmatpush1.bf16.msra.mxu0 %v6187_v8  ;;  %v6270_v8 = vld [vmem:[#allocation5 + $0x324] ss:$48 sps:$4 sm:$0xff]  }
 0x231   :  { %5576 = vmatpush3.bf16.msra.mxu1 %v6190_v7  ;;  %3277 = vmatprep.mubr.bf16.mxu1 %v6716_v59  ;;  %v6205_v59 = vld [vmem:[#allocation8 + $0x1e8] ss:$12 sps:$4 sm:$0xff]  }
 0x232   :  { %5577 = vmatprep.subr.bf16.mxu1 %v6191_v9  ;;  %3886 = vmatprep.subr.bf16.mxu0 %v6194_v10  ;;  %v6273_v7 = vld [vmem:[#allocation5 + $0x624] ss:$48 sps:$4 sm:$0xff]   ;;  %v6271_v9 = vld [vmem:[#allocation5 + $0x620] ss:$48 sps:$4 sm:$0xff]  }
 0x233   :  { %3916 = vmatprep.mubr.bf16.mxu0 %v6748_v14  ;;  %v6268_v10 = vld [vmem:[#allocation5 + $0x320] ss:$48 sps:$4 sm:$0xff]  }
 0x234   :  { %3887 = vmatpush1.bf16.msra.mxu0 %v6192_v11  ;;  %v6300_v11 = vld [vmem:[#allocation5 + $0x8cc] ss:$48 sps:$4 sm:$0xff]  }
 0x235   :  { %5578 = vmatpush3.bf16.msra.mxu1 %v6195_v36  ;;  %3888 = vmatprep.subr.bf16.mxu0 %v6199_v13  ;;  %v6276_v36 = vld [vmem:[#allocation5 + $0x2cc] ss:$48 sps:$4 sm:$0xff]  }
 0x236   :  { %5579 = vmatprep.subr.bf16.mxu1 %v6196_v12  ;;  %v6274_v12 = vld [vmem:[#allocation5 + $0x2c8] ss:$48 sps:$4 sm:$0xff]   ;;  %v6279_v13 = vld [vmem:[#allocation5 + $0x26c] ss:$48 sps:$4 sm:$0xff]  }
 0x238   :  { %3889 = vmatpush1.bf16.msra.mxu0 %v6197_v15  ;;  %v6306_v15 = vld [vmem:[#allocation5 + $0x86c] ss:$48 sps:$4 sm:$0xff]  }
 0x239   :  { %5580 = vmatpush3.bf16.msra.mxu1 %v6200_v17  ;;  %3890 = vmatprep.subr.bf16.mxu0 %v6204_v18  ;;  %v6298_v17 = vld [vmem:[#allocation5 + $0x8c8] ss:$48 sps:$4 sm:$0xff]  }
 0x23a   :  { %5581 = vmatprep.subr.bf16.mxu1 %v6201_v29  ;;  %v6753_v29 = vld [vmem:[#allocation2 + $0x8] ss:$12 sps:$4 sm:$0xff]   ;;  %v6756_v18 = vld [vmem:[#allocation2] ss:$12 sps:$4 sm:$0xff]  }
 0x23c   :  { %3891 = vmatpush1.bf16.msra.mxu0 %v6202_v19  ;;  %v6282_v19 = vld [vmem:[#allocation5 + $0x20c] ss:$48 sps:$4 sm:$0xff]  }
 0x23d   :  { %5582 = vmatpush3.bf16.msra.mxu1 %v6205_v59  ;;  %3892 = vmatprep.subr.bf16.mxu0 %v6209_v61  ;;  %v6277_v59 = vld [vmem:[#allocation5 + $0x268] ss:$48 sps:$4 sm:$0xff]   ;;  %v6312_v61 = vld [vmem:[#allocation5 + $0x80c] ss:$48 sps:$4 sm:$0xff]  }
 0x23e   :  { %5583 = vmatprep.subr.bf16.mxu1 %v6206_v20  ;;  %v6304_v20 = vld [vmem:[#allocation5 + $0x868] ss:$48 sps:$4 sm:$0xff]  }
 0x240   :  { %3893 = vmatpush1.bf16.msra.mxu0 %v6207_v34  ;;  %v6285_v34 = vld [vmem:[#allocation5 + $0x1ac] ss:$48 sps:$4 sm:$0xff]  }
 0x241   :  { %5584 = vmatpush3.bf16.msra.mxu1 %v6210_v21  ;;  %3894 = vmatprep.subr.bf16.mxu0 %v6214_v23  ;;  %v6280_v21 = vld [vmem:[#allocation5 + $0x208] ss:$48 sps:$4 sm:$0xff]   ;;  %v6318_v23 = vld [vmem:[#allocation5 + $0x7ac] ss:$48 sps:$4 sm:$0xff]  }
 0x242   :  { %5585 = vmatprep.subr.bf16.mxu1 %v6211_v22  ;;  %v6310_v22 = vld [vmem:[#allocation5 + $0x808] ss:$48 sps:$4 sm:$0xff]  }
 0x244   :  { %3895 = vmatpush1.bf16.msra.mxu0 %v6212_v25  ;;  %v6288_v25 = vld [vmem:[#allocation5 + $0x14c] ss:$48 sps:$4 sm:$0xff]  }
 0x245   :  { %5586 = vmatpush3.bf16.msra.mxu1 %v6215_v24  ;;  %3896 = vmatprep.subr.bf16.mxu0 %v6219_v26  ;;  %v6283_v24 = vld [vmem:[#allocation5 + $0x1a8] ss:$48 sps:$4 sm:$0xff]   ;;  %v6324_v26 = vld [vmem:[#allocation5 + $0x74c] ss:$48 sps:$4 sm:$0xff]  }
 0x246   :  { %5587 = vmatprep.subr.bf16.mxu1 %v6216_v35  ;;  %v6316_v35 = vld [vmem:[#allocation5 + $0x7a8] ss:$48 sps:$4 sm:$0xff]  }
 0x248   :  { %3897 = vmatpush1.bf16.msra.mxu0 %v6217_v51  ;;  %v6330_v51 = vld [vmem:[#allocation5 + $0x6ec] ss:$48 sps:$4 sm:$0xff]  }
 0x249   :  { %5588 = vmatpush3.bf16.msra.mxu1 %v6220_v28  ;;  %3898 = vmatprep.subr.bf16.mxu0 %v6224_v30  ;;  %v6322_v28 = vld [vmem:[#allocation5 + $0x748] ss:$48 sps:$4 sm:$0xff]  }
 0x24a   :  { %5589 = vmatprep.subr.bf16.mxu1 %v6221_v27  ;;  %v6289_v27 = vld [vmem:[#allocation5 + $0xe8] ss:$48 sps:$4 sm:$0xff]  }
 0x24c   :  { %3899 = vmatpush1.bf16.msra.mxu0 %v6222_v37  ;;  %v6328_v37 = vld [vmem:[#allocation5 + $0x6e8] ss:$48 sps:$4 sm:$0xff]  }
 0x24d   :  { %5590 = vmatpush3.bf16.msra.mxu1 %v6225_v33  ;;  %3900 = vmatprep.subr.bf16.mxu0 %v6228_v39  ;;  %v6294_v33 = vld [vmem:[#allocation5 + $0x8c] ss:$48 sps:$4 sm:$0xff]   ;;  %v6292_v39 = vld [vmem:[#allocation5 + $0x88] ss:$48 sps:$4 sm:$0xff]  }
 0x24e   :  { %3927 = vmatprep.subr.bf16.mxu1 %v6231_v38  ;;  %v6336_v38 = vld [vmem:[#allocation5 + $0x68c] ss:$48 sps:$4 sm:$0xff]  }
 0x250   :  { %3278 = vmatmul.mubr.bf16.vlgmr.msra.gmra.mxu1 %v6714_v6  ;;  %3901 = vmatpush2.bf16.msra.mxu0 %v6226_v41  ;;  %v6247_v6 = vld [vmem:[#allocation5 + $0x7a0] ss:$48 sps:$4 sm:$0xff]   ;;  %v6297_v41 = vld [vmem:[#allocation5 + $0x2c] ss:$48 sps:$4 sm:$0xff]  }
 0x251   :  { %3928 = vmatpush1.bf16.msra.mxu1 %v6229_v40  ;;  %3959 = vmatprep.mubr.bf16.mxu1 %v6616_v0 }
 0x252   :  { %3929 = vmatprep.subr.bf16.mxu1 %v6237_v42  ;;  %3902 = vmatprep.subr.bf16.mxu0 %v6234_v43  ;;  %v6334_v42 = vld [vmem:[#allocation5 + $0x688] ss:$48 sps:$4 sm:$0xff]   ;;  %v6342_v43 = vld [vmem:[#allocation5 + $0x62c] ss:$48 sps:$4 sm:$0xff]  }
 0x254   :  { %3903 = vmatpush2.bf16.msra.mxu0 %v6232_v45 }
 0x255   :  { %3930 = vmatpush1.bf16.msra.mxu1 %v6235_v44  ;;  %3904 = vmatprep.subr.bf16.mxu0 %v6240_v47  ;;  %v6295_v44 = vld [vmem:[#allocation5 + $0x28] ss:$48 sps:$4 sm:$0xff]  }
 0x256   :  { %3931 = vmatprep.subr.bf16.mxu1 %v6243_v46  ;;  %v6303_v46 = vld [vmem:[#allocation5 + $0x5cc] ss:$48 sps:$4 sm:$0xff]   ;;  %v6340_v47 = vld [vmem:[#allocation5 + $0x628] ss:$48 sps:$4 sm:$0xff]  }
 0x258   :  { %3905 = vmatpush2.bf16.msra.mxu0 %v6238_v48  ;;  %v6301_v48 = vld [vmem:[#allocation5 + $0x5c8] ss:$48 sps:$4 sm:$0xff]  }
 0x259   :  { %3932 = vmatpush1.bf16.msra.mxu1 %v6241_v16  ;;  %3906 = vmatprep.subr.bf16.mxu0 %v6246_v50  ;;  %v6348_v16 = vld [vmem:[#allocation8 + $0x6ac] ss:$12 sps:$4 sm:$0xff]   ;;  %v6309_v50 = vld [vmem:[#allocation5 + $0x56c] ss:$48 sps:$4 sm:$0xff]  }
 0x25a   :  { %3933 = vmatprep.subr.bf16.mxu1 %v6249_v49 }
 0x25c   :  { %3907 = vmatpush2.bf16.msra.mxu0 %v6244_v52  ;;  %v6351_v52 = vld [vmem:[#allocation8 + $0x694] ss:$12 sps:$4 sm:$0xff]  }
 0x25d   :  { %3934 = vmatpush1.bf16.msra.mxu1 %v6247_v6  ;;  %3908 = vmatprep.subr.bf16.mxu0 %v6252_v54  ;;  %v6346_v6 = vld [vmem:[#allocation8 + $0x6a8] ss:$12 sps:$4 sm:$0xff]  }
 0x25e   :  { %3935 = vmatprep.subr.bf16.mxu1 %v6255_v53 }
 0x260   :  { %3909 = vmatpush2.bf16.msra.mxu0 %v6250_v56  ;;  %v6307_v56 = vld [vmem:[#allocation5 + $0x568] ss:$48 sps:$4 sm:$0xff]  }
 0x261   :  { %3936 = vmatpush1.bf16.msra.mxu1 %v6253_v55  ;;  %3910 = vmatprep.subr.bf16.mxu0 %v6258_v58 }
 0x262   :  { %3937 = vmatprep.subr.bf16.mxu1 %v6261_v57 }
 0x264   :  { %3911 = vmatpush2.bf16.msra.mxu0 %v6256_v63  ;;  %v6349_v63 = vld [vmem:[#allocation8 + $0x690] ss:$12 sps:$4 sm:$0xff]  }
 0x265   :  { %3938 = vmatpush1.bf16.msra.mxu1 %v6259_v60  ;;  %3912 = vmatprep.subr.bf16.mxu0 %v6264_v2  ;;  %v6315_v60 = vld [vmem:[#allocation5 + $0x50c] ss:$48 sps:$4 sm:$0xff]  }
 0x266   :  { %3939 = vmatprep.subr.bf16.mxu1 %v6267_v1 }
 0x268   :  { %3913 = vmatpush2.bf16.msra.mxu0 %v6262_v5 }
 0x269   :  { %3940 = vmatpush1.bf16.msra.mxu1 %v6265_v3  ;;  %3914 = vmatprep.subr.bf16.mxu0 %v6270_v8  ;;  %v6354_v3 = vld [vmem:[#allocation8 + $0x67c] ss:$12 sps:$4 sm:$0xff]  }
 0x26a   :  { %3941 = vmatprep.subr.bf16.mxu1 %v6273_v7 }
 0x26c   :  { %3915 = vmatpush2.bf16.msra.mxu0 %v6268_v10 }
 0x26d   :  { %3942 = vmatpush1.bf16.msra.mxu1 %v6271_v9  ;;  %4013 = vmatprep.subr.bf16.mxu0 %v6300_v11  ;;  %v6313_v9 = vld [vmem:[#allocation5 + $0x508] ss:$48 sps:$4 sm:$0xff]   ;;  %v6321_v11 = vld [vmem:[#allocation5 + $0x4ac] ss:$48 sps:$4 sm:$0xff]  }
 0x26e   :  { %3970 = vmatprep.subr.bf16.mxu1 %v6276_v36 }
 0x26f   :  { %3917 = vmatmul.mubr.bf16.vlgmr.msra.gmra.mxu0 %v6756_v18  ;;  %v2472_v30 = vpop.f32.mrf.mxu0 }
 0x270   :  { %3960 = vmatmul.mubr.bf16.vlgmr.msra.gmra.mxu1 %v6753_v29  ;;  %4014 = vmatpush1.bf16.msra.mxu0 %v6298_v17 }
 0x271   :  { %3971 = vmatpush1.bf16.msra.mxu1 %v6274_v12  ;;  %4015 = vmatprep.subr.bf16.mxu0 %v6306_v15  ;;  %v2474_v40 = vpop.f32.mrf.mxu0  ;;  %v6352_v12 = vld [vmem:[#allocation8 + $0x678] ss:$12 sps:$4 sm:$0xff]  }
 0x272   :  { %3972 = vmatprep.subr.bf16.mxu1 %v6279_v13  ;;  %4045 = vmatprep.mubr.bf16.mxu0 %v6616_v0  ;;  %v6286_v0 = vld [vmem:[#allocation5 + $0x148] ss:$48 sps:$4 sm:$0xff]   ;;  %v6357_v15 = vld [vmem:[#allocation8 + $0x664] ss:$12 sps:$4 sm:$0xff]  }
 0x273   :  { %4002 = vmatprep.mubr.bf16.mxu1 %v6748_v14  ;;  %v6291_v14 = vld [vmem:[#allocation5 + $0xec] ss:$48 sps:$4 sm:$0xff]   ;;  %v2476_v45 = vpop.f32.mrf.mxu0 }
 0x274   :  { %4016 = vmatpush1.bf16.msra.mxu0 %v6304_v20  ;;  %v6360_v20 = vld [vmem:[#allocation8 + $0x64c] ss:$12 sps:$4 sm:$0xff]  }
 0x275   :  { %3973 = vmatpush1.bf16.msra.mxu1 %v6277_v59  ;;  %4017 = vmatprep.subr.bf16.mxu0 %v6312_v61  ;;  %v2478_v49 = vpop.f32.mrf.mxu0  ;;  %v6327_v59 = vld [vmem:[#allocation5 + $0x44c] ss:$48 sps:$4 sm:$0xff]   ;;  %v6325_v61 = vld [vmem:[#allocation5 + $0x448] ss:$48 sps:$4 sm:$0xff]  }
 0x276   :  { %3974 = vmatprep.subr.bf16.mxu1 %v6282_v19  ;;  %v6355_v19 = vld [vmem:[#allocation8 + $0x660] ss:$12 sps:$4 sm:$0xff]  }
 0x278   :  { %4018 = vmatpush1.bf16.msra.mxu0 %v6310_v22  ;;  %v6363_v22 = vld [vmem:[#allocation8 + $0x634] ss:$12 sps:$4 sm:$0xff]  }
 0x279   :  { %3975 = vmatpush1.bf16.msra.mxu1 %v6280_v21  ;;  %4019 = vmatprep.subr.bf16.mxu0 %v6318_v23  ;;  %v6333_v21 = vld [vmem:[#allocation5 + $0x3ec] ss:$48 sps:$4 sm:$0xff]   ;;  %v6331_v23 = vld [vmem:[#allocation5 + $0x3e8] ss:$48 sps:$4 sm:$0xff]  }
 0x27a   :  { %3976 = vmatprep.subr.bf16.mxu1 %v6285_v34  ;;  %v6358_v34 = vld [vmem:[#allocation8 + $0x648] ss:$12 sps:$4 sm:$0xff]  }
 0x27c   :  { %4020 = vmatpush1.bf16.msra.mxu0 %v6316_v35  ;;  %v6366_v35 = vld [vmem:[#allocation8 + $0x61c] ss:$12 sps:$4 sm:$0xff]  }
 0x27d   :  { %3977 = vmatpush1.bf16.msra.mxu1 %v6283_v24  ;;  %4021 = vmatprep.subr.bf16.mxu0 %v6324_v26  ;;  %v6339_v24 = vld [vmem:[#allocation5 + $0x38c] ss:$48 sps:$4 sm:$0xff]   ;;  %v6337_v26 = vld [vmem:[#allocation5 + $0x388] ss:$48 sps:$4 sm:$0xff]  }
 0x27e   :  { %3978 = vmatprep.subr.bf16.mxu1 %v6288_v25  ;;  %v6361_v25 = vld [vmem:[#allocation8 + $0x630] ss:$12 sps:$4 sm:$0xff]  }
 0x280   :  { %4022 = vmatpush1.bf16.msra.mxu0 %v6322_v28  ;;  %v6369_v28 = vld [vmem:[#allocation8 + $0x604] ss:$12 sps:$4 sm:$0xff]  }
 0x281   :  { %3979 = vmatpush1.bf16.msra.mxu1 %v6286_v0  ;;  %4023 = vmatprep.subr.bf16.mxu0 %v6330_v51  ;;  %v6345_v0 = vld [vmem:[#allocation5 + $0x32c] ss:$48 sps:$4 sm:$0xff]   ;;  %v6343_v51 = vld [vmem:[#allocation5 + $0x328] ss:$48 sps:$4 sm:$0xff]  }
 0x282   :  { %3980 = vmatprep.subr.bf16.mxu1 %v6291_v14  ;;  %v6364_v14 = vld [vmem:[#allocation8 + $0x618] ss:$12 sps:$4 sm:$0xff]  }
 0x284   :  { %4024 = vmatpush1.bf16.msra.mxu0 %v6328_v37  ;;  %v6375_v37 = vld [vmem:[#allocation8 + $0x754] ss:$12 sps:$4 sm:$0xff]  }
 0x285   :  { %3981 = vmatpush1.bf16.msra.mxu1 %v6289_v27  ;;  %4025 = vmatprep.subr.bf16.mxu0 %v6336_v38  ;;  %v6367_v27 = vld [vmem:[#allocation8 + $0x600] ss:$12 sps:$4 sm:$0xff]  }
 0x286   :  { %3982 = vmatprep.subr.bf16.mxu1 %v6294_v33  ;;  %v6370_v33 = vld [vmem:[#allocation8 + $0x768] ss:$12 sps:$4 sm:$0xff]  }
 0x288   :  { %4026 = vmatpush1.bf16.msra.mxu0 %v6334_v42  ;;  %v6378_v42 = vld [vmem:[#allocation8 + $0x73c] ss:$12 sps:$4 sm:$0xff]  }
 0x289   :  { %3983 = vmatpush1.bf16.msra.mxu1 %v6292_v39  ;;  %4027 = vmatprep.subr.bf16.mxu0 %v6342_v43 }
 0x28a   :  { %3984 = vmatprep.subr.bf16.mxu1 %v6297_v41 }
 0x28c   :  { %4028 = vmatpush1.bf16.msra.mxu0 %v6340_v47 }
 0x28d   :  { %3985 = vmatpush1.bf16.msra.mxu1 %v6295_v44  ;;  %4708 = vmatprep.subr.bf16.mxu0 %v6348_v16  ;;  %v6381_v16 = vld [vmem:[#allocation8 + $0x724] ss:$12 sps:$4 sm:$0xff]  }
 0x28e   :  { %3986 = vmatprep.subr.bf16.mxu1 %v6303_v46  ;;  %v6376_v46 = vld [vmem:[#allocation8 + $0x738] ss:$12 sps:$4 sm:$0xff]  }
 0x28f   :  { %v5525_v53 = vpop.f32.mrf.mxu0  ;;  %4046 = vmatmul.mubr.bf16.vlgmr.msra.gmra.mxu0 %v6753_v29  ;;  %v6319_v29 = vld [vmem:[#allocation5 + $0x4a8] ss:$48 sps:$4 sm:$0xff]  }
 0x290   :  { %v2515_v54 = vpop.f32.mrf.mxu1  ;;  %4709 = vmatpush1.bf16.msra.mxu0 %v6346_v6  ;;  %v6396_v6 = vld [vmem:[#allocation8 + $0x82c] ss:$12 sps:$4 sm:$0xff]  }
 0x291   :  { %v6761_v55 = vadd.f32 %v2515_v54, %v2472_v30  ;;  %3987 = vmatpush2.bf16.msra.mxu1 %v6301_v48  ;;  %v5526_v57 = vpop.f32.mrf.mxu0  ;;  %4710 = vmatprep.subr.bf16.mxu0 %v6351_v52  ;;  %v6372_v30 = vld [vmem:[#allocation8 + $0x76c] ss:$12 sps:$4 sm:$0xff]   ;;  %v6387_v52 = vld [vmem:[#allocation8 + $0x6f4] ss:$12 sps:$4 sm:$0xff]   ;;  %v6385_v54 = vld [vmem:[#allocation8 + $0x6f0] ss:$12 sps:$4 sm:$0xff]  }
 0x292   :  { %v2517_v58 = vpop.f32.mrf.mxu1  ;;  %3988 = vmatprep.subr.bf16.mxu1 %v6309_v50  ;;  %v6764_v1 = vadd.f32 %v5526_v57, %v5525_v53  ;;  %v6382_v50 = vld [vmem:[#allocation8 + $0x708] ss:$12 sps:$4 sm:$0xff]  }
 0x293   :  { %v6766_v2 = vadd.f32 %v2517_v58, %v2474_v40  ;;  %v5528_v5 = vpop.f32.mrf.mxu0  ;;  %v6373_v40 = vld [vmem:[#allocation8 + $0x750] ss:$12 sps:$4 sm:$0xff]   ;;  %v6394_v53 = vld [vmem:[#allocation8 + $0x828] ss:$12 sps:$4 sm:$0xff]  }
 0x294   :  { %v2519_v7 = vpop.f32.mrf.mxu1  ;;  %4711 = vmatpush1.bf16.msra.mxu0 %v6349_v63  ;;  %v6401_v57 = vld [vmem:[#allocation8 + $0x814] ss:$12 sps:$4 sm:$0xff]   ;;  %v6390_v58 = vld [vmem:[#allocation8 + $0x6dc] ss:$12 sps:$4 sm:$0xff]   ;;  %v6404_v63 = vld [vmem:[#allocation8 + $0x7f8] ss:$12 sps:$4 sm:$0xff]  }
 0x295   :  { %v6768_v8 = vadd.f32 %v2519_v7, %v2476_v45  ;;  %3989 = vmatpush2.bf16.msra.mxu1 %v6307_v56  ;;  %v5529_v10 = vpop.f32.mrf.mxu0  ;;  %4712 = vmatprep.subr.bf16.mxu0 %v6354_v3  ;;  %v6399_v56 = vld [vmem:[#allocation8 + $0x810] ss:$12 sps:$4 sm:$0xff]   ;;  %v6409_v7 = vld [vmem:[#allocation8 + $0x7e0] ss:$12 sps:$4 sm:$0xff]  }
 0x296   :  { %v2521_v36 = vpop.f32.mrf.mxu1  ;;  %3990 = vmatprep.subr.bf16.mxu1 %v6315_v60  ;;  %v6770_v13 = vadd.f32 %v5529_v10, %v5528_v5  ;;  %v6388_v60 = vld [vmem:[#allocation8 + $0x6d8] ss:$12 sps:$4 sm:$0xff]   ;;  %v6391_v5 = vld [vmem:[#allocation8 + $0x6c0] ss:$12 sps:$4 sm:$0xff]   ;;  %v6397_v10 = vld [vmem:[#allocation8 + $0x770] ss:$12 sps:$4 sm:$0xff]  }
 0x297   :  { %v6772_v17 = vadd.f32 %v2521_v36, %v2478_v49  ;;  %v6384_v49 = vld [vmem:[#allocation8 + $0x70c] ss:$12 sps:$4 sm:$0xff]   ;;  %v6393_v3 = vld [vmem:[#allocation8 + $0x6c4] ss:$12 sps:$4 sm:$0xff]   ;;  %v6414_v36 = vld [vmem:[#allocation8 + $0x7c8] ss:$12 sps:$4 sm:$0xff]  }
 0x298   :  { %4713 = vmatpush1.bf16.msra.mxu0 %v6352_v12 }
 0x299   :  { %3991 = vmatpush2.bf16.msra.mxu1 %v6313_v9  ;;  %4714 = vmatprep.subr.bf16.mxu0 %v6357_v15  ;;  %v6411_v9 = vld [vmem:[#allocation8 + $0x7e4] ss:$12 sps:$4 sm:$0xff]  }
 0x29a   :  { %3992 = vmatprep.subr.bf16.mxu1 %v6321_v11  ;;  %v6416_v11 = vld [vmem:[#allocation8 + $0x7cc] ss:$12 sps:$4 sm:$0xff]  }
 0x29c   :  { %4715 = vmatpush1.bf16.msra.mxu0 %v6355_v19 }
 0x29d   :  { %3993 = vmatpush2.bf16.msra.mxu1 %v6319_v29  ;;  %4716 = vmatprep.subr.bf16.mxu0 %v6360_v20  ;;  %v6419_v29 = vld [vmem:[#allocation8 + $0x7b0] ss:$12 sps:$4 sm:$0xff]  }
 0x29e   :  { %3994 = vmatprep.subr.bf16.mxu1 %v6327_v59  ;;  %v6421_v59 = vld [vmem:[#allocation8 + $0x7b4] ss:$12 sps:$4 sm:$0xff]  }
 0x2a0   :  { %4717 = vmatpush1.bf16.msra.mxu0 %v6358_v34  ;;  %v6424_v34 = vld [vmem:[#allocation8 + $0x798] ss:$12 sps:$4 sm:$0xff]  }
 0x2a1   :  { %3995 = vmatpush2.bf16.msra.mxu1 %v6325_v61  ;;  %4718 = vmatprep.subr.bf16.mxu0 %v6363_v22  ;;  %v6426_v22 = vld [vmem:[#allocation8 + $0x79c] ss:$12 sps:$4 sm:$0xff]  }
 0x2a2   :  { %3996 = vmatprep.subr.bf16.mxu1 %v6333_v21 }
 0x2a4   :  { %4719 = vmatpush1.bf16.msra.mxu0 %v6361_v25  ;;  %v6434_v25 = vld [vmem:[#allocation8 + $0x8e8] ss:$12 sps:$4 sm:$0xff]  }
 0x2a5   :  { %3997 = vmatpush2.bf16.msra.mxu1 %v6331_v23  ;;  %4720 = vmatprep.subr.bf16.mxu0 %v6366_v35  ;;  %v6436_v35 = vld [vmem:[#allocation8 + $0x8ec] ss:$12 sps:$4 sm:$0xff]  }
 0x2a6   :  { %3998 = vmatprep.subr.bf16.mxu1 %v6339_v24  ;;  %v6429_v24 = vld [vmem:[#allocation8 + $0x780] ss:$12 sps:$4 sm:$0xff]  }
 0x2a8   :  { %4721 = vmatpush1.bf16.msra.mxu0 %v6364_v14  ;;  %v6445_v14 = vld [vmem:[#allocation8 + $0x8a4] ss:$12 sps:$4 sm:$0xff]  }
 0x2a9   :  { %3999 = vmatpush2.bf16.msra.mxu1 %v6337_v26  ;;  %4722 = vmatprep.subr.bf16.mxu0 %v6369_v28  ;;  %v6439_v26 = vld [vmem:[#allocation8 + $0x8d4] ss:$12 sps:$4 sm:$0xff]   ;;  %v6448_v28 = vld [vmem:[#allocation8 + $0x88c] ss:$12 sps:$4 sm:$0xff]  }
 0x2aa   :  { %4000 = vmatprep.subr.bf16.mxu1 %v6345_v0  ;;  %v6442_v0 = vld [vmem:[#allocation8 + $0x8bc] ss:$12 sps:$4 sm:$0xff]  }
 0x2ac   :  { %4723 = vmatpush1.bf16.msra.mxu0 %v6367_v27 }
 0x2ad   :  { %4001 = vmatpush2.bf16.msra.mxu1 %v6343_v51  ;;  %4724 = vmatprep.subr.bf16.mxu0 %v6372_v30  ;;  %v6446_v51 = vld [vmem:[#allocation8 + $0x888] ss:$12 sps:$4 sm:$0xff]  }
 0x2ae   :  { %4751 = vmatprep.subr.bf16.mxu1 %v6396_v6  ;;  %v6454_v6 = vld [vmem:[#allocation8 + $0x85c] ss:$12 sps:$4 sm:$0xff]  }
 0x2b0   :  { %v5547_v38 = vpop.f32.mrf.mxu1  ;;  %4003 = vmatmul.mubr.bf16.vlgmr.msra.gmra.mxu1 %v6756_v18  ;;  %4725 = vmatpush2.bf16.msra.mxu0 %v6370_v33  ;;  %v6379_v18 = vld [vmem:[#allocation8 + $0x720] ss:$12 sps:$4 sm:$0xff]  }
 0x2b1   :  { %4726 = vmatprep.subr.bf16.mxu0 %v6375_v37  ;;  %4752 = vmatpush1.bf16.msra.mxu1 %v6394_v53 }
 0x2b2   :  { %v5548_v39 = vpop.f32.mrf.mxu1  ;;  %4753 = vmatprep.subr.bf16.mxu1 %v6401_v57 }
 0x2b3   :  { %v5549_v41 = vadd.f32 %v5548_v39, %v5547_v38 }
 0x2b4   :  { %v5550_v43 = vpop.f32.mrf.mxu1  ;;  %4727 = vmatpush2.bf16.msra.mxu0 %v6373_v40 }
 0x2b5   :  { %v6776_v44 = vadd.f32 %v5549_v41, %v6764_v1  ;;  %4728 = vmatprep.subr.bf16.mxu0 %v6378_v42  ;;  %4754 = vmatpush1.bf16.msra.mxu1 %v6399_v56  ;;  %v6406_v1 = vld [vmem:[#allocation8 + $0x7fc] ss:$12 sps:$4 sm:$0xff]   ;;  %v6451_v41 = vld [vmem:[#allocation8 + $0x874] ss:$12 sps:$4 sm:$0xff]   ;;  %v6457_v56 = vld [vmem:[#allocation8 + $0x844] ss:$12 sps:$4 sm:$0xff]  }
 0x2b6   :  { %v5551_v45 = vpop.f32.mrf.mxu1  ;;  %4755 = vmatprep.subr.bf16.mxu1 %v6406_v1 }
 0x2b7   :  { %v5552_v47 = vadd.f32 %v5551_v45, %v5550_v43  ;;  %v6449_v45 = vld [vmem:[#allocation8 + $0x870] ss:$12 sps:$4 sm:$0xff]  }
 0x2b8   :  { %4729 = vmatpush2.bf16.msra.mxu0 %v6376_v46 }
 0x2b9   :  { %v6779_v48 = vadd.f32 %v5552_v47, %v6770_v13  ;;  %4730 = vmatprep.subr.bf16.mxu0 %v6381_v16  ;;  %4756 = vmatpush1.bf16.msra.mxu1 %v6404_v63 }
 0x2ba   :  { %4757 = vmatprep.subr.bf16.mxu1 %v6411_v9  ;;  %v3382_v9 = vld [vmem:[#allocation7 + $0x8] sm:$0xf] }
 0x2bc   :  { %4731 = vmatpush2.bf16.msra.mxu0 %v6379_v18 }
 0x2bd   :  { %4732 = vmatprep.subr.bf16.mxu0 %v6384_v49  ;;  %4758 = vmatpush1.bf16.msra.mxu1 %v6409_v7 }
 0x2be   :  { %4759 = vmatprep.subr.bf16.mxu1 %v6416_v11 }
 0x2c0   :  { %4733 = vmatpush2.bf16.msra.mxu0 %v6382_v50 }
 0x2c1   :  { %4734 = vmatprep.subr.bf16.mxu0 %v6387_v52  ;;  %4760 = vmatpush1.bf16.msra.mxu1 %v6414_v36  ;;  %v6452_v52 = vld [vmem:[#allocation8 + $0x858] ss:$12 sps:$4 sm:$0xff]   ;;  %v3387_v36 = vrot.slane %v3382_v9, %v6690_v4 }
 0x2c2   :  { %4761 = vmatprep.subr.bf16.mxu1 %v6421_v59 }
 0x2c4   :  { %4735 = vmatpush2.bf16.msra.mxu0 %v6385_v54  ;;  %v6455_v54 = vld [vmem:[#allocation8 + $0x840] ss:$12 sps:$4 sm:$0xff]  }
 0x2c5   :  { %4736 = vmatprep.subr.bf16.mxu0 %v6390_v58  ;;  %4762 = vmatpush1.bf16.msra.mxu1 %v6419_v29 }
 0x2c6   :  { %4763 = vmatprep.subr.bf16.mxu1 %v6426_v22 }
 0x2c8   :  { %4737 = vmatpush2.bf16.msra.mxu0 %v6388_v60 }
 0x2c9   :  { %4738 = vmatprep.subr.bf16.mxu0 %v6393_v3  ;;  %4764 = vmatpush1.bf16.msra.mxu1 %v6424_v34 }
 0x2cc   :  { %4739 = vmatpush2.bf16.msra.mxu0 %v6391_v5 }
 0x2cd   :  { %5597 = vmatprep.subr.bf16.mxu0 %v6397_v10  ;;  %v3391_v10 = vrot.slane %v3382_v9, %v6719_v62 }
 0x2cf   :  { %v3152_v12 = vpop.f32.mrf.mxu0 }
 0x2d0   :  { %v3153_v13 = vadd.f32 %v3152_v12, %v6761_v55  ;;  %v6431_v55 = vld [vmem:[#allocation8 + $0x784] ss:$12 sps:$4 sm:$0xff]  }
 0x2d1   :  { %v3154_v15 = vpop.f32.mrf.mxu0  ;;  %4765 = vmatprep.subr.bf16.mxu1 %v6431_v55 }
 0x2d2   :  { %v3155_v19 = vadd.f32 %v3154_v15, %v6766_v2  ;;  %4766 = vmatpush1.bf16.msra.mxu1 %v6429_v24  ;;  %v6437_v2 = vld [vmem:[#allocation8 + $0x8d0] ss:$12 sps:$4 sm:$0xff]  }
 0x2d3   :  { %v3156_v20 = vpop.f32.mrf.mxu0  ;;  %4767 = vmatprep.subr.bf16.mxu1 %v6436_v35 }
 0x2d4   :  { %v3157_v61 = vadd.f32 %v3156_v20, %v6768_v8  ;;  %v6440_v8 = vld [vmem:[#allocation8 + $0x8b8] ss:$12 sps:$4 sm:$0xff]  }
 0x2d5   :  { %v3158_v21 = vpop.f32.mrf.mxu0 }
 0x2d6   :  { %v3159_v23 = vadd.f32 %v3158_v21, %v6772_v17  ;;  %4768 = vmatpush2.bf16.msra.mxu1 %v6434_v25  ;;  %v6443_v17 = vld [vmem:[#allocation8 + $0x8a0] ss:$12 sps:$4 sm:$0xff]  }
 0x2d7   :  { %4769 = vmatprep.subr.bf16.mxu1 %v6439_v26 }
 0x2da   :  { %4770 = vmatpush2.bf16.msra.mxu1 %v6437_v2 }
 0x2db   :  { %4771 = vmatprep.subr.bf16.mxu1 %v6442_v0 }
 0x2de   :  { %4772 = vmatpush2.bf16.msra.mxu1 %v6440_v8  ;;  %v6398_v8 = vld [vmem:[#allocation8 + $0x6b0] ss:$12 sps:$4 sm:$0xff]  }
 0x2df   :  { %4773 = vmatprep.subr.bf16.mxu1 %v6445_v14 }
 0x2e2   :  { %4774 = vmatpush2.bf16.msra.mxu1 %v6443_v17  ;;  %v6402_v17 = vld [vmem:[#allocation8 + $0x758] ss:$12 sps:$4 sm:$0xff]  }
 0x2e3   :  { %4775 = vmatprep.subr.bf16.mxu1 %v6448_v28  ;;  %v6403_v28 = vld [vmem:[#allocation8 + $0x698] ss:$12 sps:$4 sm:$0xff]  }
 0x2e6   :  { %4776 = vmatpush2.bf16.msra.mxu1 %v6446_v51  ;;  %v6407_v51 = vld [vmem:[#allocation8 + $0x740] ss:$12 sps:$4 sm:$0xff]  }
 0x2e7   :  { %4777 = vmatprep.subr.bf16.mxu1 %v6451_v41  ;;  %v6422_v41 = vld [vmem:[#allocation8 + $0x6f8] ss:$12 sps:$4 sm:$0xff]  }
 0x2ea   :  { %4778 = vmatpush2.bf16.msra.mxu1 %v6449_v45  ;;  %v6428_v45 = vld [vmem:[#allocation8 + $0x620] ss:$12 sps:$4 sm:$0xff]  }
 0x2eb   :  { %4779 = vmatprep.subr.bf16.mxu1 %v6454_v6 }
 0x2ee   :  { %4780 = vmatpush2.bf16.msra.mxu1 %v6452_v52  ;;  %v3395_v52 = vrot.slane %v3382_v9, %v6701_v31 }
 0x2ef   :  { %v5569_v30 = vpop.f32.mrf.mxu0  ;;  %4781 = vmatprep.subr.bf16.mxu1 %v6457_v56 }
 0x2f0   :  { %v3195_v27 = vpop.f32.mrf.mxu1 }
 0x2f1   :  { %v6785_v33 = vadd.f32 %v3195_v27, %v3153_v13  ;;  %v5570_v38 = vpop.f32.mrf.mxu0  ;;  %v6408_v27 = vld [vmem:[#allocation8 + $0x680] ss:$12 sps:$4 sm:$0xff]  }
 0x2f2   :  { %v3197_v37 = vpop.f32.mrf.mxu1  ;;  %v5571_v40 = vadd.f32 %v5570_v38, %v5569_v30  ;;  %4782 = vmatpush2.bf16.msra.mxu1 %v6455_v54  ;;  %v6412_v30 = vld [vmem:[#allocation8 + $0x728] ss:$12 sps:$4 sm:$0xff]   ;;  %v6417_v38 = vld [vmem:[#allocation8 + $0x710] ss:$12 sps:$4 sm:$0xff]  }
 0x2f3   :  { %v6787_v39 = vadd.f32 %v3197_v37, %v3155_v19  ;;  %v5572_v43 = vpop.f32.mrf.mxu0  ;;  %v6413_v37 = vld [vmem:[#allocation8 + $0x668] ss:$12 sps:$4 sm:$0xff]  }
 0x2f4   :  { %v3199_v42 = vpop.f32.mrf.mxu1  ;;  %v3239_v46 = vadd.f32 %v5571_v40, %v6776_v44  ;;  %v6458_v44 = vld [vmem:[#allocation8 + $0x8f0] ss:$12 sps:$4 sm:$0xff]  }
 0x2f5   :  { %v6790_v47 = vadd.f32 %v3199_v42, %v3157_v61  ;;  %v5573_v18 = vpop.f32.mrf.mxu0  ;;  %5619 = vmatprep.subr.bf16.mxu1 %v6458_v44  ;;  %v6418_v40 = vld [vmem:[#allocation8 + $0x650] ss:$12 sps:$4 sm:$0xff]   ;;  %v6423_v42 = vld [vmem:[#allocation8 + $0x638] ss:$12 sps:$4 sm:$0xff]  }
 0x2f6   :  { %v3201_v16 = vpop.f32.mrf.mxu1  ;;  %v5574_v50 = vadd.f32 %v5573_v18, %v5572_v43  ;;  %v6427_v43 = vld [vmem:[#allocation8 + $0x6e0] ss:$12 sps:$4 sm:$0xff]  }
 0x2f7   :  { %v6792_v49 = vadd.f32 %v3201_v16, %v3159_v23  ;;  %v6433_v16 = vld [vmem:[#allocation8 + $0x608] ss:$12 sps:$4 sm:$0xff]  }
 0x2f8   :  { %v3242_v53 = vadd.f32 %v5574_v50, %v6779_v48  ;;  %v3399_v50 = vrot.slane %v3382_v9, %v6704_v32  ;;  %v6459_v9 = vld [vmem:[#allocation8 + $0x830] ss:$12 sps:$4 sm:$0xff]  }
 0x310   :  { %v5591_v57 = vpop.f32.mrf.mxu1 }
 0x312   :  { %v5592_v58 = vpop.f32.mrf.mxu1 }
 0x313   :  { %v5593_v60 = vadd.f32 %v5592_v58, %v5591_v57 }
 0x314   :  { %v5594_v63 = vpop.f32.mrf.mxu1 }
 0x315   :  { %v6795_v1 = vadd.f32 %v5593_v60, %v3239_v46  ;;  %v6432_v46 = vld [vmem:[#allocation8 + $0x6c8] ss:$12 sps:$4 sm:$0xff]  }
 0x316   :  { %v5595_v3 = vpop.f32.mrf.mxu1 }
 0x317   :  { %v5596_v5 = vadd.f32 %v5595_v3, %v5594_v63 }
 0x319   :  { %v6797_v7 = vadd.f32 %v5596_v5, %v3242_v53 }
 0x32f   :  { %v3918_v11 = vpop.f32.mrf.mxu0 }
 0x330   :  { %v3961_v48 = vpop.f32.mrf.mxu1  ;;  %v3919_v29 = vadd.f32 %v3918_v11, %v3387_v36 }
 0x331   :  { %v3920_v13 = vpop.f32.mrf.mxu0 }
 0x332   :  { %v3963_v12 = vpop.f32.mrf.mxu1  ;;  %v3921_v15 = vadd.f32 %v3920_v13, %v3391_v10  ;;  %v3962_v23 = vadd.f32 %v3961_v48, %v3919_v29 }
 0x333   :  { %v3922_v59 = vpop.f32.mrf.mxu0 }
 0x334   :  { %v3965_v19 = vpop.f32.mrf.mxu1  ;;  %v3923_v20 = vadd.f32 %v3922_v59, %v3387_v36  ;;  %v3964_v21 = vadd.f32 %v3963_v12, %v3921_v15  ;;  %v4056_v26 = vmax.f32 %v3962_v23, 0.0  ;;  %v6466_v23 = vld [vmem:[#allocation8 + $0x890] ss:$12 sps:$4 sm:$0xff]  }
 0x335   :  { %v3924_v61 = vpop.f32.mrf.mxu0 }
 0x336   :  { %v3966_v34 = vadd.f32 %v3965_v19, %v3923_v20  ;;  %v3925_v22 = vadd.f32 %v3924_v61, %v3391_v10  ;;  %v3967_v24 = vpop.f32.mrf.mxu1  ;;  %v4057_v35 = vmax.f32 %v3964_v21, 0.0  ;;  %v6460_v19 = vld [vmem:[#allocation8 + $0x8d8] ss:$12 sps:$4 sm:$0xff]   ;;  %v6462_v61 = vld [vmem:[#allocation8 + $0x8c0] ss:$12 sps:$4 sm:$0xff]  }
 0x337   :  { %v6461_v20 = vld [vmem:[#allocation8 + $0x818] ss:$12 sps:$4 sm:$0xff]   ;;  %v6463_v21 = vld [vmem:[#allocation8 + $0x800] ss:$12 sps:$4 sm:$0xff]  }
 0x338   :  { %v3968_v55 = vadd.f32 %v3967_v24, %v3925_v22  ;;  %v4060_v25 = vmax.f32 %v3966_v34, 0.0  ;;  %v6464_v34 = vld [vmem:[#allocation8 + $0x8a8] ss:$12 sps:$4 sm:$0xff]   ;;  %v6467_v24 = vld [vmem:[#allocation8 + $0x7d0] ss:$12 sps:$4 sm:$0xff]  }
 0x339   :  { %v6465_v22 = vld [vmem:[#allocation8 + $0x7e8] ss:$12 sps:$4 sm:$0xff]  }
 0x33a   :  { %v4061_v2 = vmax.f32 %v3968_v55, 0.0  ;;  %v4064_v14 = vpack.c.bf16 %v4060_v25, %v4056_v26  ;;  %v6468_v55 = vld [vmem:[#allocation8 + $0x878] ss:$12 sps:$4 sm:$0xff]   ;;  %v6472_v26 = vld [vmem:[#allocation8 + $0x848] ss:$12 sps:$4 sm:$0xff]  }
 0x33b   :  { %v6469_v25 = vld [vmem:[#allocation8 + $0x7b8] ss:$12 sps:$4 sm:$0xff]  }
 0x33c   :  { %v4065_v0 = vpack.c.bf16 %v4061_v2, %v4057_v35  ;;  %v6470_v35 = vld [vmem:[#allocation8 + $0x860] ss:$12 sps:$4 sm:$0xff]  }
 0x33d   :  { %v6471_v2 = vld [vmem:[#allocation8 + $0x7a0] ss:$12 sps:$4 sm:$0xff]  }
 0x33e   :  { %4740 = vmatprep.mubr.bf16.mxu0 %v4065_v0 }
 0x33f   :  { %4741 = vmatmul.mubr.bf16.vlgmr.msra.gmra.mxu0 %v4064_v14 }
 0x340   :  { %5598 = vmatpush3.bf16.msra.mxu0 %v6398_v8  ;;  %4826 = vmatprep.mubr.bf16.mxu0 %v4065_v0  ;;  %v6473_v0 = vld [vmem:[#allocation8 + $0x788] ss:$12 sps:$4 sm:$0xff]  }
 0x341   :  { %5599 = vmatprep.subr.bf16.mxu0 %v6402_v17  ;;  %v4882_v17 = vld [vmem:[#allocation10] sm:$0x7] }
 0x344   :  { %5600 = vmatpush3.bf16.msra.mxu0 %v6403_v28 }
 0x345   :  { %5601 = vmatprep.subr.bf16.mxu0 %v6407_v51 }
 0x348   :  { %5602 = vmatpush3.bf16.msra.mxu0 %v6408_v27  ;;  %v4887_v27 = vrot.slane %v4882_v17, %v6690_v4 }
 0x349   :  { %5603 = vmatprep.subr.bf16.mxu0 %v6412_v30 }
 0x34c   :  { %5604 = vmatpush3.bf16.msra.mxu0 %v6413_v37 }
 0x34d   :  { %5605 = vmatprep.subr.bf16.mxu0 %v6417_v38 }
 0x34f   :  { %v4047_v18 = vpop.f32.mrf.mxu0 }
 0x350   :  { %5606 = vmatpush3.bf16.msra.mxu0 %v6418_v40 }
 0x351   :  { %5607 = vmatprep.subr.bf16.mxu0 %v6422_v41  ;;  %v4049_v6 = vpop.f32.mrf.mxu0  ;;  %v4891_v41 = vrot.slane %v4882_v17, %v6719_v62 }
 0x353   :  { %v4051_v57 = vpop.f32.mrf.mxu0 }
 0x354   :  { %5608 = vmatpush3.bf16.msra.mxu0 %v6423_v42 }
 0x355   :  { %5609 = vmatprep.subr.bf16.mxu0 %v6427_v43  ;;  %v4053_v36 = vpop.f32.mrf.mxu0 }
 0x358   :  { %5610 = vmatpush3.bf16.msra.mxu0 %v6428_v45 }
 0x359   :  { %5611 = vmatprep.subr.bf16.mxu0 %v6432_v46 }
 0x35c   :  { %5612 = vmatpush3.bf16.msra.mxu0 %v6433_v16 }
 0x35f   :  { %4827 = vmatmul.mubr.bf16.vlgmr.msra.gmra.mxu0 %v4064_v14 }
 0x370   :  { %v4004_v53 = vpop.f32.mrf.mxu1 }
 0x371   :  { %v4005_v44 = vadd.f32 %v4004_v53, %v3395_v52 }
 0x372   :  { %v4006_v54 = vpop.f32.mrf.mxu1 }
 0x373   :  { %v4007_v56 = vadd.f32 %v4006_v54, %v3399_v50  ;;  %v4048_v10 = vadd.f32 %v4047_v18, %v4005_v44 }
 0x374   :  { %v4008_v58 = vpop.f32.mrf.mxu1 }
 0x375   :  { %v4009_v60 = vadd.f32 %v4008_v58, %v3395_v52  ;;  %v4050_v3 = vadd.f32 %v4049_v6, %v4007_v56  ;;  %v4058_v15 = vmax.f32 %v4048_v10, 0.0 }
 0x376   :  { %v4010_v63 = vpop.f32.mrf.mxu1 }
 0x377   :  { %v4052_v5 = vadd.f32 %v4051_v57, %v4009_v60  ;;  %v4011_v48 = vadd.f32 %v4010_v63, %v3399_v50  ;;  %v4059_v13 = vmax.f32 %v4050_v3, 0.0 }
 0x379   :  { %v4054_v11 = vadd.f32 %v4053_v36, %v4011_v48  ;;  %v4062_v12 = vmax.f32 %v4052_v5, 0.0 }
 0x37b   :  { %v4063_v32 = vmax.f32 %v4054_v11, 0.0  ;;  %v4066_v59 = vpack.c.bf16 %v4062_v12, %v4058_v15 }
 0x37d   :  { %v4067_v29 = vpack.c.bf16 %v4063_v32, %v4059_v13 }
 0x37f   :  { %4783 = vmatprep.mubr.bf16.mxu1 %v4067_v29 }
 0x380   :  { %4784 = vmatmul.mubr.bf16.vlgmr.msra.gmra.mxu1 %v4066_v59 }
 0x381   :  { %5620 = vmatpush3.bf16.msra.mxu1 %v6459_v9  ;;  %4867 = vmatprep.mubr.bf16.mxu1 %v4067_v29 }
 0x382   :  { %5621 = vmatprep.subr.bf16.mxu1 %v6460_v19 }
 0x385   :  { %5622 = vmatpush3.bf16.msra.mxu1 %v6461_v20 }
 0x386   :  { %5623 = vmatprep.subr.bf16.mxu1 %v6462_v61 }
 0x389   :  { %5624 = vmatpush3.bf16.msra.mxu1 %v6463_v21 }
 0x38a   :  { %5625 = vmatprep.subr.bf16.mxu1 %v6464_v34 }
 0x38d   :  { %5626 = vmatpush3.bf16.msra.mxu1 %v6465_v22 }
 0x38e   :  { %5627 = vmatprep.subr.bf16.mxu1 %v6466_v23 }
 0x391   :  { %5628 = vmatpush3.bf16.msra.mxu1 %v6467_v24 }
 0x392   :  { %5629 = vmatprep.subr.bf16.mxu1 %v6468_v55 }
 0x395   :  { %5630 = vmatpush3.bf16.msra.mxu1 %v6469_v25 }
 0x396   :  { %5631 = vmatprep.subr.bf16.mxu1 %v6470_v35 }
 0x399   :  { %5632 = vmatpush3.bf16.msra.mxu1 %v6471_v2 }
 0x39a   :  { %5633 = vmatprep.subr.bf16.mxu1 %v6472_v26 }
 0x39d   :  { %5634 = vmatpush3.bf16.msra.mxu1 %v6473_v0 }
 0x3a0   :  { %4868 = vmatmul.mubr.bf16.vlgmr.msra.gmra.mxu1 %v4066_v59 }
 0x3ff   :  { %v4742_v8 = vpop.f32.mrf.mxu0 }
 0x401   :  { %v4744_v14 = vpop.f32.mrf.mxu0 }
 0x403   :  { %v4746_v30 = vpop.f32.mrf.mxu0 }
 0x405   :  { %v4748_v16 = vpop.f32.mrf.mxu0 }
 0x41f   :  { %v5613_v62 = vpop.f32.mrf.mxu0 }
 0x421   :  { %v5614_v54 = vpop.f32.mrf.mxu0 }
 0x422   :  { %v5615_v57 = vadd.f32 %v5614_v54, %v5613_v62 }
 0x423   :  { %v5616_v56 = vpop.f32.mrf.mxu0 }
 0x425   :  { %v5617_v60 = vpop.f32.mrf.mxu0 }
 0x426   :  { %v5618_v48 = vadd.f32 %v5617_v60, %v5616_v56 }
 0x440   :  { %v4785_v28 = vpop.f32.mrf.mxu1 }
 0x441   :  { %v4786_v51 = vadd.f32 %v4785_v28, %v4742_v8 }
 0x442   :  { %v4787_v37 = vpop.f32.mrf.mxu1 }
 0x443   :  { %v4876_v38 = vadd.f32 %v4786_v51, %v6785_v33  ;;  %v4788_v40 = vadd.f32 %v4787_v37, %v4744_v14 }
 0x444   :  { %v4789_v42 = vpop.f32.mrf.mxu1 }
 0x445   :  { %v4899_v43 = vadd.f32 %v4887_v27, %v4876_v38  ;;  %v4877_v45 = vadd.f32 %v4788_v40, %v6787_v39  ;;  %v4790_v46 = vadd.f32 %v4789_v42, %v4746_v30 }
 0x446   :  { %v4791_v18 = vpop.f32.mrf.mxu1 }
 0x447   :  { %4905 = vst [vmem:[#allocation11] sm:$0xff] %v4899_v43  ;;  %v4900_v50 = vadd.f32 %v4891_v41, %v4877_v45  ;;  %v4879_v6 = vadd.f32 %v4790_v46, %v6790_v47  ;;  %v4792_v52 = vadd.f32 %v4791_v18, %v4748_v16  ;;  %v4895_v47 = vrot.slane %v4882_v17, %v6701_v31 }
 0x449   :  { %4906 = vst [vmem:[#allocation11 + $0x8] sm:$0xff] %v4900_v50  ;;  %v4902_v4 = vadd.f32 %v4887_v27, %v4879_v6  ;;  %v4880_v53 = vadd.f32 %v4792_v52, %v6792_v49 }
 0x44b   :  { %4908 = vst [vmem:[#allocation11 + $0x18] sm:$0xff] %v4902_v4  ;;  %v4903_v33 = vadd.f32 %v4891_v41, %v4880_v53 }
 0x44d   :  { %4909 = vst [vmem:[#allocation11 + $0x20] sm:$0xff] %v4903_v33 }
 0x460   :  { %v5635_v44 = vpop.f32.mrf.mxu1 }
 0x462   :  { %v5636_v39 = vpop.f32.mrf.mxu1 }
 0x463   :  { %v5637_v58 = vadd.f32 %v5636_v39, %v5635_v44 }
 0x464   :  { %v5638_v63 = vpop.f32.mrf.mxu1 }
 0x465   :  { %v4870_v3 = vadd.f32 %v5637_v58, %v5615_v57 }
 0x466   :  { %v5639_v5 = vpop.f32.mrf.mxu1 }
 0x467   :  { %v4878_v10 = vadd.f32 %v4870_v3, %v6795_v1  ;;  %v5640_v49 = vadd.f32 %v5639_v5, %v5638_v63 }
 0x469   :  { %v4901_v36 = vadd.f32 %v4895_v47, %v4878_v10  ;;  %v4873_v11 = vadd.f32 %v5640_v49, %v5618_v48 }
 0x46b   :  { %4907 = vst [vmem:[#allocation11 + $0x10] sm:$0xff] %v4901_v36  ;;  %v4881_v12 = vadd.f32 %v4873_v11, %v6797_v7 }
 0x46d   :  { %v4904_v13 = vadd.f32 %v4895_v47, %v4881_v12 }
 0x46f   :  { %4910 = vst [vmem:[#allocation11 + $0x28] sm:$0xff] %v4904_v13 }
 0x470   :  { %6590 = shalt.err (!%p6587_p1)
}
 0x471   :  { %s6618_s21 = smov 384   ;;  %s6619_s22 = smov 24  }
 0x472   :  { %4922 = dma.vmem_to_hbm [thread:$0]  %s4917_s4, 768, %s6820_s5, [#allocation4], %s6618_s21, %s6618_s21, %s6619_s22  }
 0x473   :  { %6605 = dma.done.wait [#allocation4], 768  }
 0x474   :  { %6606 = vsyncadd [#allocation4], 4294966528 }
 0x475   :  { %4926 = vsyncpa [#allocation3], 1 }
 0x476   :  { %4927 = vsyncpa [#allocation6], 1 }
 0x477   :  { %4928 = vsyncpa [#allocation9], 1 }
 0x478   :  { %4929 = vsyncpa [#allocation4], 1 }

// kernel: tpu_custom_call.1
= control target key start
LH: loop header
LB: loop body
LE: loop exit
PB: predicated region body
PF: predicated region fallthrough
CT: control target
= control target key end

     0   :  { %10 = vsyncpa [#allocation3], 0  ;;  %s6815_s0 = inlined_call_operand.hbm [shape: bf16[16,384], index: 0, kind: input, shape index: {}]   ;;  %s6816_s1 = inlined_call_operand.hbm [shape: bf16[384,1536], index: 1, kind: input, shape index: {}]   ;;  %s6817_s2 = inlined_call_operand.hbm [shape: f32[1,1536], index: 2, kind: input, shape index: {}]   ;;  %s6818_s3 = inlined_call_operand.hbm [shape: bf16[1536,384], index: 3, kind: input, shape index: {}]   ;;  %s6819_s4 = inlined_call_operand.hbm [shape: f32[1,384], index: 4, kind: input, shape index: {}]   ;;  %s6820_s5 = inlined_call_operand.hbm [shape: f32[16,384], index: 5, kind: output, shape index: {}]  }
   0x1   :  { %11 = vsyncpa [#allocation6], 0 }
   0x2   :  { %12 = vsyncpa [#allocation9], 0 }
   0x3   :  { %13 = vsyncpa [#allocation4], 0  ;;  %s6607_s18 = smov [#allocation5]  }
   0x4   :  { %s31_s19 = sshll.u32 %s6607_s18, 4  ;;  %s32_s19 = int_to_ptr.vmem [resolvable:$true] %s31_s19 }
   0x5   :  { %s6487_s20 = scalar_lea.vmem %s32_s19, 36864  ;;  %p6492_p1 = scmp.lt.s32.totalorder %s32_s19, %s32_s19 }
   0x6   :  { %p6488_p0 = scmp.ne.s32.totalorder %s32_s19, %s6487_s20  ;;  %p6493_p2 = scmp.lt.s32.totalorder %s6487_s20, %s6487_s20 }
   0x8   :  { %p6494_p3 = por %p6493_p2, %p6492_p1 }
   0xa   :  { %p6495_p4 = pnand %p6494_p3, %p6488_p0 }
   0xc   :  { %6498 = shalt.err (!%p6495_p4)
}
   0xd   :  { %s6608_s21 = smov 768   ;;  %s6609_s22 = smov 48  }
   0xe   :  { %37 = dma.hbm_to_vmem [thread:$0]  %s6816_s1, 36864, %s32_s19, [#allocation6], %s6608_s21, %s6608_s21, %s6609_s22  }
   0xf   :  { %s6610_s25 = smov [#allocation8]   ;;  %s6611_s27 = smov [#allocation2]  }
  0x10   :  { %s53_s26 = sshll.u32 %s6610_s25, 4  ;;  %s19_s28 = sshll.u32 %s6611_s27, 4  ;;  %s54_s26 = int_to_ptr.vmem [resolvable:$true] %s53_s26  ;;  %s20_s28 = int_to_ptr.vmem [resolvable:$true] %s19_s28 }
  0x11   :  { %s6507_s29 = scalar_lea.vmem %s54_s26, 36864  ;;  %p6512_p6 = scmp.lt.s32.totalorder %s54_s26, %s54_s26 }
  0x12   :  { %p6508_p5 = scmp.ne.s32.totalorder %s54_s26, %s6507_s29  ;;  %p6513_p7 = scmp.lt.s32.totalorder %s6507_s29, %s6507_s29 }
  0x14   :  { %p6514_p8 = por %p6513_p7, %p6512_p6 }
  0x16   :  { %p6515_p9 = pnand %p6514_p8, %p6508_p5 }
  0x18   :  { %6518 = shalt.err (!%p6515_p9)
}
  0x19   :  { %s6612_s30 = smov 192   ;;  %s6613_s6 = smov 12  }
  0x1a   :  { %59 = dma.hbm_to_vmem [thread:$0]  %s6818_s3, 36864, %s54_s26, [#allocation9], %s6612_s30, %s6612_s30, %s6613_s6  }
  0x1b   :  { %s6527_s1 = scalar_lea.vmem %s20_s28, 384  ;;  %p6532_p11 = scmp.lt.s32.totalorder %s20_s28, %s20_s28 }
  0x1c   :  { %p6528_p10 = scmp.ne.s32.totalorder %s20_s28, %s6527_s1  ;;  %p6533_p12 = scmp.lt.s32.totalorder %s6527_s1, %s6527_s1 }
  0x1e   :  { %p6534_p13 = por %p6533_p12, %p6532_p11 }
  0x20   :  { %p6535_p0 = pnand %p6534_p13, %p6528_p10 }
  0x22   :  { %6538 = shalt.err (!%p6535_p0)
}
  0x23   :  { %25 = dma.hbm_to_vmem [thread:$0]  %s6815_s0, 384, %s20_s28, [#allocation3], %s6612_s30, %s6612_s30, %s6613_s6  }
  0x24   :  { %s6614_s11 = smov [#allocation7]   ;;  %s6615_s13 = smov [#allocation10]  }
  0x25   :  { %s44_s12 = sshll.u32 %s6614_s11, 4  ;;  %s66_s14 = sshll.u32 %s6615_s13, 4  ;;  %s45_s12 = int_to_ptr.vmem [resolvable:$true] %s44_s12  ;;  %s67_s14 = int_to_ptr.vmem [resolvable:$true] %s66_s14 }
  0x26   :  { %s6547_s15 = scalar_lea.vmem %s45_s12, 192  ;;  %p6552_p2 = scmp.lt.s32.totalorder %s45_s12, %s45_s12 }
  0x27   :  { %p6548_p1 = scmp.ne.s32.totalorder %s45_s12, %s6547_s15  ;;  %p6553_p3 = scmp.lt.s32.totalorder %s6547_s15, %s6547_s15 }
  0x29   :  { %p6554_p4 = por %p6553_p3, %p6552_p2 }
  0x2b   :  { %p6555_p5 = pnand %p6554_p4, %p6548_p1 }
  0x2d   :  { %6558 = shalt.err (!%p6555_p5)
}
  0x2e   :  { %47 = dma.hbm_to_vmem [thread:$0]  %s6817_s2, 192, %s45_s12, [#allocation6]  }
  0x2f   :  { %s6567_s17 = scalar_lea.vmem %s67_s14, 48  ;;  %s6571_s0 = scalar_lea.vmem %s67_s14, 64 }
  0x30   :  { %p6568_p6 = scmp.ne.s32.totalorder %s67_s14, %s6567_s17  ;;  %p6572_p7 = scmp.lt.s32.totalorder %s67_s14, %s67_s14 }
  0x31   :  { %p6573_p8 = scmp.lt.s32.totalorder %s6571_s0, %s6567_s17 }
  0x33   :  { %p6574_p9 = por %p6573_p8, %p6572_p7 }
  0x35   :  { %p6575_p10 = pnand %p6574_p9, %p6568_p6 }
  0x37   :  { %6578 = shalt.err (!%p6575_p10)
}
  0x38   :  { %69 = dma.hbm_to_vmem [thread:$0]  %s6819_s4, 48, %s67_s14, [#allocation9]  }
  0x39   :  { %6599 = dma.done.wait [#allocation3], 384  }
  0x3a   :  { %6600 = vsyncadd [#allocation3], 4294966912 }
  0x3b   :  { %6601 = dma.done.wait [#allocation6], 37056  }
  0x3c   :  { %6602 = vsyncadd [#allocation6], 4294930240 }
  0x3d   :  { %6603 = dma.done.wait [#allocation9], 36912  }
  0x3e   :  { %6604 = vsyncadd [#allocation9], 4294930384  ;;  %v6616_v0 = vmov 0   ;;  %v5654_v1 = vld [vmem:[#allocation5 + $0x2a4] ss:$48 sps:$4 sm:$0xff]   ;;  %s6617_s2 = smov [#allocation11]  }
  0x3f   :  { %779 = vmatprep.mubr.bf16.mxu1 %v6616_v0  ;;  %v5656_v2 = vld [vmem:[#allocation5 + $0x8a4] ss:$48 sps:$4 sm:$0xff]   ;;  %704 = vmatprep.subr.bf16.mxu0 %v5654_v1  ;;  %v5658_v3 = vld [vmem:[#allocation5 + $0x2a0] ss:$48 sps:$4 sm:$0xff]   ;;  %v5707_v34 = vld [vmem:[#allocation5 + $0x2ac] ss:$48 sps:$4 sm:$0xff]  }
  0x40   :  { %v5659_v4 = vld [vmem:[#allocation5 + $0x8a0] ss:$48 sps:$4 sm:$0xff]   ;;  %747 = vmatprep.subr.bf16.mxu1 %v5656_v2  ;;  %v5660_v5 = vld [vmem:[#allocation5 + $0x244] ss:$48 sps:$4 sm:$0xff]   ;;  %705 = vmatpush1.bf16.msra.mxu0 %v5658_v3  ;;  %v5705_v36 = vld [vmem:[#allocation5 + $0x2a8] ss:$48 sps:$4 sm:$0xff]  }
  0x41   :  { %748 = vmatpush1.bf16.msra.mxu1 %v5659_v4  ;;  %v5662_v6 = vld [vmem:[#allocation5 + $0x844] ss:$48 sps:$4 sm:$0xff]   ;;  %v5664_v7 = vld [vmem:[#allocation5 + $0x240] ss:$48 sps:$4 sm:$0xff]   ;;  %706 = vmatprep.subr.bf16.mxu0 %v5660_v5  ;;  %v5713_v39 = vld [vmem:[#allocation5 + $0x24c] ss:$48 sps:$4 sm:$0xff]  }
  0x42   :  { %v5665_v8 = vld [vmem:[#allocation5 + $0x840] ss:$48 sps:$4 sm:$0xff]   ;;  %749 = vmatprep.subr.bf16.mxu1 %v5662_v6  ;;  %v5666_v9 = vld [vmem:[#allocation5 + $0x1e4] ss:$48 sps:$4 sm:$0xff]   ;;  %v5711_v40 = vld [vmem:[#allocation5 + $0x248] ss:$48 sps:$4 sm:$0xff]  }
  0x43   :  { %v5668_v10 = vld [vmem:[#allocation5 + $0x7e4] ss:$48 sps:$4 sm:$0xff]   ;;  %v5670_v11 = vld [vmem:[#allocation5 + $0x1e0] ss:$48 sps:$4 sm:$0xff]   ;;  %v5719_v43 = vld [vmem:[#allocation5 + $0x1ec] ss:$48 sps:$4 sm:$0xff]  }
  0x44   :  { %v5671_v12 = vld [vmem:[#allocation5 + $0x7e0] ss:$48 sps:$4 sm:$0xff]   ;;  %707 = vmatpush1.bf16.msra.mxu0 %v5664_v7  ;;  %v5672_v13 = vld [vmem:[#allocation5 + $0x184] ss:$48 sps:$4 sm:$0xff]   ;;  %v5717_v44 = vld [vmem:[#allocation5 + $0x1e8] ss:$48 sps:$4 sm:$0xff]  }
  0x45   :  { %750 = vmatpush1.bf16.msra.mxu1 %v5665_v8  ;;  %708 = vmatprep.subr.bf16.mxu0 %v5666_v9  ;;  %v5674_v14 = vld [vmem:[#allocation5 + $0x784] ss:$48 sps:$4 sm:$0xff]   ;;  %v5676_v15 = vld [vmem:[#allocation5 + $0x180] ss:$48 sps:$4 sm:$0xff]   ;;  %v5725_v47 = vld [vmem:[#allocation5 + $0x18c] ss:$48 sps:$4 sm:$0xff]  }
  0x46   :  { %751 = vmatprep.subr.bf16.mxu1 %v5668_v10  ;;  %v5677_v16 = vld [vmem:[#allocation5 + $0x780] ss:$48 sps:$4 sm:$0xff]   ;;  %v5678_v17 = vld [vmem:[#allocation5 + $0x124] ss:$48 sps:$4 sm:$0xff]   ;;  %v5723_v48 = vld [vmem:[#allocation5 + $0x188] ss:$48 sps:$4 sm:$0xff]  }
  0x47   :  { %v5680_v18 = vld [vmem:[#allocation5 + $0x724] ss:$48 sps:$4 sm:$0xff]   ;;  %v5682_v19 = vld [vmem:[#allocation5 + $0x120] ss:$48 sps:$4 sm:$0xff]   ;;  %v6669_v51 = vld [vmem:[#allocation2 + $0x4] ss:$12 sps:$4 sm:$0xff]  }
  0x48   :  { %709 = vmatpush1.bf16.msra.mxu0 %v5670_v11  ;;  %v5683_v20 = vld [vmem:[#allocation5 + $0x720] ss:$48 sps:$4 sm:$0xff]   ;;  %v5684_v21 = vld [vmem:[#allocation5 + $0xc4] ss:$48 sps:$4 sm:$0xff]   ;;  %v5731_v52 = vld [vmem:[#allocation5 + $0x12c] ss:$48 sps:$4 sm:$0xff]   ;;  %736 = vmatprep.mubr.bf16.mxu0 %v6669_v51 }
  0x49   :  { %752 = vmatpush1.bf16.msra.mxu1 %v5671_v12  ;;  %710 = vmatprep.subr.bf16.mxu0 %v5672_v13  ;;  %v5686_v22 = vld [vmem:[#allocation5 + $0x6c4] ss:$48 sps:$4 sm:$0xff]   ;;  %v5688_v23 = vld [vmem:[#allocation5 + $0xc0] ss:$48 sps:$4 sm:$0xff]   ;;  %v5729_v53 = vld [vmem:[#allocation5 + $0x128] ss:$48 sps:$4 sm:$0xff]  }
  0x4a   :  { %753 = vmatprep.subr.bf16.mxu1 %v5674_v14  ;;  %v5689_v24 = vld [vmem:[#allocation5 + $0x6c0] ss:$48 sps:$4 sm:$0xff]   ;;  %v5690_v25 = vld [vmem:[#allocation5 + $0x64] ss:$48 sps:$4 sm:$0xff]   ;;  %v5737_v56 = vld [vmem:[#allocation5 + $0xcc] ss:$48 sps:$4 sm:$0xff]  }
  0x4b   :  { %v5692_v26 = vld [vmem:[#allocation5 + $0x664] ss:$48 sps:$4 sm:$0xff]   ;;  %v5694_v27 = vld [vmem:[#allocation5 + $0x60] ss:$48 sps:$4 sm:$0xff]   ;;  %v5735_v57 = vld [vmem:[#allocation5 + $0xc8] ss:$48 sps:$4 sm:$0xff]  }
  0x4c   :  { %711 = vmatpush1.bf16.msra.mxu0 %v5676_v15  ;;  %v5695_v28 = vld [vmem:[#allocation5 + $0x660] ss:$48 sps:$4 sm:$0xff]   ;;  %v5696_v29 = vld [vmem:[#allocation5 + $0x4] ss:$48 sps:$4 sm:$0xff]   ;;  %v5743_v60 = vld [vmem:[#allocation5 + $0x6c] ss:$48 sps:$4 sm:$0xff]  }
  0x4d   :  { %754 = vmatpush1.bf16.msra.mxu1 %v5677_v16  ;;  %712 = vmatprep.subr.bf16.mxu0 %v5678_v17  ;;  %v5698_v30 = vld [vmem:[#allocation5 + $0x604] ss:$48 sps:$4 sm:$0xff]   ;;  %v5700_v31 = vld [vmem:[#allocation5] ss:$48 sps:$4 sm:$0xff]   ;;  %v5741_v61 = vld [vmem:[#allocation5 + $0x68] ss:$48 sps:$4 sm:$0xff]  }
  0x4e   :  { %755 = vmatprep.subr.bf16.mxu1 %v5680_v18  ;;  %v5701_v32 = vld [vmem:[#allocation5 + $0x600] ss:$48 sps:$4 sm:$0xff]   ;;  %v5702_v33 = vld [vmem:[#allocation5 + $0x5a4] ss:$48 sps:$4 sm:$0xff]   ;;  %v5749_v1 = vld [vmem:[#allocation5 + $0xc] ss:$48 sps:$4 sm:$0xff]  }
  0x4f   :  { %v6666_v35 = vld [vmem:[#allocation2 + $0x8] ss:$12 sps:$4 sm:$0xff]   ;;  %v5709_v38 = vld [vmem:[#allocation5 + $0x544] ss:$48 sps:$4 sm:$0xff]   ;;  %v5747_v2 = vld [vmem:[#allocation5 + $0x8] ss:$48 sps:$4 sm:$0xff]  }
  0x50   :  { %713 = vmatpush1.bf16.msra.mxu0 %v5682_v19  ;;  %v5708_v37 = vld [vmem:[#allocation5 + $0x5a0] ss:$48 sps:$4 sm:$0xff]   ;;  %v5715_v42 = vld [vmem:[#allocation5 + $0x4e4] ss:$48 sps:$4 sm:$0xff]   ;;  %v5756_v4 = vld [vmem:[#allocation5 + $0x5ac] ss:$48 sps:$4 sm:$0xff]  }
  0x51   :  { %756 = vmatpush1.bf16.msra.mxu1 %v5683_v20  ;;  %714 = vmatprep.subr.bf16.mxu0 %v5684_v21  ;;  %v5714_v41 = vld [vmem:[#allocation5 + $0x540] ss:$48 sps:$4 sm:$0xff]   ;;  %v5721_v46 = vld [vmem:[#allocation5 + $0x484] ss:$48 sps:$4 sm:$0xff]   ;;  %v5759_v5 = vld [vmem:[#allocation5 + $0x8ac] ss:$48 sps:$4 sm:$0xff]  }
  0x52   :  { %757 = vmatprep.subr.bf16.mxu1 %v5686_v22  ;;  %v5720_v45 = vld [vmem:[#allocation5 + $0x4e0] ss:$48 sps:$4 sm:$0xff]   ;;  %v5727_v50 = vld [vmem:[#allocation5 + $0x424] ss:$48 sps:$4 sm:$0xff]   ;;  %v5754_v7 = vld [vmem:[#allocation5 + $0x5a8] ss:$48 sps:$4 sm:$0xff]  }
  0x53   :  { %v5726_v49 = vld [vmem:[#allocation5 + $0x480] ss:$48 sps:$4 sm:$0xff]   ;;  %v5733_v55 = vld [vmem:[#allocation5 + $0x3c4] ss:$48 sps:$4 sm:$0xff]   ;;  %v5757_v8 = vld [vmem:[#allocation5 + $0x8a8] ss:$48 sps:$4 sm:$0xff]  }
  0x54   :  { %715 = vmatpush1.bf16.msra.mxu0 %v5688_v23  ;;  %v5732_v54 = vld [vmem:[#allocation5 + $0x420] ss:$48 sps:$4 sm:$0xff]   ;;  %v5739_v59 = vld [vmem:[#allocation5 + $0x364] ss:$48 sps:$4 sm:$0xff]   ;;  %v5762_v9 = vld [vmem:[#allocation5 + $0x54c] ss:$48 sps:$4 sm:$0xff]  }
  0x55   :  { %758 = vmatpush1.bf16.msra.mxu1 %v5689_v24  ;;  %716 = vmatprep.subr.bf16.mxu0 %v5690_v25  ;;  %v5738_v58 = vld [vmem:[#allocation5 + $0x3c0] ss:$48 sps:$4 sm:$0xff]   ;;  %v5745_v63 = vld [vmem:[#allocation5 + $0x304] ss:$48 sps:$4 sm:$0xff]   ;;  %v5765_v10 = vld [vmem:[#allocation5 + $0x84c] ss:$48 sps:$4 sm:$0xff]  }
  0x56   :  { %759 = vmatprep.subr.bf16.mxu1 %v5692_v26  ;;  %v5744_v62 = vld [vmem:[#allocation5 + $0x360] ss:$48 sps:$4 sm:$0xff]   ;;  %v6673_v6 = vld [vmem:[#allocation2] ss:$12 sps:$4 sm:$0xff]   ;;  %v5768_v13 = vld [vmem:[#allocation5 + $0x4ec] ss:$48 sps:$4 sm:$0xff]  }
  0x57   :  { %v5750_v3 = vld [vmem:[#allocation5 + $0x300] ss:$48 sps:$4 sm:$0xff]   ;;  %v5760_v11 = vld [vmem:[#allocation5 + $0x548] ss:$48 sps:$4 sm:$0xff]   ;;  %v5771_v14 = vld [vmem:[#allocation5 + $0x7ec] ss:$48 sps:$4 sm:$0xff]  }
  0x58   :  { %717 = vmatpush1.bf16.msra.mxu0 %v5694_v27  ;;  %v5763_v12 = vld [vmem:[#allocation5 + $0x848] ss:$48 sps:$4 sm:$0xff]   ;;  %v5774_v17 = vld [vmem:[#allocation5 + $0x48c] ss:$48 sps:$4 sm:$0xff]   ;;  %s4916_s4 = sshll.u32 %s6617_s2, 4  ;;  %s4917_s4 = int_to_ptr.vmem [resolvable:$true] %s4916_s4 }
  0x59   :  { %760 = vmatpush1.bf16.msra.mxu1 %v5695_v28  ;;  %718 = vmatprep.subr.bf16.mxu0 %v5696_v29  ;;  %v5766_v15 = vld [vmem:[#allocation5 + $0x4e8] ss:$48 sps:$4 sm:$0xff]   ;;  %v5777_v18 = vld [vmem:[#allocation5 + $0x78c] ss:$48 sps:$4 sm:$0xff]   ;;  %s6579_s20 = scalar_lea.vmem %s4917_s4, 768  ;;  %p6584_p12 = scmp.lt.s32.totalorder %s4917_s4, %s4917_s4 }
  0x5a   :  { %761 = vmatprep.subr.bf16.mxu1 %v5698_v30  ;;  %v5769_v16 = vld [vmem:[#allocation5 + $0x7e8] ss:$48 sps:$4 sm:$0xff]   ;;  %v5780_v21 = vld [vmem:[#allocation5 + $0x42c] ss:$48 sps:$4 sm:$0xff]   ;;  %p6580_p11 = scmp.ne.s32.totalorder %s4917_s4, %s6579_s20  ;;  %p6585_p13 = scmp.lt.s32.totalorder %s6579_s20, %s6579_s20 }
  0x5b   :  { %v5772_v19 = vld [vmem:[#allocation5 + $0x488] ss:$48 sps:$4 sm:$0xff]   ;;  %v5783_v22 = vld [vmem:[#allocation5 + $0x72c] ss:$48 sps:$4 sm:$0xff]  }
  0x5c   :  { %719 = vmatpush1.bf16.msra.mxu0 %v5700_v31  ;;  %v5775_v20 = vld [vmem:[#allocation5 + $0x788] ss:$48 sps:$4 sm:$0xff]   ;;  %v5786_v25 = vld [vmem:[#allocation5 + $0x3cc] ss:$48 sps:$4 sm:$0xff]   ;;  %p6586_p0 = por %p6585_p13, %p6584_p12 }
  0x5d   :  { %762 = vmatpush1.bf16.msra.mxu1 %v5701_v32  ;;  %720 = vmatprep.subr.bf16.mxu0 %v5702_v33  ;;  %v5778_v23 = vld [vmem:[#allocation5 + $0x428] ss:$48 sps:$4 sm:$0xff]   ;;  %v5789_v26 = vld [vmem:[#allocation5 + $0x6cc] ss:$48 sps:$4 sm:$0xff]  }
  0x5e   :  { %790 = vmatprep.subr.bf16.mxu1 %v5707_v34  ;;  %v5781_v24 = vld [vmem:[#allocation5 + $0x728] ss:$48 sps:$4 sm:$0xff]   ;;  %v5792_v29 = vld [vmem:[#allocation5 + $0x36c] ss:$48 sps:$4 sm:$0xff]   ;;  %p6587_p1 = pnand %p6586_p0, %p6580_p11 }
  0x5f   :  { %v5784_v27 = vld [vmem:[#allocation5 + $0x3c8] ss:$48 sps:$4 sm:$0xff]   ;;  %v5795_v30 = vld [vmem:[#allocation5 + $0x66c] ss:$48 sps:$4 sm:$0xff]  }
  0x60   :  { %780 = vmatmul.mubr.bf16.vlgmr.msra.gmra.mxu1 %v6666_v35  ;;  %721 = vmatpush2.bf16.msra.mxu0 %v5708_v37  ;;  %v5787_v28 = vld [vmem:[#allocation5 + $0x6c8] ss:$48 sps:$4 sm:$0xff]   ;;  %v5798_v33 = vld [vmem:[#allocation5 + $0x30c] ss:$48 sps:$4 sm:$0xff]  }
  0x61   :  { %791 = vmatpush1.bf16.msra.mxu1 %v5705_v36  ;;  %722 = vmatprep.subr.bf16.mxu0 %v5709_v38  ;;  %v5790_v31 = vld [vmem:[#allocation5 + $0x368] ss:$48 sps:$4 sm:$0xff]   ;;  %v5801_v34 = vld [vmem:[#allocation5 + $0x60c] ss:$48 sps:$4 sm:$0xff]   ;;  %v5804_v38 = vld [vmem:[#allocation5 + $0x2b4] ss:$48 sps:$4 sm:$0xff]  }
  0x62   :  { %792 = vmatprep.subr.bf16.mxu1 %v5713_v39  ;;  %822 = vmatprep.mubr.bf16.mxu1 %v6669_v51  ;;  %v5793_v32 = vld [vmem:[#allocation5 + $0x668] ss:$48 sps:$4 sm:$0xff]   ;;  %v5807_v39 = vld [vmem:[#allocation5 + $0x8b4] ss:$48 sps:$4 sm:$0xff]  }
  0x63   :  { %v5796_v36 = vld [vmem:[#allocation5 + $0x308] ss:$48 sps:$4 sm:$0xff]  }
  0x64   :  { %723 = vmatpush2.bf16.msra.mxu0 %v5714_v41  ;;  %v5799_v37 = vld [vmem:[#allocation5 + $0x608] ss:$48 sps:$4 sm:$0xff]   ;;  %v5805_v41 = vld [vmem:[#allocation5 + $0x8b0] ss:$48 sps:$4 sm:$0xff]  }
  0x65   :  { %793 = vmatpush1.bf16.msra.mxu1 %v5711_v40  ;;  %724 = vmatprep.subr.bf16.mxu0 %v5715_v42  ;;  %v5802_v40 = vld [vmem:[#allocation5 + $0x2b0] ss:$48 sps:$4 sm:$0xff]   ;;  %v5810_v42 = vld [vmem:[#allocation5 + $0x254] ss:$48 sps:$4 sm:$0xff]  }
  0x66   :  { %794 = vmatprep.subr.bf16.mxu1 %v5719_v43  ;;  %v5813_v43 = vld [vmem:[#allocation5 + $0x854] ss:$48 sps:$4 sm:$0xff]  }
  0x68   :  { %725 = vmatpush2.bf16.msra.mxu0 %v5720_v45  ;;  %v5811_v45 = vld [vmem:[#allocation5 + $0x850] ss:$48 sps:$4 sm:$0xff]  }
  0x69   :  { %795 = vmatpush1.bf16.msra.mxu1 %v5717_v44  ;;  %726 = vmatprep.subr.bf16.mxu0 %v5721_v46  ;;  %v5808_v44 = vld [vmem:[#allocation5 + $0x250] ss:$48 sps:$4 sm:$0xff]   ;;  %v5816_v46 = vld [vmem:[#allocation5 + $0x1f4] ss:$48 sps:$4 sm:$0xff]  }
  0x6a   :  { %796 = vmatprep.subr.bf16.mxu1 %v5725_v47  ;;  %v5819_v47 = vld [vmem:[#allocation5 + $0x7f4] ss:$48 sps:$4 sm:$0xff]  }
  0x6c   :  { %727 = vmatpush2.bf16.msra.mxu0 %v5726_v49  ;;  %v5817_v49 = vld [vmem:[#allocation5 + $0x7f0] ss:$48 sps:$4 sm:$0xff]  }
  0x6d   :  { %797 = vmatpush1.bf16.msra.mxu1 %v5723_v48  ;;  %728 = vmatprep.subr.bf16.mxu0 %v5727_v50  ;;  %v5814_v48 = vld [vmem:[#allocation5 + $0x1f0] ss:$48 sps:$4 sm:$0xff]   ;;  %v5822_v50 = vld [vmem:[#allocation5 + $0x194] ss:$48 sps:$4 sm:$0xff]  }
  0x6e   :  { %798 = vmatprep.subr.bf16.mxu1 %v5731_v52  ;;  %v5825_v52 = vld [vmem:[#allocation5 + $0x794] ss:$48 sps:$4 sm:$0xff]  }
  0x70   :  { %729 = vmatpush2.bf16.msra.mxu0 %v5732_v54  ;;  %v5823_v54 = vld [vmem:[#allocation5 + $0x790] ss:$48 sps:$4 sm:$0xff]  }
  0x71   :  { %799 = vmatpush1.bf16.msra.mxu1 %v5729_v53  ;;  %730 = vmatprep.subr.bf16.mxu0 %v5733_v55  ;;  %v5820_v53 = vld [vmem:[#allocation5 + $0x190] ss:$48 sps:$4 sm:$0xff]   ;;  %v5828_v55 = vld [vmem:[#allocation5 + $0x134] ss:$48 sps:$4 sm:$0xff]  }
  0x72   :  { %800 = vmatprep.subr.bf16.mxu1 %v5737_v56  ;;  %v5831_v56 = vld [vmem:[#allocation5 + $0x734] ss:$48 sps:$4 sm:$0xff]  }
  0x74   :  { %731 = vmatpush2.bf16.msra.mxu0 %v5738_v58  ;;  %v5829_v58 = vld [vmem:[#allocation5 + $0x730] ss:$48 sps:$4 sm:$0xff]  }
  0x75   :  { %801 = vmatpush1.bf16.msra.mxu1 %v5735_v57  ;;  %732 = vmatprep.subr.bf16.mxu0 %v5739_v59  ;;  %v5826_v57 = vld [vmem:[#allocation5 + $0x130] ss:$48 sps:$4 sm:$0xff]   ;;  %v5834_v59 = vld [vmem:[#allocation5 + $0xd4] ss:$48 sps:$4 sm:$0xff]  }
  0x76   :  { %802 = vmatprep.subr.bf16.mxu1 %v5743_v60  ;;  %v5837_v60 = vld [vmem:[#allocation5 + $0x6d4] ss:$48 sps:$4 sm:$0xff]  }
  0x78   :  { %733 = vmatpush2.bf16.msra.mxu0 %v5744_v62  ;;  %v5835_v62 = vld [vmem:[#allocation5 + $0x6d0] ss:$48 sps:$4 sm:$0xff]  }
  0x79   :  { %803 = vmatpush1.bf16.msra.mxu1 %v5741_v61  ;;  %734 = vmatprep.subr.bf16.mxu0 %v5745_v63  ;;  %v5832_v61 = vld [vmem:[#allocation5 + $0xd0] ss:$48 sps:$4 sm:$0xff]   ;;  %v5840_v63 = vld [vmem:[#allocation5 + $0x74] ss:$48 sps:$4 sm:$0xff]  }
  0x7a   :  { %804 = vmatprep.subr.bf16.mxu1 %v5749_v1  ;;  %v5843_v1 = vld [vmem:[#allocation5 + $0x674] ss:$48 sps:$4 sm:$0xff]  }
  0x7c   :  { %735 = vmatpush2.bf16.msra.mxu0 %v5750_v3  ;;  %v5841_v3 = vld [vmem:[#allocation5 + $0x670] ss:$48 sps:$4 sm:$0xff]  }
  0x7d   :  { %805 = vmatpush1.bf16.msra.mxu1 %v5747_v2  ;;  %833 = vmatprep.subr.bf16.mxu0 %v5759_v5  ;;  %v5838_v2 = vld [vmem:[#allocation5 + $0x70] ss:$48 sps:$4 sm:$0xff]   ;;  %v5849_v5 = vld [vmem:[#allocation5 + $0x614] ss:$48 sps:$4 sm:$0xff]  }
  0x7e   :  { %806 = vmatprep.subr.bf16.mxu1 %v5756_v4  ;;  %v5846_v4 = vld [vmem:[#allocation5 + $0x14] ss:$48 sps:$4 sm:$0xff]  }
  0x7f   :  { %737 = vmatmul.mubr.bf16.vlgmr.msra.gmra.mxu0 %v6673_v6 }
  0x80   :  { %834 = vmatpush1.bf16.msra.mxu0 %v5757_v8  ;;  %865 = vmatprep.mubr.bf16.mxu0 %v6616_v0  ;;  %v5847_v8 = vld [vmem:[#allocation5 + $0x610] ss:$48 sps:$4 sm:$0xff]  }
  0x81   :  { %807 = vmatpush2.bf16.msra.mxu1 %v5754_v7  ;;  %835 = vmatprep.subr.bf16.mxu0 %v5765_v10  ;;  %v5844_v7 = vld [vmem:[#allocation5 + $0x10] ss:$48 sps:$4 sm:$0xff]   ;;  %v5855_v10 = vld [vmem:[#allocation5 + $0x2bc] ss:$48 sps:$4 sm:$0xff]  }
  0x82   :  { %808 = vmatprep.subr.bf16.mxu1 %v5762_v9  ;;  %v5852_v9 = vld [vmem:[#allocation5 + $0x5b4] ss:$48 sps:$4 sm:$0xff]  }
  0x84   :  { %836 = vmatpush1.bf16.msra.mxu0 %v5763_v12  ;;  %v5853_v12 = vld [vmem:[#allocation5 + $0x2b8] ss:$48 sps:$4 sm:$0xff]  }
  0x85   :  { %809 = vmatpush2.bf16.msra.mxu1 %v5760_v11  ;;  %837 = vmatprep.subr.bf16.mxu0 %v5771_v14  ;;  %v5850_v11 = vld [vmem:[#allocation5 + $0x5b0] ss:$48 sps:$4 sm:$0xff]   ;;  %v5861_v14 = vld [vmem:[#allocation5 + $0x25c] ss:$48 sps:$4 sm:$0xff]  }
  0x86   :  { %810 = vmatprep.subr.bf16.mxu1 %v5768_v13  ;;  %v5858_v13 = vld [vmem:[#allocation5 + $0x554] ss:$48 sps:$4 sm:$0xff]  }
  0x88   :  { %838 = vmatpush1.bf16.msra.mxu0 %v5769_v16  ;;  %v5859_v16 = vld [vmem:[#allocation5 + $0x258] ss:$48 sps:$4 sm:$0xff]  }
  0x89   :  { %811 = vmatpush2.bf16.msra.mxu1 %v5766_v15  ;;  %839 = vmatprep.subr.bf16.mxu0 %v5777_v18  ;;  %v5856_v15 = vld [vmem:[#allocation5 + $0x550] ss:$48 sps:$4 sm:$0xff]   ;;  %v5867_v18 = vld [vmem:[#allocation5 + $0x1fc] ss:$48 sps:$4 sm:$0xff]  }
  0x8a   :  { %812 = vmatprep.subr.bf16.mxu1 %v5774_v17  ;;  %v5864_v17 = vld [vmem:[#allocation5 + $0x4f4] ss:$48 sps:$4 sm:$0xff]  }
  0x8c   :  { %840 = vmatpush1.bf16.msra.mxu0 %v5775_v20  ;;  %v5865_v20 = vld [vmem:[#allocation5 + $0x1f8] ss:$48 sps:$4 sm:$0xff]  }
  0x8d   :  { %813 = vmatpush2.bf16.msra.mxu1 %v5772_v19  ;;  %841 = vmatprep.subr.bf16.mxu0 %v5783_v22  ;;  %v5862_v19 = vld [vmem:[#allocation5 + $0x4f0] ss:$48 sps:$4 sm:$0xff]   ;;  %v5873_v22 = vld [vmem:[#allocation5 + $0x19c] ss:$48 sps:$4 sm:$0xff]  }
  0x8e   :  { %814 = vmatprep.subr.bf16.mxu1 %v5780_v21  ;;  %v5870_v21 = vld [vmem:[#allocation5 + $0x494] ss:$48 sps:$4 sm:$0xff]  }
  0x90   :  { %842 = vmatpush1.bf16.msra.mxu0 %v5781_v24  ;;  %v5871_v24 = vld [vmem:[#allocation5 + $0x198] ss:$48 sps:$4 sm:$0xff]  }
  0x91   :  { %815 = vmatpush2.bf16.msra.mxu1 %v5778_v23  ;;  %843 = vmatprep.subr.bf16.mxu0 %v5789_v26  ;;  %v5868_v23 = vld [vmem:[#allocation5 + $0x490] ss:$48 sps:$4 sm:$0xff]  }
  0x92   :  { %816 = vmatprep.subr.bf16.mxu1 %v5786_v25  ;;  %v5876_v25 = vld [vmem:[#allocation5 + $0x434] ss:$48 sps:$4 sm:$0xff]   ;;  %v5874_v26 = vld [vmem:[#allocation5 + $0x430] ss:$48 sps:$4 sm:$0xff]  }
  0x94   :  { %844 = vmatpush1.bf16.msra.mxu0 %v5787_v28  ;;  %v5882_v28 = vld [vmem:[#allocation5 + $0x3d4] ss:$48 sps:$4 sm:$0xff]  }
  0x95   :  { %817 = vmatpush2.bf16.msra.mxu1 %v5784_v27  ;;  %845 = vmatprep.subr.bf16.mxu0 %v5795_v30  ;;  %v5877_v27 = vld [vmem:[#allocation5 + $0x138] ss:$48 sps:$4 sm:$0xff]  }
  0x96   :  { %818 = vmatprep.subr.bf16.mxu1 %v5792_v29  ;;  %v5885_v29 = vld [vmem:[#allocation5 + $0xdc] ss:$48 sps:$4 sm:$0xff]   ;;  %v5883_v30 = vld [vmem:[#allocation5 + $0xd8] ss:$48 sps:$4 sm:$0xff]  }
  0x98   :  { %846 = vmatpush1.bf16.msra.mxu0 %v5793_v32  ;;  %v5891_v32 = vld [vmem:[#allocation5 + $0x7c] ss:$48 sps:$4 sm:$0xff]  }
  0x99   :  { %819 = vmatpush2.bf16.msra.mxu1 %v5790_v31  ;;  %847 = vmatprep.subr.bf16.mxu0 %v5801_v34  ;;  %v5888_v31 = vld [vmem:[#allocation5 + $0x374] ss:$48 sps:$4 sm:$0xff]   ;;  %v5889_v34 = vld [vmem:[#allocation5 + $0x78] ss:$48 sps:$4 sm:$0xff]  }
  0x9a   :  { %820 = vmatprep.subr.bf16.mxu1 %v5798_v33  ;;  %v5886_v33 = vld [vmem:[#allocation5 + $0x370] ss:$48 sps:$4 sm:$0xff]  }
  0x9c   :  { %848 = vmatpush1.bf16.msra.mxu0 %v5799_v37  ;;  %v5897_v37 = vld [vmem:[#allocation5 + $0x1c] ss:$48 sps:$4 sm:$0xff]  }
  0x9d   :  { %821 = vmatpush2.bf16.msra.mxu1 %v5796_v36  ;;  %1614 = vmatprep.subr.bf16.mxu0 %v5804_v38  ;;  %v5894_v36 = vld [vmem:[#allocation5 + $0x314] ss:$48 sps:$4 sm:$0xff]   ;;  %v5892_v38 = vld [vmem:[#allocation5 + $0x310] ss:$48 sps:$4 sm:$0xff]  }
  0x9e   :  { %1657 = vmatprep.subr.bf16.mxu1 %v5807_v39  ;;  %v5895_v39 = vld [vmem:[#allocation5 + $0x18] ss:$48 sps:$4 sm:$0xff]  }
  0x9f   :  { %866 = vmatmul.mubr.bf16.vlgmr.msra.gmra.mxu0 %v6666_v35 }
  0xa0   :  { %823 = vmatmul.mubr.bf16.vlgmr.msra.gmra.mxu1 %v6673_v6  ;;  %1615 = vmatpush1.bf16.msra.mxu0 %v5802_v40  ;;  %v5900_v40 = vld [vmem:[#allocation5 + $0x5bc] ss:$48 sps:$4 sm:$0xff]  }
  0xa1   :  { %1658 = vmatpush1.bf16.msra.mxu1 %v5805_v41  ;;  %1616 = vmatprep.subr.bf16.mxu0 %v5810_v42  ;;  %v5903_v41 = vld [vmem:[#allocation5 + $0x8bc] ss:$48 sps:$4 sm:$0xff]   ;;  %v5898_v42 = vld [vmem:[#allocation5 + $0x5b8] ss:$48 sps:$4 sm:$0xff]  }
  0xa2   :  { %1659 = vmatprep.subr.bf16.mxu1 %v5813_v43  ;;  %1689 = vmatprep.mubr.bf16.mxu1 %v6616_v0  ;;  %v5901_v43 = vld [vmem:[#allocation5 + $0x8b8] ss:$48 sps:$4 sm:$0xff]  }
  0xa3   :  { %1646 = vmatprep.mubr.bf16.mxu0 %v6669_v51 }
  0xa4   :  { %1617 = vmatpush1.bf16.msra.mxu0 %v5808_v44  ;;  %v5906_v44 = vld [vmem:[#allocation5 + $0x55c] ss:$48 sps:$4 sm:$0xff]  }
  0xa5   :  { %1660 = vmatpush1.bf16.msra.mxu1 %v5811_v45  ;;  %1618 = vmatprep.subr.bf16.mxu0 %v5816_v46  ;;  %v5909_v45 = vld [vmem:[#allocation5 + $0x85c] ss:$48 sps:$4 sm:$0xff]   ;;  %v5904_v46 = vld [vmem:[#allocation5 + $0x558] ss:$48 sps:$4 sm:$0xff]  }
  0xa6   :  { %1661 = vmatprep.subr.bf16.mxu1 %v5819_v47  ;;  %v5907_v47 = vld [vmem:[#allocation5 + $0x858] ss:$48 sps:$4 sm:$0xff]  }
  0xa8   :  { %1619 = vmatpush1.bf16.msra.mxu0 %v5814_v48  ;;  %v5912_v48 = vld [vmem:[#allocation5 + $0x4fc] ss:$48 sps:$4 sm:$0xff]  }
  0xa9   :  { %1662 = vmatpush1.bf16.msra.mxu1 %v5817_v49  ;;  %1620 = vmatprep.subr.bf16.mxu0 %v5822_v50  ;;  %v5915_v49 = vld [vmem:[#allocation5 + $0x7fc] ss:$48 sps:$4 sm:$0xff]   ;;  %v5910_v50 = vld [vmem:[#allocation5 + $0x4f8] ss:$48 sps:$4 sm:$0xff]  }
  0xaa   :  { %1663 = vmatprep.subr.bf16.mxu1 %v5825_v52  ;;  %v5913_v52 = vld [vmem:[#allocation5 + $0x7f8] ss:$48 sps:$4 sm:$0xff]  }
  0xac   :  { %1621 = vmatpush1.bf16.msra.mxu0 %v5820_v53  ;;  %v5918_v53 = vld [vmem:[#allocation5 + $0x49c] ss:$48 sps:$4 sm:$0xff]  }
  0xad   :  { %1664 = vmatpush1.bf16.msra.mxu1 %v5823_v54  ;;  %1622 = vmatprep.subr.bf16.mxu0 %v5828_v55  ;;  %v5921_v54 = vld [vmem:[#allocation5 + $0x79c] ss:$48 sps:$4 sm:$0xff]   ;;  %v5916_v55 = vld [vmem:[#allocation5 + $0x498] ss:$48 sps:$4 sm:$0xff]  }
  0xae   :  { %1665 = vmatprep.subr.bf16.mxu1 %v5831_v56  ;;  %v5919_v56 = vld [vmem:[#allocation5 + $0x798] ss:$48 sps:$4 sm:$0xff]  }
  0xb0   :  { %1623 = vmatpush1.bf16.msra.mxu0 %v5826_v57  ;;  %v5924_v57 = vld [vmem:[#allocation5 + $0x43c] ss:$48 sps:$4 sm:$0xff]  }
  0xb1   :  { %1666 = vmatpush1.bf16.msra.mxu1 %v5829_v58  ;;  %1624 = vmatprep.subr.bf16.mxu0 %v5834_v59  ;;  %v5922_v58 = vld [vmem:[#allocation5 + $0x438] ss:$48 sps:$4 sm:$0xff]  }
  0xb2   :  { %1667 = vmatprep.subr.bf16.mxu1 %v5837_v60  ;;  %v5925_v59 = vld [vmem:[#allocation5 + $0x738] ss:$48 sps:$4 sm:$0xff]   ;;  %v5930_v60 = vld [vmem:[#allocation5 + $0x3dc] ss:$48 sps:$4 sm:$0xff]  }
  0xb4   :  { %1625 = vmatpush1.bf16.msra.mxu0 %v5832_v61  ;;  %v5933_v61 = vld [vmem:[#allocation5 + $0x6dc] ss:$48 sps:$4 sm:$0xff]  }
  0xb5   :  { %1668 = vmatpush1.bf16.msra.mxu1 %v5835_v62  ;;  %1626 = vmatprep.subr.bf16.mxu0 %v5840_v63  ;;  %v5928_v62 = vld [vmem:[#allocation5 + $0x3d8] ss:$48 sps:$4 sm:$0xff]  }
  0xb6   :  { %1669 = vmatprep.subr.bf16.mxu1 %v5843_v1  ;;  %v5931_v63 = vld [vmem:[#allocation5 + $0x6d8] ss:$48 sps:$4 sm:$0xff]   ;;  %v5936_v1 = vld [vmem:[#allocation5 + $0x37c] ss:$48 sps:$4 sm:$0xff]  }
  0xb8   :  { %1627 = vmatpush1.bf16.msra.mxu0 %v5838_v2  ;;  %v5939_v2 = vld [vmem:[#allocation5 + $0x67c] ss:$48 sps:$4 sm:$0xff]  }
  0xb9   :  { %1670 = vmatpush1.bf16.msra.mxu1 %v5841_v3  ;;  %1628 = vmatprep.subr.bf16.mxu0 %v5846_v4  ;;  %v5934_v3 = vld [vmem:[#allocation5 + $0x378] ss:$48 sps:$4 sm:$0xff]  }
  0xba   :  { %1671 = vmatprep.subr.bf16.mxu1 %v5849_v5  ;;  %v5937_v4 = vld [vmem:[#allocation5 + $0x678] ss:$48 sps:$4 sm:$0xff]   ;;  %v5942_v5 = vld [vmem:[#allocation5 + $0x31c] ss:$48 sps:$4 sm:$0xff]  }
  0xbc   :  { %1629 = vmatpush1.bf16.msra.mxu0 %v5844_v7  ;;  %v5945_v7 = vld [vmem:[#allocation5 + $0x61c] ss:$48 sps:$4 sm:$0xff]  }
  0xbd   :  { %1672 = vmatpush1.bf16.msra.mxu1 %v5847_v8  ;;  %1630 = vmatprep.subr.bf16.mxu0 %v5852_v9  ;;  %v5940_v8 = vld [vmem:[#allocation5 + $0x318] ss:$48 sps:$4 sm:$0xff]  }
  0xbe   :  { %1700 = vmatprep.subr.bf16.mxu1 %v5855_v10  ;;  %v5943_v9 = vld [vmem:[#allocation5 + $0x618] ss:$48 sps:$4 sm:$0xff]  }
  0xbf   :  { %v5948_v10 = vld [vmem:[#allocation8 + $0x3ac] ss:$12 sps:$4 sm:$0xff]  }
  0xc0   :  { %1690 = vmatmul.mubr.bf16.vlgmr.msra.gmra.mxu1 %v6666_v35  ;;  %1631 = vmatpush2.bf16.msra.mxu0 %v5850_v11  ;;  %v5879_v35 = vld [vmem:[#allocation5 + $0x13c] ss:$48 sps:$4 sm:$0xff]   ;;  %v5946_v11 = vld [vmem:[#allocation8 + $0x3a8] ss:$12 sps:$4 sm:$0xff]  }
  0xc1   :  { %1701 = vmatpush1.bf16.msra.mxu1 %v5853_v12  ;;  %1632 = vmatprep.subr.bf16.mxu0 %v5858_v13  ;;  %v5951_v12 = vld [vmem:[#allocation8 + $0x394] ss:$12 sps:$4 sm:$0xff]   ;;  %v6474_v13 = vld [vmem:[#allocation2] ss:$12 sps:$4 sm:$0xff]  }
  0xc2   :  { %1702 = vmatprep.subr.bf16.mxu1 %v5861_v14  ;;  %1732 = vmatprep.mubr.bf16.mxu1 %v6669_v51  ;;  %v5880_v51 = vld [vmem:[#allocation5 + $0x3d0] ss:$48 sps:$4 sm:$0xff]  }
  0xc3   :  { %v6475_v14 = vld [vmem:[#allocation2 + $0x8] ss:$12 sps:$4 sm:$0xff]  }
  0xc4   :  { %1633 = vmatpush2.bf16.msra.mxu0 %v5856_v15  ;;  %v5949_v15 = vld [vmem:[#allocation8 + $0x390] ss:$12 sps:$4 sm:$0xff]  }
  0xc5   :  { %1703 = vmatpush1.bf16.msra.mxu1 %v5859_v16  ;;  %1634 = vmatprep.subr.bf16.mxu0 %v5864_v17  ;;  %v5954_v16 = vld [vmem:[#allocation8 + $0x37c] ss:$12 sps:$4 sm:$0xff]   ;;  %v5952_v17 = vld [vmem:[#allocation8 + $0x378] ss:$12 sps:$4 sm:$0xff]  }
  0xc6   :  { %1704 = vmatprep.subr.bf16.mxu1 %v5867_v18  ;;  %v5957_v18 = vld [vmem:[#allocation8 + $0x364] ss:$12 sps:$4 sm:$0xff]  }
  0xc8   :  { %1635 = vmatpush2.bf16.msra.mxu0 %v5862_v19  ;;  %v5973_v19 = vld [vmem:[#allocation8 + $0x528] ss:$12 sps:$4 sm:$0xff]  }
  0xc9   :  { %1705 = vmatpush1.bf16.msra.mxu1 %v5865_v20  ;;  %1636 = vmatprep.subr.bf16.mxu0 %v5870_v21  ;;  %v5975_v20 = vld [vmem:[#allocation8 + $0x52c] ss:$12 sps:$4 sm:$0xff]  }
  0xca   :  { %1706 = vmatprep.subr.bf16.mxu1 %v5873_v22  ;;  %v5955_v21 = vld [vmem:[#allocation8 + $0x360] ss:$12 sps:$4 sm:$0xff]  }
  0xcb   :  { %v5981_v22 = vld [vmem:[#allocation8 + $0x514] ss:$12 sps:$4 sm:$0xff]  }
  0xcc   :  { %1637 = vmatpush2.bf16.msra.mxu0 %v5868_v23  ;;  %v5960_v23 = vld [vmem:[#allocation8 + $0x34c] ss:$12 sps:$4 sm:$0xff]  }
  0xcd   :  { %1707 = vmatpush1.bf16.msra.mxu1 %v5871_v24  ;;  %1638 = vmatprep.subr.bf16.mxu0 %v5876_v25  ;;  %v5979_v24 = vld [vmem:[#allocation8 + $0x510] ss:$12 sps:$4 sm:$0xff]  }
  0xce   :  { %1708 = vmatprep.subr.bf16.mxu1 %v5879_v35  ;;  %v5987_v25 = vld [vmem:[#allocation8 + $0x4fc] ss:$12 sps:$4 sm:$0xff]  }
  0xcf   :  { %v5958_v35 = vld [vmem:[#allocation8 + $0x348] ss:$12 sps:$4 sm:$0xff]  }
  0xd0   :  { %1639 = vmatpush2.bf16.msra.mxu0 %v5874_v26  ;;  %v5963_v26 = vld [vmem:[#allocation8 + $0x334] ss:$12 sps:$4 sm:$0xff]  }
  0xd1   :  { %1709 = vmatpush1.bf16.msra.mxu1 %v5877_v27  ;;  %1640 = vmatprep.subr.bf16.mxu0 %v5882_v28  ;;  %v5985_v27 = vld [vmem:[#allocation8 + $0x4f8] ss:$12 sps:$4 sm:$0xff]  }
  0xd2   :  { %1710 = vmatprep.subr.bf16.mxu1 %v5885_v29  ;;  %v5993_v28 = vld [vmem:[#allocation8 + $0x4e4] ss:$12 sps:$4 sm:$0xff]  }
  0xd3   :  { %v5961_v29 = vld [vmem:[#allocation8 + $0x330] ss:$12 sps:$4 sm:$0xff]  }
  0xd4   :  { %1641 = vmatpush2.bf16.msra.mxu0 %v5880_v51  ;;  %v5966_v51 = vld [vmem:[#allocation8 + $0x31c] ss:$12 sps:$4 sm:$0xff]  }
  0xd5   :  { %1711 = vmatpush1.bf16.msra.mxu1 %v5883_v30  ;;  %1642 = vmatprep.subr.bf16.mxu0 %v5888_v31  ;;  %v5991_v30 = vld [vmem:[#allocation8 + $0x4e0] ss:$12 sps:$4 sm:$0xff]  }
  0xd6   :  { %1712 = vmatprep.subr.bf16.mxu1 %v5891_v32  ;;  %v5999_v31 = vld [vmem:[#allocation8 + $0x4cc] ss:$12 sps:$4 sm:$0xff]  }
  0xd7   :  { %v5964_v32 = vld [vmem:[#allocation8 + $0x318] ss:$12 sps:$4 sm:$0xff]  }
  0xd8   :  { %1643 = vmatpush2.bf16.msra.mxu0 %v5886_v33  ;;  %v5969_v33 = vld [vmem:[#allocation8 + $0x304] ss:$12 sps:$4 sm:$0xff]  }
  0xd9   :  { %1713 = vmatpush1.bf16.msra.mxu1 %v5889_v34  ;;  %1644 = vmatprep.subr.bf16.mxu0 %v5894_v36  ;;  %v5997_v34 = vld [vmem:[#allocation8 + $0x4c8] ss:$12 sps:$4 sm:$0xff]   ;;  %v5967_v36 = vld [vmem:[#allocation8 + $0x300] ss:$12 sps:$4 sm:$0xff]  }
  0xda   :  { %1714 = vmatprep.subr.bf16.mxu1 %v5897_v37  ;;  %v5972_v37 = vld [vmem:[#allocation8 + $0x46c] ss:$12 sps:$4 sm:$0xff]  }
  0xdc   :  { %1645 = vmatpush2.bf16.msra.mxu0 %v5892_v38  ;;  %v5970_v38 = vld [vmem:[#allocation8 + $0x468] ss:$12 sps:$4 sm:$0xff]  }
  0xdd   :  { %1715 = vmatpush1.bf16.msra.mxu1 %v5895_v39  ;;  %1743 = vmatprep.subr.bf16.mxu0 %v5903_v41  ;;  %v5978_v39 = vld [vmem:[#allocation8 + $0x454] ss:$12 sps:$4 sm:$0xff]  }
  0xde   :  { %1716 = vmatprep.subr.bf16.mxu1 %v5900_v40  ;;  %v5976_v40 = vld [vmem:[#allocation8 + $0x450] ss:$12 sps:$4 sm:$0xff]   ;;  %v6005_v41 = vld [vmem:[#allocation8 + $0x4b4] ss:$12 sps:$4 sm:$0xff]  }
  0xdf   :  { %1647 = vmatmul.mubr.bf16.vlgmr.msra.gmra.mxu0 %v6673_v6  ;;  %v5927_v6 = vld [vmem:[#allocation5 + $0x73c] ss:$48 sps:$4 sm:$0xff]  }
  0xe0   :  { %1744 = vmatpush1.bf16.msra.mxu0 %v5901_v43  ;;  %1775 = vmatprep.mubr.bf16.mxu0 %v6616_v0  ;;  %v6003_v43 = vld [vmem:[#allocation8 + $0x4b0] ss:$12 sps:$4 sm:$0xff]  }
  0xe1   :  { %1717 = vmatpush2.bf16.msra.mxu1 %v5898_v42  ;;  %1745 = vmatprep.subr.bf16.mxu0 %v5909_v45  ;;  %v5984_v42 = vld [vmem:[#allocation8 + $0x43c] ss:$12 sps:$4 sm:$0xff]  }
  0xe2   :  { %1718 = vmatprep.subr.bf16.mxu1 %v5906_v44  ;;  %v5982_v44 = vld [vmem:[#allocation8 + $0x438] ss:$12 sps:$4 sm:$0xff]   ;;  %v6011_v45 = vld [vmem:[#allocation8 + $0x49c] ss:$12 sps:$4 sm:$0xff]  }
  0xe4   :  { %1746 = vmatpush1.bf16.msra.mxu0 %v5907_v47  ;;  %v6009_v47 = vld [vmem:[#allocation8 + $0x498] ss:$12 sps:$4 sm:$0xff]  }
  0xe5   :  { %1719 = vmatpush2.bf16.msra.mxu1 %v5904_v46  ;;  %1747 = vmatprep.subr.bf16.mxu0 %v5915_v49  ;;  %v5990_v46 = vld [vmem:[#allocation8 + $0x424] ss:$12 sps:$4 sm:$0xff]  }
  0xe6   :  { %1720 = vmatprep.subr.bf16.mxu1 %v5912_v48  ;;  %v5988_v48 = vld [vmem:[#allocation8 + $0x420] ss:$12 sps:$4 sm:$0xff]   ;;  %v6017_v49 = vld [vmem:[#allocation8 + $0x484] ss:$12 sps:$4 sm:$0xff]  }
  0xe8   :  { %1748 = vmatpush1.bf16.msra.mxu0 %v5913_v52  ;;  %v6015_v52 = vld [vmem:[#allocation8 + $0x480] ss:$12 sps:$4 sm:$0xff]  }
  0xe9   :  { %1721 = vmatpush2.bf16.msra.mxu1 %v5910_v50  ;;  %1749 = vmatprep.subr.bf16.mxu0 %v5921_v54  ;;  %v5996_v50 = vld [vmem:[#allocation8 + $0x40c] ss:$12 sps:$4 sm:$0xff]  }
  0xea   :  { %1722 = vmatprep.subr.bf16.mxu1 %v5918_v53  ;;  %v5994_v53 = vld [vmem:[#allocation8 + $0x408] ss:$12 sps:$4 sm:$0xff]   ;;  %v6020_v54 = vld [vmem:[#allocation8 + $0x5ec] ss:$12 sps:$4 sm:$0xff]  }
  0xec   :  { %1750 = vmatpush1.bf16.msra.mxu0 %v5919_v56  ;;  %v6018_v56 = vld [vmem:[#allocation8 + $0x5e8] ss:$12 sps:$4 sm:$0xff]  }
  0xed   :  { %1723 = vmatpush2.bf16.msra.mxu1 %v5916_v55  ;;  %1751 = vmatprep.subr.bf16.mxu0 %v5927_v6  ;;  %v6002_v55 = vld [vmem:[#allocation8 + $0x3f4] ss:$12 sps:$4 sm:$0xff]   ;;  %v6000_v6 = vld [vmem:[#allocation8 + $0x3f0] ss:$12 sps:$4 sm:$0xff]  }
  0xee   :  { %1724 = vmatprep.subr.bf16.mxu1 %v5924_v57  ;;  %v188_v57 = vlaneseq }
  0xf0   :  { %1752 = vmatpush1.bf16.msra.mxu0 %v5925_v59  ;;  %v6025_v59 = vld [vmem:[#allocation8 + $0x5d4] ss:$12 sps:$4 sm:$0xff]  }
  0xf1   :  { %1725 = vmatpush2.bf16.msra.mxu1 %v5922_v58  ;;  %1753 = vmatprep.subr.bf16.mxu0 %v5933_v61  ;;  %v6023_v58 = vld [vmem:[#allocation8 + $0x5d0] ss:$12 sps:$4 sm:$0xff]   ;;  %v6685_v61 = vshrl.u32 %v188_v57, 7 }
  0xf2   :  { %1726 = vmatprep.subr.bf16.mxu1 %v5930_v60  ;;  %v6008_v60 = vld [vmem:[#allocation8 + $0x3dc] ss:$12 sps:$4 sm:$0xff]  }
  0xf4   :  { %1754 = vmatpush1.bf16.msra.mxu0 %v5931_v63  ;;  %v6028_v63 = vld [vmem:[#allocation8 + $0x5b8] ss:$12 sps:$4 sm:$0xff]  }
  0xf5   :  { %1727 = vmatpush2.bf16.msra.mxu1 %v5928_v62  ;;  %1755 = vmatprep.subr.bf16.mxu0 %v5939_v2  ;;  %v6006_v62 = vld [vmem:[#allocation8 + $0x3d8] ss:$12 sps:$4 sm:$0xff]  }
  0xf6   :  { %1728 = vmatprep.subr.bf16.mxu1 %v5936_v1  ;;  %v6030_v1 = vld [vmem:[#allocation8 + $0x5bc] ss:$12 sps:$4 sm:$0xff]   ;;  %v6014_v2 = vld [vmem:[#allocation8 + $0x3c4] ss:$12 sps:$4 sm:$0xff]  }
  0xf8   :  { %1756 = vmatpush1.bf16.msra.mxu0 %v5937_v4  ;;  %v6690_v4 = vsub.s32 0, %v6685_v61 }
  0xf9   :  { %1729 = vmatpush2.bf16.msra.mxu1 %v5934_v3  ;;  %1757 = vmatprep.subr.bf16.mxu0 %v5945_v7  ;;  %v6687_v3 = vld [vmem:[#allocation7] sm:$0xf]  ;;  %v6033_v7 = vld [vmem:[#allocation8 + $0x5a0] ss:$12 sps:$4 sm:$0xff]  }
  0xfa   :  { %1730 = vmatprep.subr.bf16.mxu1 %v5942_v5  ;;  %v6012_v5 = vld [vmem:[#allocation8 + $0x3c0] ss:$12 sps:$4 sm:$0xff]  }
  0xfc   :  { %1758 = vmatpush1.bf16.msra.mxu0 %v5943_v9  ;;  %v6021_v9 = vld [vmem:[#allocation8 + $0x470] ss:$12 sps:$4 sm:$0xff]  }
  0xfd   :  { %1731 = vmatpush2.bf16.msra.mxu1 %v5940_v8  ;;  %2438 = vmatprep.subr.bf16.mxu0 %v5948_v10  ;;  %v6035_v8 = vld [vmem:[#allocation8 + $0x5a4] ss:$12 sps:$4 sm:$0xff]   ;;  %v191_v10 = vrot.slane %v6687_v3, %v6690_v4 }
  0xfe   :  { %2481 = vmatprep.subr.bf16.mxu1 %v5975_v20  ;;  %v6043_v20 = vld [vmem:[#allocation8 + $0x570] ss:$12 sps:$4 sm:$0xff]  }
  0xff   :  { %1776 = vmatmul.mubr.bf16.vlgmr.msra.gmra.mxu0 %v6475_v14 }
 0x100   :  { %1733 = vmatmul.mubr.bf16.vlgmr.msra.gmra.mxu1 %v6474_v13  ;;  %2439 = vmatpush1.bf16.msra.mxu0 %v5946_v11  ;;  %v6038_v11 = vld [vmem:[#allocation8 + $0x588] ss:$12 sps:$4 sm:$0xff]  }
 0x101   :  { %2440 = vmatprep.subr.bf16.mxu0 %v5951_v12  ;;  %2482 = vmatpush1.bf16.msra.mxu1 %v5973_v19  ;;  %v6040_v12 = vld [vmem:[#allocation8 + $0x58c] ss:$12 sps:$4 sm:$0xff]  }
 0x102   :  { %2483 = vmatprep.subr.bf16.mxu1 %v5981_v22 }
 0x104   :  { %2441 = vmatpush1.bf16.msra.mxu0 %v5949_v15 }
 0x105   :  { %2442 = vmatprep.subr.bf16.mxu0 %v5954_v16  ;;  %2484 = vmatpush1.bf16.msra.mxu1 %v5979_v24  ;;  %v6050_v24 = vld [vmem:[#allocation8 + $0x55c] ss:$12 sps:$4 sm:$0xff]  }
 0x106   :  { %2485 = vmatprep.subr.bf16.mxu1 %v5987_v25 }
 0x108   :  { %2443 = vmatpush1.bf16.msra.mxu0 %v5952_v17 }
 0x109   :  { %2444 = vmatprep.subr.bf16.mxu0 %v5957_v18  ;;  %2486 = vmatpush1.bf16.msra.mxu1 %v5985_v27  ;;  %v6045_v18 = vld [vmem:[#allocation8 + $0x574] ss:$12 sps:$4 sm:$0xff]  }
 0x10a   :  { %2487 = vmatprep.subr.bf16.mxu1 %v5993_v28  ;;  %v6055_v28 = vld [vmem:[#allocation8 + $0x544] ss:$12 sps:$4 sm:$0xff]  }
 0x10c   :  { %2445 = vmatpush1.bf16.msra.mxu0 %v5955_v21 }
 0x10d   :  { %2446 = vmatprep.subr.bf16.mxu0 %v5960_v23  ;;  %2488 = vmatpush1.bf16.msra.mxu1 %v5991_v30  ;;  %v6058_v30 = vld [vmem:[#allocation8 + $0x5f0] ss:$12 sps:$4 sm:$0xff]  }
 0x10e   :  { %2489 = vmatprep.subr.bf16.mxu1 %v5999_v31  ;;  %v6701_v31 = vsub.s32 2, %v6685_v61 }
 0x110   :  { %2447 = vmatpush1.bf16.msra.mxu0 %v5958_v35  ;;  %v6048_v35 = vld [vmem:[#allocation8 + $0x558] ss:$12 sps:$4 sm:$0xff]  }
 0x111   :  { %2448 = vmatprep.subr.bf16.mxu0 %v5963_v26  ;;  %2490 = vmatpush1.bf16.msra.mxu1 %v5997_v34 }
 0x112   :  { %2491 = vmatprep.subr.bf16.mxu1 %v6005_v41 }
 0x114   :  { %2449 = vmatpush1.bf16.msra.mxu0 %v5961_v29 }
 0x115   :  { %2450 = vmatprep.subr.bf16.mxu0 %v5966_v51  ;;  %2492 = vmatpush1.bf16.msra.mxu1 %v6003_v43  ;;  %v6053_v51 = vld [vmem:[#allocation8 + $0x540] ss:$12 sps:$4 sm:$0xff]  }
 0x116   :  { %2493 = vmatprep.subr.bf16.mxu1 %v6011_v45 }
 0x118   :  { %2451 = vmatpush1.bf16.msra.mxu0 %v5964_v32  ;;  %v6704_v32 = vsub.s32 3, %v6685_v61 }
 0x119   :  { %2452 = vmatprep.subr.bf16.mxu0 %v5969_v33  ;;  %2494 = vmatpush1.bf16.msra.mxu1 %v6009_v47  ;;  %v199_v33 = vrot.slane %v6687_v3, %v6701_v31 }
 0x11a   :  { %2495 = vmatprep.subr.bf16.mxu1 %v6017_v49 }
 0x11c   :  { %2453 = vmatpush1.bf16.msra.mxu0 %v5967_v36 }
 0x11d   :  { %2454 = vmatprep.subr.bf16.mxu0 %v5972_v37  ;;  %2496 = vmatpush1.bf16.msra.mxu1 %v6015_v52  ;;  %v203_v37 = vrot.slane %v6687_v3, %v6704_v32 }
 0x11e   :  { %2497 = vmatprep.subr.bf16.mxu1 %v6020_v54 }
 0x120   :  { %2455 = vmatpush2.bf16.msra.mxu0 %v5970_v38  ;;  %v781_v13 = vpop.f32.mrf.mxu1 }
 0x121   :  { %2456 = vmatprep.subr.bf16.mxu0 %v5978_v39  ;;  %2498 = vmatpush2.bf16.msra.mxu1 %v6018_v56 }
 0x122   :  { %2499 = vmatprep.subr.bf16.mxu1 %v6025_v59  ;;  %v6694_v16 = vpop.f32.mrf.mxu1 }
 0x124   :  { %2457 = vmatpush2.bf16.msra.mxu0 %v5976_v40  ;;  %v785_v23 = vpop.f32.mrf.mxu1 }
 0x125   :  { %2458 = vmatprep.subr.bf16.mxu0 %v5984_v42  ;;  %2500 = vmatpush2.bf16.msra.mxu1 %v6023_v58 }
 0x126   :  { %2501 = vmatprep.subr.bf16.mxu1 %v6030_v1  ;;  %v6708_v34 = vpop.f32.mrf.mxu1 }
 0x128   :  { %2459 = vmatpush2.bf16.msra.mxu0 %v5982_v44 }
 0x129   :  { %2460 = vmatprep.subr.bf16.mxu0 %v5990_v46  ;;  %2502 = vmatpush2.bf16.msra.mxu1 %v6028_v63  ;;  %v1112_v63 = vld [vmem:[#allocation7 + $0x4] sm:$0xf] }
 0x12a   :  { %2503 = vmatprep.subr.bf16.mxu1 %v6035_v8 }
 0x12c   :  { %2461 = vmatpush2.bf16.msra.mxu0 %v5988_v48 }
 0x12d   :  { %2462 = vmatprep.subr.bf16.mxu0 %v5996_v50  ;;  %2504 = vmatpush2.bf16.msra.mxu1 %v6033_v7 }
 0x12e   :  { %2505 = vmatprep.subr.bf16.mxu1 %v6040_v12 }
 0x130   :  { %2463 = vmatpush2.bf16.msra.mxu0 %v5994_v53 }
 0x131   :  { %2464 = vmatprep.subr.bf16.mxu0 %v6002_v55  ;;  %2506 = vmatpush2.bf16.msra.mxu1 %v6038_v11 }
 0x132   :  { %2507 = vmatprep.subr.bf16.mxu1 %v6045_v18 }
 0x134   :  { %2465 = vmatpush2.bf16.msra.mxu0 %v6000_v6 }
 0x135   :  { %2466 = vmatprep.subr.bf16.mxu0 %v6008_v60  ;;  %2508 = vmatpush2.bf16.msra.mxu1 %v6043_v20 }
 0x136   :  { %2509 = vmatprep.subr.bf16.mxu1 %v6050_v24 }
 0x138   :  { %2467 = vmatpush2.bf16.msra.mxu0 %v6006_v62  ;;  %v6719_v62 = vsub.s32 1, %v6685_v61 }
 0x139   :  { %2468 = vmatprep.subr.bf16.mxu0 %v6014_v2  ;;  %2510 = vmatpush2.bf16.msra.mxu1 %v6048_v35 }
 0x13a   :  { %2511 = vmatprep.subr.bf16.mxu1 %v6055_v28  ;;  %v1121_v1 = vrot.slane %v1112_v63, %v6719_v62  ;;  %v6026_v28 = vld [vmem:[#allocation8 + $0x458] ss:$12 sps:$4 sm:$0xff]  }
 0x13c   :  { %2469 = vmatpush2.bf16.msra.mxu0 %v6012_v5  ;;  %v1117_v5 = vrot.slane %v1112_v63, %v6690_v4 }
 0x13d   :  { %5509 = vmatprep.subr.bf16.mxu0 %v6021_v9  ;;  %2512 = vmatpush2.bf16.msra.mxu1 %v6053_v51  ;;  %v6027_v51 = vld [vmem:[#allocation8 + $0x398] ss:$12 sps:$4 sm:$0xff]  }
 0x13e   :  { %5531 = vmatprep.subr.bf16.mxu1 %v6058_v30  ;;  %v6031_v30 = vld [vmem:[#allocation8 + $0x440] ss:$12 sps:$4 sm:$0xff]  }
 0x13f   :  { %v738_v14 = vpop.f32.mrf.mxu0 }
 0x140   :  { %v739_v15 = vadd.f32 %v738_v14, %v191_v10 }
 0x141   :  { %v6696_v17 = vpop.f32.mrf.mxu0 }
 0x142   :  { %v782_v19 = vadd.f32 %v781_v13, %v739_v15 }
 0x143   :  { %v742_v21 = vpop.f32.mrf.mxu0 }
 0x144   :  { %v743_v22 = vadd.f32 %v742_v21, %v191_v10  ;;  %v876_v26 = vmax.f32 %v782_v19, 0.0 }
 0x145   :  { %v6710_v36 = vpop.f32.mrf.mxu0 }
 0x146   :  { %v786_v25 = vadd.f32 %v785_v23, %v743_v22 }
 0x148   :  { %v880_v27 = vmax.f32 %v786_v25, 0.0 }
 0x14a   :  { %v6698_v29 = vpack.c.bf16 %v880_v27, %v876_v26  ;;  %v6022_v26 = vld [vmem:[#allocation8 + $0x3b0] ss:$12 sps:$4 sm:$0xff]  }
 0x15f   :  { %v867_v39 = vpop.f32.mrf.mxu0 }
 0x160   :  { %v824_v38 = vpop.f32.mrf.mxu1 }
 0x161   :  { %v825_v40 = vadd.f32 %v824_v38, %v199_v33  ;;  %v869_v42 = vpop.f32.mrf.mxu0  ;;  %v6037_v38 = vld [vmem:[#allocation8 + $0x368] ss:$12 sps:$4 sm:$0xff]  }
 0x162   :  { %v826_v41 = vpop.f32.mrf.mxu1 }
 0x163   :  { %v868_v43 = vadd.f32 %v867_v39, %v825_v40  ;;  %v827_v44 = vadd.f32 %v826_v41, %v203_v37  ;;  %v871_v46 = vpop.f32.mrf.mxu0  ;;  %v6041_v39 = vld [vmem:[#allocation8 + $0x410] ss:$12 sps:$4 sm:$0xff]   ;;  %v6046_v41 = vld [vmem:[#allocation8 + $0x3f8] ss:$12 sps:$4 sm:$0xff]  }
 0x164   :  { %v828_v45 = vpop.f32.mrf.mxu1  ;;  %v6042_v40 = vld [vmem:[#allocation8 + $0x350] ss:$12 sps:$4 sm:$0xff]  }
 0x165   :  { %v870_v47 = vadd.f32 %v869_v42, %v827_v44  ;;  %v829_v48 = vadd.f32 %v828_v45, %v199_v33  ;;  %v873_v53 = vpop.f32.mrf.mxu0  ;;  %v878_v54 = vmax.f32 %v868_v43, 0.0  ;;  %v6032_v33 = vld [vmem:[#allocation8 + $0x380] ss:$12 sps:$4 sm:$0xff]   ;;  %v1129_v42 = vrot.slane %v1112_v63, %v6704_v32 }
 0x166   :  { %v830_v49 = vpop.f32.mrf.mxu1  ;;  %v1125_v43 = vrot.slane %v1112_v63, %v6701_v31 }
 0x167   :  { %v872_v50 = vadd.f32 %v871_v46, %v829_v48  ;;  %v831_v52 = vadd.f32 %v830_v49, %v203_v37  ;;  %v879_v57 = vmax.f32 %v870_v47, 0.0  ;;  %v6036_v37 = vld [vmem:[#allocation8 + $0x428] ss:$12 sps:$4 sm:$0xff]   ;;  %v6047_v46 = vld [vmem:[#allocation8 + $0x338] ss:$12 sps:$4 sm:$0xff]   ;;  %v195_v47 = vrot.slane %v6687_v3, %v6719_v62 }
 0x169   :  { %v882_v55 = vmax.f32 %v872_v50, 0.0  ;;  %v874_v56 = vadd.f32 %v873_v53, %v831_v52  ;;  %v6051_v50 = vld [vmem:[#allocation8 + $0x3e0] ss:$12 sps:$4 sm:$0xff]   ;;  %v745_v53 = vadd.f32 %v6710_v36, %v195_v47  ;;  %v6057_v36 = vld [vmem:[#allocation8 + $0x308] ss:$12 sps:$4 sm:$0xff]  }
 0x16b   :  { %v6714_v6 = vpack.c.bf16 %v882_v55, %v878_v54  ;;  %v883_v58 = vmax.f32 %v874_v56, 0.0 }
 0x16d   :  { %v6716_v59 = vpack.c.bf16 %v883_v58, %v879_v57  ;;  %v6052_v58 = vld [vmem:[#allocation8 + $0x320] ss:$12 sps:$4 sm:$0xff]  }
 0x180   :  { %v1691_v60 = vpop.f32.mrf.mxu1 }
 0x182   :  { %v1693_v2 = vpop.f32.mrf.mxu1 }
 0x184   :  { %v1695_v10 = vpop.f32.mrf.mxu1 }
 0x186   :  { %v1697_v20 = vpop.f32.mrf.mxu1 }
 0x19f   :  { %v1648_v7 = vpop.f32.mrf.mxu0 }
 0x1a0   :  { %v1649_v11 = vadd.f32 %v1648_v7, %v1117_v5  ;;  %v788_v7 = vadd.f32 %v6708_v34, %v745_v53  ;;  %v6094_v53 = vld [vmem:[#allocation8] ss:$12 sps:$4 sm:$0xff]  }
 0x1a1   :  { %v1650_v8 = vpop.f32.mrf.mxu0 }
 0x1a2   :  { %v1651_v9 = vadd.f32 %v1650_v8, %v1121_v1  ;;  %v1692_v61 = vadd.f32 %v1691_v60, %v1649_v11  ;;  %v741_v60 = vadd.f32 %v6696_v17, %v195_v47  ;;  %v6091_v47 = vld [vmem:[#allocation8 + $0x1c] ss:$12 sps:$4 sm:$0xff]  }
 0x1a3   :  { %v1652_v12 = vpop.f32.mrf.mxu0 }
 0x1a4   :  { %v1653_v13 = vadd.f32 %v1652_v12, %v1117_v5  ;;  %v1694_v15 = vadd.f32 %v1693_v2, %v1651_v9  ;;  %v1786_v25 = vmax.f32 %v1692_v61, 0.0  ;;  %v784_v11 = vadd.f32 %v6694_v16, %v741_v60  ;;  %v6062_v61 = vld [vmem:[#allocation8 + $0x530] ss:$12 sps:$4 sm:$0xff]   ;;  %v6106_v60 = vld [vmem:[#allocation8 + $0x154] ss:$12 sps:$4 sm:$0xff]  }
 0x1a5   :  { %v1654_v14 = vpop.f32.mrf.mxu0 }
 0x1a6   :  { %v1696_v18 = vadd.f32 %v1695_v10, %v1653_v13  ;;  %v1655_v19 = vadd.f32 %v1654_v14, %v1121_v1  ;;  %v1787_v23 = vmax.f32 %v1694_v15, 0.0  ;;  %v6056_v1 = vld [vmem:[#allocation8 + $0x3c8] ss:$12 sps:$4 sm:$0xff]   ;;  %v6061_v13 = vld [vmem:[#allocation8 + $0xac] ss:$12 sps:$4 sm:$0xff]   ;;  %v881_v15 = vmax.f32 %v788_v7, 0.0 }
 0x1a7   :  { %v6110_v7 = vld [vmem:[#allocation8 + $0x138] ss:$12 sps:$4 sm:$0xff]  }
 0x1a8   :  { %v1698_v21 = vadd.f32 %v1697_v20, %v1655_v19  ;;  %v1790_v22 = vmax.f32 %v1696_v18, 0.0  ;;  %v6059_v20 = vld [vmem:[#allocation8 + $0xa8] ss:$12 sps:$4 sm:$0xff]  }
 0x1aa   :  { %v1791_v24 = vmax.f32 %v1698_v21, 0.0  ;;  %v6723_v27 = vpack.c.bf16 %v1790_v22, %v1786_v25  ;;  %v877_v21 = vmax.f32 %v784_v11, 0.0  ;;  %v6063_v22 = vld [vmem:[#allocation8 + $0x5d8] ss:$12 sps:$4 sm:$0xff]   ;;  %v6119_v11 = vld [vmem:[#allocation8 + $0x1e0] ss:$12 sps:$4 sm:$0xff]  }
 0x1ab   :  { %v6067_v25 = vld [vmem:[#allocation8 + $0x518] ss:$12 sps:$4 sm:$0xff]  }
 0x1ac   :  { %v1795_v35 = vpack.c.bf16 %v1791_v24, %v1787_v23  ;;  %v6066_v23 = vld [vmem:[#allocation8 + $0x94] ss:$12 sps:$4 sm:$0xff]   ;;  %v6738_v16 = vpack.c.bf16 %v881_v15, %v877_v21  ;;  %v6064_v24 = vld [vmem:[#allocation8 + $0x90] ss:$12 sps:$4 sm:$0xff]  }
 0x1ad   :  { %v6130_v15 = vld [vmem:[#allocation8 + $0xf4] ss:$12 sps:$4 sm:$0xff]   ;;  %v6139_v21 = vld [vmem:[#allocation8 + $0x19c] ss:$12 sps:$4 sm:$0xff]  }
 0x1ae   :  { %2470 = vmatprep.mubr.bf16.mxu0 %v1795_v35 }
 0x1af   :  { %2471 = vmatmul.mubr.bf16.vlgmr.msra.gmra.mxu0 %v6723_v27 }
 0x1b0   :  { %5510 = vmatpush3.bf16.msra.mxu0 %v6022_v26  ;;  %2556 = vmatprep.mubr.bf16.mxu0 %v1795_v35  ;;  %v6068_v35 = vld [vmem:[#allocation8 + $0x5c0] ss:$12 sps:$4 sm:$0xff]   ;;  %v6071_v26 = vld [vmem:[#allocation8 + $0x7c] ss:$12 sps:$4 sm:$0xff]  }
 0x1b1   :  { %5511 = vmatprep.subr.bf16.mxu0 %v6026_v28  ;;  %v6069_v28 = vld [vmem:[#allocation8 + $0x78] ss:$12 sps:$4 sm:$0xff]  }
 0x1b4   :  { %5512 = vmatpush3.bf16.msra.mxu0 %v6027_v51  ;;  %v6072_v51 = vld [vmem:[#allocation8 + $0x500] ss:$12 sps:$4 sm:$0xff]  }
 0x1b5   :  { %5513 = vmatprep.subr.bf16.mxu0 %v6031_v30  ;;  %v6076_v30 = vld [vmem:[#allocation8 + $0x64] ss:$12 sps:$4 sm:$0xff]  }
 0x1b8   :  { %5514 = vmatpush3.bf16.msra.mxu0 %v6032_v33  ;;  %v6074_v33 = vld [vmem:[#allocation8 + $0x60] ss:$12 sps:$4 sm:$0xff]  }
 0x1b9   :  { %5515 = vmatprep.subr.bf16.mxu0 %v6036_v37  ;;  %v6077_v37 = vld [vmem:[#allocation8 + $0x4e8] ss:$12 sps:$4 sm:$0xff]  }
 0x1bc   :  { %5516 = vmatpush3.bf16.msra.mxu0 %v6037_v38  ;;  %v6078_v38 = vld [vmem:[#allocation8 + $0x590] ss:$12 sps:$4 sm:$0xff]  }
 0x1bd   :  { %5517 = vmatprep.subr.bf16.mxu0 %v6041_v39  ;;  %v6081_v39 = vld [vmem:[#allocation8 + $0x4c] ss:$12 sps:$4 sm:$0xff]  }
 0x1bf   :  { %v1777_v45 = vpop.f32.mrf.mxu0 }
 0x1c0   :  { %v1734_v44 = vpop.f32.mrf.mxu1  ;;  %5518 = vmatpush3.bf16.msra.mxu0 %v6042_v40  ;;  %v6079_v40 = vld [vmem:[#allocation8 + $0x48] ss:$12 sps:$4 sm:$0xff]  }
 0x1c1   :  { %v1779_v49 = vpop.f32.mrf.mxu0  ;;  %5519 = vmatprep.subr.bf16.mxu0 %v6046_v41  ;;  %v1735_v54 = vadd.f32 %v1734_v44, %v1125_v43  ;;  %v6082_v41 = vld [vmem:[#allocation8 + $0x4d0] ss:$12 sps:$4 sm:$0xff]  }
 0x1c2   :  { %v1736_v48 = vpop.f32.mrf.mxu1  ;;  %v6084_v44 = vld [vmem:[#allocation8 + $0x30] ss:$12 sps:$4 sm:$0xff]  }
 0x1c3   :  { %v1737_v52 = vadd.f32 %v1736_v48, %v1129_v42  ;;  %v1781_v56 = vpop.f32.mrf.mxu0  ;;  %v1778_v8 = vadd.f32 %v1777_v45, %v1735_v54  ;;  %v6087_v45 = vld [vmem:[#allocation8 + $0x4b8] ss:$12 sps:$4 sm:$0xff]   ;;  %v6097_v54 = vld [vmem:[#allocation8 + $0x488] ss:$12 sps:$4 sm:$0xff]  }
 0x1c4   :  { %v1738_v55 = vpop.f32.mrf.mxu1  ;;  %5520 = vmatpush3.bf16.msra.mxu0 %v6047_v46  ;;  %v6088_v46 = vld [vmem:[#allocation8 + $0x560] ss:$12 sps:$4 sm:$0xff]   ;;  %v6089_v48 = vld [vmem:[#allocation8 + $0x18] ss:$12 sps:$4 sm:$0xff]  }
 0x1c5   :  { %v1739_v57 = vadd.f32 %v1738_v55, %v1125_v43  ;;  %5521 = vmatprep.subr.bf16.mxu0 %v6051_v50  ;;  %v1780_v2 = vadd.f32 %v1779_v49, %v1737_v52  ;;  %v1783_v9 = vpop.f32.mrf.mxu0  ;;  %v1788_v18 = vmax.f32 %v1778_v8, 0.0  ;;  %v6086_v43 = vld [vmem:[#allocation8 + $0x34] ss:$12 sps:$4 sm:$0xff]   ;;  %v6096_v52 = vld [vmem:[#allocation8 + $0x4] ss:$12 sps:$4 sm:$0xff]  }
 0x1c6   :  { %v1740_v63 = vpop.f32.mrf.mxu1  ;;  %v6092_v49 = vld [vmem:[#allocation8 + $0x4a0] ss:$12 sps:$4 sm:$0xff]   ;;  %v6093_v50 = vld [vmem:[#allocation8 + $0x548] ss:$12 sps:$4 sm:$0xff]   ;;  %v6113_v8 = vld [vmem:[#allocation8 + $0x1f8] ss:$12 sps:$4 sm:$0xff]  }
 0x1c7   :  { %v1782_v3 = vadd.f32 %v1781_v56, %v1739_v57  ;;  %v1741_v5 = vadd.f32 %v1740_v63, %v1129_v42  ;;  %v1789_v14 = vmax.f32 %v1780_v2, 0.0  ;;  %v6083_v42 = vld [vmem:[#allocation8 + $0x578] ss:$12 sps:$4 sm:$0xff]   ;;  %v6098_v57 = vld [vmem:[#allocation8 + $0x168] ss:$12 sps:$4 sm:$0xff]  }
 0x1c8   :  { %5522 = vmatpush3.bf16.msra.mxu0 %v6052_v58  ;;  %v6100_v55 = vld [vmem:[#allocation8 + $0x16c] ss:$12 sps:$4 sm:$0xff]   ;;  %v6101_v58 = vld [vmem:[#allocation8 + $0x228] ss:$12 sps:$4 sm:$0xff]   ;;  %v6107_v2 = vld [vmem:[#allocation8 + $0x210] ss:$12 sps:$4 sm:$0xff]  }
 0x1c9   :  { %v1784_v10 = vadd.f32 %v1783_v9, %v1741_v5  ;;  %v1792_v12 = vmax.f32 %v1782_v3, 0.0  ;;  %5523 = vmatprep.subr.bf16.mxu0 %v6056_v1  ;;  %v6103_v56 = vld [vmem:[#allocation8 + $0x22c] ss:$12 sps:$4 sm:$0xff]   ;;  %v6109_v63 = vld [vmem:[#allocation8 + $0x214] ss:$12 sps:$4 sm:$0xff]  }
 0x1ca   :  { %v6104_v1 = vld [vmem:[#allocation8 + $0x150] ss:$12 sps:$4 sm:$0xff]  }
 0x1cb   :  { %v1793_v17 = vmax.f32 %v1784_v10, 0.0  ;;  %v6734_v34 = vpack.c.bf16 %v1792_v12, %v1788_v18  ;;  %v6112_v3 = vld [vmem:[#allocation8 + $0x13c] ss:$12 sps:$4 sm:$0xff]   ;;  %v6118_v9 = vld [vmem:[#allocation8 + $0x124] ss:$12 sps:$4 sm:$0xff]  }
 0x1cc   :  { %5524 = vmatpush3.bf16.msra.mxu0 %v6057_v36  ;;  %v6115_v5 = vld [vmem:[#allocation8 + $0x1fc] ss:$12 sps:$4 sm:$0xff]   ;;  %v6121_v10 = vld [vmem:[#allocation8 + $0x1e4] ss:$12 sps:$4 sm:$0xff]   ;;  %v6116_v36 = vld [vmem:[#allocation8 + $0x120] ss:$12 sps:$4 sm:$0xff]  }
 0x1cd   :  { %v1797_v19 = vpack.c.bf16 %v1793_v17, %v1789_v14  ;;  %3118 = vmatprep.subr.bf16.mxu0 %v6061_v13  ;;  %v6124_v12 = vld [vmem:[#allocation8 + $0x10c] ss:$12 sps:$4 sm:$0xff]   ;;  %v6122_v14 = vld [vmem:[#allocation8 + $0x108] ss:$12 sps:$4 sm:$0xff]  }
 0x1ce   :  { %v6127_v13 = vld [vmem:[#allocation8 + $0x1cc] ss:$12 sps:$4 sm:$0xff]   ;;  %v6125_v17 = vld [vmem:[#allocation8 + $0x1c8] ss:$12 sps:$4 sm:$0xff]  }
 0x1cf   :  { %2513 = vmatprep.mubr.bf16.mxu1 %v1797_v19  ;;  %2557 = vmatmul.mubr.bf16.vlgmr.msra.gmra.mxu0 %v6723_v27  ;;  %v6073_v27 = vld [vmem:[#allocation8 + $0x5a8] ss:$12 sps:$4 sm:$0xff]  }
 0x1d0   :  { %2514 = vmatmul.mubr.bf16.vlgmr.msra.gmra.mxu1 %v6734_v34  ;;  %3119 = vmatpush1.bf16.msra.mxu0 %v6059_v20  ;;  %v6133_v18 = vld [vmem:[#allocation8 + $0x1b4] ss:$12 sps:$4 sm:$0xff]   ;;  %v6131_v20 = vld [vmem:[#allocation8 + $0x1b0] ss:$12 sps:$4 sm:$0xff]  }
 0x1d1   :  { %5532 = vmatpush3.bf16.msra.mxu1 %v6062_v61  ;;  %3150 = vmatprep.mubr.bf16.mxu0 %v6738_v16  ;;  %v6136_v61 = vld [vmem:[#allocation8 + $0xdc] ss:$12 sps:$4 sm:$0xff]  }
 0x1d2   :  { %2597 = vmatprep.mubr.bf16.mxu1 %v1797_v19  ;;  %5533 = vmatprep.subr.bf16.mxu1 %v6063_v22  ;;  %v6128_v19 = vld [vmem:[#allocation8 + $0xf0] ss:$12 sps:$4 sm:$0xff]   ;;  %v6137_v22 = vld [vmem:[#allocation8 + $0x198] ss:$12 sps:$4 sm:$0xff]  }
 0x1d3   :  { %3120 = vmatprep.subr.bf16.mxu0 %v6066_v23  ;;  %v6142_v23 = vld [vmem:[#allocation8 + $0xc4] ss:$12 sps:$4 sm:$0xff]  }
 0x1d4   :  { %3121 = vmatpush1.bf16.msra.mxu0 %v6064_v24  ;;  %v6145_v24 = vld [vmem:[#allocation8 + $0x184] ss:$12 sps:$4 sm:$0xff]  }
 0x1d5   :  { %5534 = vmatpush3.bf16.msra.mxu1 %v6067_v25  ;;  %3122 = vmatprep.subr.bf16.mxu0 %v6071_v26  ;;  %v6140_v25 = vld [vmem:[#allocation8 + $0xc0] ss:$12 sps:$4 sm:$0xff]  }
 0x1d6   :  { %5535 = vmatprep.subr.bf16.mxu1 %v6068_v35  ;;  %v6143_v35 = vld [vmem:[#allocation8 + $0x180] ss:$12 sps:$4 sm:$0xff]  }
 0x1d7   :  { %v6148_v26 = vld [vmem:[#allocation8 + $0x2ec] ss:$12 sps:$4 sm:$0xff]  }
 0x1d8   :  { %3123 = vmatpush1.bf16.msra.mxu0 %v6069_v28  ;;  %v6149_v28 = vld [vmem:[#allocation8 + $0x170] ss:$12 sps:$4 sm:$0xff]  }
 0x1d9   :  { %5536 = vmatpush3.bf16.msra.mxu1 %v6072_v51  ;;  %3124 = vmatprep.subr.bf16.mxu0 %v6076_v30  ;;  %v6146_v51 = vld [vmem:[#allocation8 + $0x2e8] ss:$12 sps:$4 sm:$0xff]  }
 0x1da   :  { %5537 = vmatprep.subr.bf16.mxu1 %v6073_v27  ;;  %v6150_v27 = vld [vmem:[#allocation8 + $0xb0] ss:$12 sps:$4 sm:$0xff]   ;;  %v6153_v30 = vld [vmem:[#allocation8 + $0x2d4] ss:$12 sps:$4 sm:$0xff]  }
 0x1dc   :  { %3125 = vmatpush1.bf16.msra.mxu0 %v6074_v33  ;;  %v6154_v33 = vld [vmem:[#allocation8 + $0x158] ss:$12 sps:$4 sm:$0xff]  }
 0x1dd   :  { %5538 = vmatpush3.bf16.msra.mxu1 %v6077_v37  ;;  %3126 = vmatprep.subr.bf16.mxu0 %v6081_v39  ;;  %v6151_v37 = vld [vmem:[#allocation8 + $0x2d0] ss:$12 sps:$4 sm:$0xff]  }
 0x1de   :  { %5539 = vmatprep.subr.bf16.mxu1 %v6078_v38  ;;  %v6155_v38 = vld [vmem:[#allocation8 + $0x98] ss:$12 sps:$4 sm:$0xff]   ;;  %v6158_v39 = vld [vmem:[#allocation8 + $0x2bc] ss:$12 sps:$4 sm:$0xff]  }
 0x1e0   :  { %3127 = vmatpush1.bf16.msra.mxu0 %v6079_v40  ;;  %v6159_v40 = vld [vmem:[#allocation8 + $0x140] ss:$12 sps:$4 sm:$0xff]  }
 0x1e1   :  { %5540 = vmatpush3.bf16.msra.mxu1 %v6082_v41  ;;  %3128 = vmatprep.subr.bf16.mxu0 %v6086_v43  ;;  %v6156_v41 = vld [vmem:[#allocation8 + $0x2b8] ss:$12 sps:$4 sm:$0xff]  }
 0x1e2   :  { %5541 = vmatprep.subr.bf16.mxu1 %v6083_v42  ;;  %v6160_v42 = vld [vmem:[#allocation8 + $0x80] ss:$12 sps:$4 sm:$0xff]   ;;  %v6163_v43 = vld [vmem:[#allocation8 + $0x2a4] ss:$12 sps:$4 sm:$0xff]  }
 0x1e4   :  { %3129 = vmatpush1.bf16.msra.mxu0 %v6084_v44  ;;  %v6164_v44 = vld [vmem:[#allocation8 + $0x128] ss:$12 sps:$4 sm:$0xff]  }
 0x1e5   :  { %5542 = vmatpush3.bf16.msra.mxu1 %v6087_v45  ;;  %3130 = vmatprep.subr.bf16.mxu0 %v6091_v47  ;;  %v6161_v45 = vld [vmem:[#allocation8 + $0x2a0] ss:$12 sps:$4 sm:$0xff]  }
 0x1e6   :  { %5543 = vmatprep.subr.bf16.mxu1 %v6088_v46  ;;  %v6165_v46 = vld [vmem:[#allocation8 + $0x68] ss:$12 sps:$4 sm:$0xff]   ;;  %v6168_v47 = vld [vmem:[#allocation8 + $0x28c] ss:$12 sps:$4 sm:$0xff]  }
 0x1e8   :  { %3131 = vmatpush1.bf16.msra.mxu0 %v6089_v48  ;;  %v6166_v48 = vld [vmem:[#allocation8 + $0x288] ss:$12 sps:$4 sm:$0xff]  }
 0x1e9   :  { %5544 = vmatpush3.bf16.msra.mxu1 %v6092_v49  ;;  %3132 = vmatprep.subr.bf16.mxu0 %v6096_v52  ;;  %v6170_v49 = vld [vmem:[#allocation8 + $0x50] ss:$12 sps:$4 sm:$0xff]   ;;  %v6174_v52 = vld [vmem:[#allocation8 + $0xf8] ss:$12 sps:$4 sm:$0xff]  }
 0x1ea   :  { %5545 = vmatprep.subr.bf16.mxu1 %v6093_v50  ;;  %v6173_v50 = vld [vmem:[#allocation8 + $0x274] ss:$12 sps:$4 sm:$0xff]  }
 0x1ec   :  { %3133 = vmatpush1.bf16.msra.mxu0 %v6094_v53  ;;  %v6171_v53 = vld [vmem:[#allocation8 + $0x270] ss:$12 sps:$4 sm:$0xff]  }
 0x1ed   :  { %5546 = vmatpush3.bf16.msra.mxu1 %v6097_v54  ;;  %3134 = vmatprep.subr.bf16.mxu0 %v6100_v55  ;;  %v6175_v54 = vld [vmem:[#allocation8 + $0x38] ss:$12 sps:$4 sm:$0xff]   ;;  %v6178_v55 = vld [vmem:[#allocation8 + $0x25c] ss:$12 sps:$4 sm:$0xff]  }
 0x1ee   :  { %3161 = vmatprep.subr.bf16.mxu1 %v6103_v56  ;;  %v6179_v56 = vld [vmem:[#allocation8 + $0xe0] ss:$12 sps:$4 sm:$0xff]  }
 0x1f0   :  { %2598 = vmatmul.mubr.bf16.vlgmr.msra.gmra.mxu1 %v6734_v34  ;;  %3135 = vmatpush2.bf16.msra.mxu0 %v6098_v57  ;;  %v6134_v34 = vld [vmem:[#allocation8 + $0xd8] ss:$12 sps:$4 sm:$0xff]  }
 0x1f1   :  { %3162 = vmatpush1.bf16.msra.mxu1 %v6101_v58  ;;  %3193 = vmatprep.mubr.bf16.mxu1 %v6716_v59  ;;  %v6176_v57 = vld [vmem:[#allocation8 + $0x258] ss:$12 sps:$4 sm:$0xff]   ;;  %v6180_v58 = vld [vmem:[#allocation8 + $0x20] ss:$12 sps:$4 sm:$0xff]  }
 0x1f2   :  { %3136 = vmatprep.subr.bf16.mxu0 %v6106_v60  ;;  %3163 = vmatprep.subr.bf16.mxu1 %v6109_v63  ;;  %v6183_v60 = vld [vmem:[#allocation8 + $0x244] ss:$12 sps:$4 sm:$0xff]   ;;  %v6184_v63 = vld [vmem:[#allocation8 + $0xc8] ss:$12 sps:$4 sm:$0xff]  }
 0x1f4   :  { %3137 = vmatpush2.bf16.msra.mxu0 %v6104_v1  ;;  %v6181_v1 = vld [vmem:[#allocation8 + $0x240] ss:$12 sps:$4 sm:$0xff]  }
 0x1f5   :  { %3164 = vmatpush1.bf16.msra.mxu1 %v6107_v2  ;;  %3138 = vmatprep.subr.bf16.mxu0 %v6112_v3  ;;  %v6185_v2 = vld [vmem:[#allocation8 + $0x8] ss:$12 sps:$4 sm:$0xff]   ;;  %v6186_v3 = vld [vmem:[#allocation8 + $0x2f0] ss:$12 sps:$4 sm:$0xff]  }
 0x1f6   :  { %3165 = vmatprep.subr.bf16.mxu1 %v6115_v5  ;;  %v6189_v5 = vld [vmem:[#allocation5 + $0x2c4] ss:$48 sps:$4 sm:$0xff]  }
 0x1f8   :  { %3139 = vmatpush2.bf16.msra.mxu0 %v6110_v7  ;;  %v6190_v7 = vld [vmem:[#allocation8 + $0x230] ss:$12 sps:$4 sm:$0xff]  }
 0x1f9   :  { %3166 = vmatpush1.bf16.msra.mxu1 %v6113_v8  ;;  %3140 = vmatprep.subr.bf16.mxu0 %v6118_v9  ;;  %v6187_v8 = vld [vmem:[#allocation5 + $0x2c0] ss:$48 sps:$4 sm:$0xff]  }
 0x1fa   :  { %3167 = vmatprep.subr.bf16.mxu1 %v6121_v10  ;;  %v6191_v9 = vld [vmem:[#allocation8 + $0x2d8] ss:$12 sps:$4 sm:$0xff]  }
 0x1fb   :  { %v6194_v10 = vld [vmem:[#allocation5 + $0x264] ss:$48 sps:$4 sm:$0xff]  }
 0x1fc   :  { %3141 = vmatpush2.bf16.msra.mxu0 %v6116_v36  ;;  %v6195_v36 = vld [vmem:[#allocation8 + $0x218] ss:$12 sps:$4 sm:$0xff]  }
 0x1fd   :  { %3168 = vmatpush1.bf16.msra.mxu1 %v6119_v11  ;;  %3142 = vmatprep.subr.bf16.mxu0 %v6124_v12  ;;  %v6192_v11 = vld [vmem:[#allocation5 + $0x260] ss:$48 sps:$4 sm:$0xff]   ;;  %v6196_v12 = vld [vmem:[#allocation8 + $0x2c0] ss:$12 sps:$4 sm:$0xff]  }
 0x1fe   :  { %3169 = vmatprep.subr.bf16.mxu1 %v6127_v13  ;;  %v6199_v13 = vld [vmem:[#allocation5 + $0x204] ss:$48 sps:$4 sm:$0xff]  }
 0x200   :  { %3143 = vmatpush2.bf16.msra.mxu0 %v6122_v14  ;;  %v6748_v14 = vld [vmem:[#allocation2 + $0x4] ss:$12 sps:$4 sm:$0xff]  }
 0x201   :  { %3170 = vmatpush1.bf16.msra.mxu1 %v6125_v17  ;;  %3144 = vmatprep.subr.bf16.mxu0 %v6130_v15  ;;  %v6200_v17 = vld [vmem:[#allocation8 + $0x200] ss:$12 sps:$4 sm:$0xff]   ;;  %v6197_v15 = vld [vmem:[#allocation5 + $0x200] ss:$48 sps:$4 sm:$0xff]  }
 0x202   :  { %3171 = vmatprep.subr.bf16.mxu1 %v6133_v18  ;;  %v6204_v18 = vld [vmem:[#allocation5 + $0x1a4] ss:$48 sps:$4 sm:$0xff]  }
 0x204   :  { %3145 = vmatpush2.bf16.msra.mxu0 %v6128_v19  ;;  %v6202_v19 = vld [vmem:[#allocation5 + $0x1a0] ss:$48 sps:$4 sm:$0xff]  }
 0x205   :  { %3172 = vmatpush1.bf16.msra.mxu1 %v6131_v20  ;;  %3146 = vmatprep.subr.bf16.mxu0 %v6136_v61  ;;  %v6206_v20 = vld [vmem:[#allocation8 + $0x290] ss:$12 sps:$4 sm:$0xff]   ;;  %v6209_v61 = vld [vmem:[#allocation5 + $0x144] ss:$48 sps:$4 sm:$0xff]  }
 0x206   :  { %3173 = vmatprep.subr.bf16.mxu1 %v6139_v21  ;;  %v6210_v21 = vld [vmem:[#allocation8 + $0x1d0] ss:$12 sps:$4 sm:$0xff]  }
 0x208   :  { %3147 = vmatpush2.bf16.msra.mxu0 %v6134_v34  ;;  %v6207_v34 = vld [vmem:[#allocation5 + $0x140] ss:$48 sps:$4 sm:$0xff]  }
 0x209   :  { %3174 = vmatpush1.bf16.msra.mxu1 %v6137_v22  ;;  %3148 = vmatprep.subr.bf16.mxu0 %v6142_v23  ;;  %v6211_v22 = vld [vmem:[#allocation8 + $0x278] ss:$12 sps:$4 sm:$0xff]  }
 0x20a   :  { %3175 = vmatprep.subr.bf16.mxu1 %v6145_v24  ;;  %v6214_v23 = vld [vmem:[#allocation5 + $0xe4] ss:$48 sps:$4 sm:$0xff]  }
 0x20b   :  { %v6215_v24 = vld [vmem:[#allocation8 + $0x1b8] ss:$12 sps:$4 sm:$0xff]  }
 0x20c   :  { %3149 = vmatpush2.bf16.msra.mxu0 %v6140_v25  ;;  %v6212_v25 = vld [vmem:[#allocation5 + $0xe0] ss:$48 sps:$4 sm:$0xff]  }
 0x20d   :  { %3176 = vmatpush1.bf16.msra.mxu1 %v6143_v35  ;;  %5553 = vmatprep.subr.bf16.mxu0 %v6149_v28  ;;  %v6216_v35 = vld [vmem:[#allocation8 + $0x260] ss:$12 sps:$4 sm:$0xff]  }
 0x20e   :  { %3177 = vmatprep.subr.bf16.mxu1 %v6148_v26  ;;  %v6219_v26 = vld [vmem:[#allocation5 + $0x84] ss:$48 sps:$4 sm:$0xff]   ;;  %v6220_v28 = vld [vmem:[#allocation8 + $0x1a0] ss:$12 sps:$4 sm:$0xff]  }
 0x20f   :  { %3151 = vmatmul.mubr.bf16.vlgmr.msra.gmra.mxu0 %v6698_v29 }
 0x210   :  { %5554 = vmatpush3.bf16.msra.mxu0 %v6150_v27  ;;  %3236 = vmatprep.mubr.bf16.mxu0 %v6738_v16  ;;  %v6169_v16 = vld [vmem:[#allocation8 + $0x110] ss:$12 sps:$4 sm:$0xff]   ;;  %v6221_v27 = vld [vmem:[#allocation8 + $0x248] ss:$12 sps:$4 sm:$0xff]  }
 0x211   :  { %3178 = vmatpush2.bf16.msra.mxu1 %v6146_v51  ;;  %5555 = vmatprep.subr.bf16.mxu0 %v6154_v33  ;;  %v6217_v51 = vld [vmem:[#allocation5 + $0x80] ss:$48 sps:$4 sm:$0xff]  }
 0x212   :  { %3179 = vmatprep.subr.bf16.mxu1 %v6153_v30  ;;  %v6224_v30 = vld [vmem:[#allocation5 + $0x24] ss:$48 sps:$4 sm:$0xff]  }
 0x213   :  { %v6225_v33 = vld [vmem:[#allocation8 + $0x188] ss:$12 sps:$4 sm:$0xff]  }
 0x214   :  { %5556 = vmatpush3.bf16.msra.mxu0 %v6155_v38  ;;  %v6231_v38 = vld [vmem:[#allocation5 + $0x8c4] ss:$48 sps:$4 sm:$0xff]  }
 0x215   :  { %3180 = vmatpush2.bf16.msra.mxu1 %v6151_v37  ;;  %5557 = vmatprep.subr.bf16.mxu0 %v6159_v40  ;;  %v6222_v37 = vld [vmem:[#allocation5 + $0x20] ss:$48 sps:$4 sm:$0xff]  }
 0x216   :  { %3181 = vmatprep.subr.bf16.mxu1 %v6158_v39  ;;  %v6228_v39 = vld [vmem:[#allocation5 + $0x5c4] ss:$48 sps:$4 sm:$0xff]   ;;  %v6229_v40 = vld [vmem:[#allocation5 + $0x8c0] ss:$48 sps:$4 sm:$0xff]  }
 0x218   :  { %5558 = vmatpush3.bf16.msra.mxu0 %v6160_v42  ;;  %v6237_v42 = vld [vmem:[#allocation5 + $0x864] ss:$48 sps:$4 sm:$0xff]  }
 0x219   :  { %3182 = vmatpush2.bf16.msra.mxu1 %v6156_v41  ;;  %5559 = vmatprep.subr.bf16.mxu0 %v6164_v44  ;;  %v6226_v41 = vld [vmem:[#allocation5 + $0x5c0] ss:$48 sps:$4 sm:$0xff]  }
 0x21a   :  { %3183 = vmatprep.subr.bf16.mxu1 %v6163_v43  ;;  %v6234_v43 = vld [vmem:[#allocation5 + $0x564] ss:$48 sps:$4 sm:$0xff]   ;;  %v6235_v44 = vld [vmem:[#allocation5 + $0x860] ss:$48 sps:$4 sm:$0xff]  }
 0x21c   :  { %5560 = vmatpush3.bf16.msra.mxu0 %v6165_v46  ;;  %v6243_v46 = vld [vmem:[#allocation5 + $0x804] ss:$48 sps:$4 sm:$0xff]  }
 0x21d   :  { %3184 = vmatpush2.bf16.msra.mxu1 %v6161_v45  ;;  %5561 = vmatprep.subr.bf16.mxu0 %v6169_v16  ;;  %v6232_v45 = vld [vmem:[#allocation5 + $0x560] ss:$48 sps:$4 sm:$0xff]  }
 0x21e   :  { %3185 = vmatprep.subr.bf16.mxu1 %v6168_v47  ;;  %v6240_v47 = vld [vmem:[#allocation5 + $0x504] ss:$48 sps:$4 sm:$0xff]   ;;  %v6241_v16 = vld [vmem:[#allocation5 + $0x800] ss:$48 sps:$4 sm:$0xff]  }
 0x220   :  { %5562 = vmatpush3.bf16.msra.mxu0 %v6170_v49  ;;  %v6249_v49 = vld [vmem:[#allocation5 + $0x7a4] ss:$48 sps:$4 sm:$0xff]  }
 0x221   :  { %3186 = vmatpush2.bf16.msra.mxu1 %v6166_v48  ;;  %5563 = vmatprep.subr.bf16.mxu0 %v6174_v52  ;;  %v6238_v48 = vld [vmem:[#allocation5 + $0x500] ss:$48 sps:$4 sm:$0xff]  }
 0x222   :  { %3187 = vmatprep.subr.bf16.mxu1 %v6173_v50  ;;  %v6246_v50 = vld [vmem:[#allocation5 + $0x4a4] ss:$48 sps:$4 sm:$0xff]   ;;  %v6244_v52 = vld [vmem:[#allocation5 + $0x4a0] ss:$48 sps:$4 sm:$0xff]  }
 0x224   :  { %5564 = vmatpush3.bf16.msra.mxu0 %v6175_v54  ;;  %v6252_v54 = vld [vmem:[#allocation5 + $0x444] ss:$48 sps:$4 sm:$0xff]  }
 0x225   :  { %3188 = vmatpush2.bf16.msra.mxu1 %v6171_v53  ;;  %5565 = vmatprep.subr.bf16.mxu0 %v6179_v56  ;;  %v6255_v53 = vld [vmem:[#allocation5 + $0x744] ss:$48 sps:$4 sm:$0xff]   ;;  %v6250_v56 = vld [vmem:[#allocation5 + $0x440] ss:$48 sps:$4 sm:$0xff]  }
 0x226   :  { %3189 = vmatprep.subr.bf16.mxu1 %v6178_v55  ;;  %v6253_v55 = vld [vmem:[#allocation5 + $0x740] ss:$48 sps:$4 sm:$0xff]  }
 0x228   :  { %5566 = vmatpush3.bf16.msra.mxu0 %v6180_v58  ;;  %v6258_v58 = vld [vmem:[#allocation5 + $0x3e4] ss:$48 sps:$4 sm:$0xff]  }
 0x229   :  { %3190 = vmatpush2.bf16.msra.mxu1 %v6176_v57  ;;  %5567 = vmatprep.subr.bf16.mxu0 %v6184_v63  ;;  %v6261_v57 = vld [vmem:[#allocation5 + $0x6e4] ss:$48 sps:$4 sm:$0xff]   ;;  %v6256_v63 = vld [vmem:[#allocation5 + $0x3e0] ss:$48 sps:$4 sm:$0xff]  }
 0x22a   :  { %3191 = vmatprep.subr.bf16.mxu1 %v6183_v60  ;;  %v6259_v60 = vld [vmem:[#allocation5 + $0x6e0] ss:$48 sps:$4 sm:$0xff]  }
 0x22c   :  { %5568 = vmatpush3.bf16.msra.mxu0 %v6185_v2  ;;  %v6264_v2 = vld [vmem:[#allocation5 + $0x384] ss:$48 sps:$4 sm:$0xff]  }
 0x22d   :  { %3192 = vmatpush2.bf16.msra.mxu1 %v6181_v1  ;;  %3884 = vmatprep.subr.bf16.mxu0 %v6189_v5  ;;  %v6267_v1 = vld [vmem:[#allocation5 + $0x684] ss:$48 sps:$4 sm:$0xff]   ;;  %v6262_v5 = vld [vmem:[#allocation5 + $0x380] ss:$48 sps:$4 sm:$0xff]  }
 0x22e   :  { %5575 = vmatprep.subr.bf16.mxu1 %v6186_v3  ;;  %v6265_v3 = vld [vmem:[#allocation5 + $0x680] ss:$48 sps:$4 sm:$0xff]  }
 0x22f   :  { %3237 = vmatmul.mubr.bf16.vlgmr.msra.gmra.mxu0 %v6698_v29  ;;  %v6201_v29 = vld [vmem:[#allocation8 + $0x2a8] ss:$12 sps:$4 sm:$0xff]  }
 0x230   :  { %3194 = vmatmul.mubr.bf16.vlgmr.msra.gmra.mxu1 %v6714_v6  ;;  %3885 = vmatpush1.bf16.msra.mxu0 %v6187_v8  ;;  %v6270_v8 = vld [vmem:[#allocation5 + $0x324] ss:$48 sps:$4 sm:$0xff]  }
 0x231   :  { %5576 = vmatpush3.bf16.msra.mxu1 %v6190_v7  ;;  %3277 = vmatprep.mubr.bf16.mxu1 %v6716_v59  ;;  %v6205_v59 = vld [vmem:[#allocation8 + $0x1e8] ss:$12 sps:$4 sm:$0xff]  }
 0x232   :  { %5577 = vmatprep.subr.bf16.mxu1 %v6191_v9  ;;  %3886 = vmatprep.subr.bf16.mxu0 %v6194_v10  ;;  %v6273_v7 = vld [vmem:[#allocation5 + $0x624] ss:$48 sps:$4 sm:$0xff]   ;;  %v6271_v9 = vld [vmem:[#allocation5 + $0x620] ss:$48 sps:$4 sm:$0xff]  }
 0x233   :  { %3916 = vmatprep.mubr.bf16.mxu0 %v6748_v14  ;;  %v6268_v10 = vld [vmem:[#allocation5 + $0x320] ss:$48 sps:$4 sm:$0xff]  }
 0x234   :  { %3887 = vmatpush1.bf16.msra.mxu0 %v6192_v11  ;;  %v6300_v11 = vld [vmem:[#allocation5 + $0x8cc] ss:$48 sps:$4 sm:$0xff]  }
 0x235   :  { %5578 = vmatpush3.bf16.msra.mxu1 %v6195_v36  ;;  %3888 = vmatprep.subr.bf16.mxu0 %v6199_v13  ;;  %v6276_v36 = vld [vmem:[#allocation5 + $0x2cc] ss:$48 sps:$4 sm:$0xff]  }
 0x236   :  { %5579 = vmatprep.subr.bf16.mxu1 %v6196_v12  ;;  %v6274_v12 = vld [vmem:[#allocation5 + $0x2c8] ss:$48 sps:$4 sm:$0xff]   ;;  %v6279_v13 = vld [vmem:[#allocation5 + $0x26c] ss:$48 sps:$4 sm:$0xff]  }
 0x238   :  { %3889 = vmatpush1.bf16.msra.mxu0 %v6197_v15  ;;  %v6306_v15 = vld [vmem:[#allocation5 + $0x86c] ss:$48 sps:$4 sm:$0xff]  }
 0x239   :  { %5580 = vmatpush3.bf16.msra.mxu1 %v6200_v17  ;;  %3890 = vmatprep.subr.bf16.mxu0 %v6204_v18  ;;  %v6298_v17 = vld [vmem:[#allocation5 + $0x8c8] ss:$48 sps:$4 sm:$0xff]  }
 0x23a   :  { %5581 = vmatprep.subr.bf16.mxu1 %v6201_v29  ;;  %v6753_v29 = vld [vmem:[#allocation2 + $0x8] ss:$12 sps:$4 sm:$0xff]   ;;  %v6756_v18 = vld [vmem:[#allocation2] ss:$12 sps:$4 sm:$0xff]  }
 0x23c   :  { %3891 = vmatpush1.bf16.msra.mxu0 %v6202_v19  ;;  %v6282_v19 = vld [vmem:[#allocation5 + $0x20c] ss:$48 sps:$4 sm:$0xff]  }
 0x23d   :  { %5582 = vmatpush3.bf16.msra.mxu1 %v6205_v59  ;;  %3892 = vmatprep.subr.bf16.mxu0 %v6209_v61  ;;  %v6277_v59 = vld [vmem:[#allocation5 + $0x268] ss:$48 sps:$4 sm:$0xff]   ;;  %v6312_v61 = vld [vmem:[#allocation5 + $0x80c] ss:$48 sps:$4 sm:$0xff]  }
 0x23e   :  { %5583 = vmatprep.subr.bf16.mxu1 %v6206_v20  ;;  %v6304_v20 = vld [vmem:[#allocation5 + $0x868] ss:$48 sps:$4 sm:$0xff]  }
 0x240   :  { %3893 = vmatpush1.bf16.msra.mxu0 %v6207_v34  ;;  %v6285_v34 = vld [vmem:[#allocation5 + $0x1ac] ss:$48 sps:$4 sm:$0xff]  }
 0x241   :  { %5584 = vmatpush3.bf16.msra.mxu1 %v6210_v21  ;;  %3894 = vmatprep.subr.bf16.mxu0 %v6214_v23  ;;  %v6280_v21 = vld [vmem:[#allocation5 + $0x208] ss:$48 sps:$4 sm:$0xff]   ;;  %v6318_v23 = vld [vmem:[#allocation5 + $0x7ac] ss:$48 sps:$4 sm:$0xff]  }
 0x242   :  { %5585 = vmatprep.subr.bf16.mxu1 %v6211_v22  ;;  %v6310_v22 = vld [vmem:[#allocation5 + $0x808] ss:$48 sps:$4 sm:$0xff]  }
 0x244   :  { %3895 = vmatpush1.bf16.msra.mxu0 %v6212_v25  ;;  %v6288_v25 = vld [vmem:[#allocation5 + $0x14c] ss:$48 sps:$4 sm:$0xff]  }
 0x245   :  { %5586 = vmatpush3.bf16.msra.mxu1 %v6215_v24  ;;  %3896 = vmatprep.subr.bf16.mxu0 %v6219_v26  ;;  %v6283_v24 = vld [vmem:[#allocation5 + $0x1a8] ss:$48 sps:$4 sm:$0xff]   ;;  %v6324_v26 = vld [vmem:[#allocation5 + $0x74c] ss:$48 sps:$4 sm:$0xff]  }
 0x246   :  { %5587 = vmatprep.subr.bf16.mxu1 %v6216_v35  ;;  %v6316_v35 = vld [vmem:[#allocation5 + $0x7a8] ss:$48 sps:$4 sm:$0xff]  }
 0x248   :  { %3897 = vmatpush1.bf16.msra.mxu0 %v6217_v51  ;;  %v6330_v51 = vld [vmem:[#allocation5 + $0x6ec] ss:$48 sps:$4 sm:$0xff]  }
 0x249   :  { %5588 = vmatpush3.bf16.msra.mxu1 %v6220_v28  ;;  %3898 = vmatprep.subr.bf16.mxu0 %v6224_v30  ;;  %v6322_v28 = vld [vmem:[#allocation5 + $0x748] ss:$48 sps:$4 sm:$0xff]  }
 0x24a   :  { %5589 = vmatprep.subr.bf16.mxu1 %v6221_v27  ;;  %v6289_v27 = vld [vmem:[#allocation5 + $0xe8] ss:$48 sps:$4 sm:$0xff]  }
 0x24c   :  { %3899 = vmatpush1.bf16.msra.mxu0 %v6222_v37  ;;  %v6328_v37 = vld [vmem:[#allocation5 + $0x6e8] ss:$48 sps:$4 sm:$0xff]  }
 0x24d   :  { %5590 = vmatpush3.bf16.msra.mxu1 %v6225_v33  ;;  %3900 = vmatprep.subr.bf16.mxu0 %v6228_v39  ;;  %v6294_v33 = vld [vmem:[#allocation5 + $0x8c] ss:$48 sps:$4 sm:$0xff]   ;;  %v6292_v39 = vld [vmem:[#allocation5 + $0x88] ss:$48 sps:$4 sm:$0xff]  }
 0x24e   :  { %3927 = vmatprep.subr.bf16.mxu1 %v6231_v38  ;;  %v6336_v38 = vld [vmem:[#allocation5 + $0x68c] ss:$48 sps:$4 sm:$0xff]  }
 0x250   :  { %3278 = vmatmul.mubr.bf16.vlgmr.msra.gmra.mxu1 %v6714_v6  ;;  %3901 = vmatpush2.bf16.msra.mxu0 %v6226_v41  ;;  %v6247_v6 = vld [vmem:[#allocation5 + $0x7a0] ss:$48 sps:$4 sm:$0xff]   ;;  %v6297_v41 = vld [vmem:[#allocation5 + $0x2c] ss:$48 sps:$4 sm:$0xff]  }
 0x251   :  { %3928 = vmatpush1.bf16.msra.mxu1 %v6229_v40  ;;  %3959 = vmatprep.mubr.bf16.mxu1 %v6616_v0 }
 0x252   :  { %3929 = vmatprep.subr.bf16.mxu1 %v6237_v42  ;;  %3902 = vmatprep.subr.bf16.mxu0 %v6234_v43  ;;  %v6334_v42 = vld [vmem:[#allocation5 + $0x688] ss:$48 sps:$4 sm:$0xff]   ;;  %v6342_v43 = vld [vmem:[#allocation5 + $0x62c] ss:$48 sps:$4 sm:$0xff]  }
 0x254   :  { %3903 = vmatpush2.bf16.msra.mxu0 %v6232_v45 }
 0x255   :  { %3930 = vmatpush1.bf16.msra.mxu1 %v6235_v44  ;;  %3904 = vmatprep.subr.bf16.mxu0 %v6240_v47  ;;  %v6295_v44 = vld [vmem:[#allocation5 + $0x28] ss:$48 sps:$4 sm:$0xff]  }
 0x256   :  { %3931 = vmatprep.subr.bf16.mxu1 %v6243_v46  ;;  %v6303_v46 = vld [vmem:[#allocation5 + $0x5cc] ss:$48 sps:$4 sm:$0xff]   ;;  %v6340_v47 = vld [vmem:[#allocation5 + $0x628] ss:$48 sps:$4 sm:$0xff]  }
 0x258   :  { %3905 = vmatpush2.bf16.msra.mxu0 %v6238_v48  ;;  %v6301_v48 = vld [vmem:[#allocation5 + $0x5c8] ss:$48 sps:$4 sm:$0xff]  }
 0x259   :  { %3932 = vmatpush1.bf16.msra.mxu1 %v6241_v16  ;;  %3906 = vmatprep.subr.bf16.mxu0 %v6246_v50  ;;  %v6348_v16 = vld [vmem:[#allocation8 + $0x6ac] ss:$12 sps:$4 sm:$0xff]   ;;  %v6309_v50 = vld [vmem:[#allocation5 + $0x56c] ss:$48 sps:$4 sm:$0xff]  }
 0x25a   :  { %3933 = vmatprep.subr.bf16.mxu1 %v6249_v49 }
 0x25c   :  { %3907 = vmatpush2.bf16.msra.mxu0 %v6244_v52  ;;  %v6351_v52 = vld [vmem:[#allocation8 + $0x694] ss:$12 sps:$4 sm:$0xff]  }
 0x25d   :  { %3934 = vmatpush1.bf16.msra.mxu1 %v6247_v6  ;;  %3908 = vmatprep.subr.bf16.mxu0 %v6252_v54  ;;  %v6346_v6 = vld [vmem:[#allocation8 + $0x6a8] ss:$12 sps:$4 sm:$0xff]  }
 0x25e   :  { %3935 = vmatprep.subr.bf16.mxu1 %v6255_v53 }
 0x260   :  { %3909 = vmatpush2.bf16.msra.mxu0 %v6250_v56  ;;  %v6307_v56 = vld [vmem:[#allocation5 + $0x568] ss:$48 sps:$4 sm:$0xff]  }
 0x261   :  { %3936 = vmatpush1.bf16.msra.mxu1 %v6253_v55  ;;  %3910 = vmatprep.subr.bf16.mxu0 %v6258_v58 }
 0x262   :  { %3937 = vmatprep.subr.bf16.mxu1 %v6261_v57 }
 0x264   :  { %3911 = vmatpush2.bf16.msra.mxu0 %v6256_v63  ;;  %v6349_v63 = vld [vmem:[#allocation8 + $0x690] ss:$12 sps:$4 sm:$0xff]  }
 0x265   :  { %3938 = vmatpush1.bf16.msra.mxu1 %v6259_v60  ;;  %3912 = vmatprep.subr.bf16.mxu0 %v6264_v2  ;;  %v6315_v60 = vld [vmem:[#allocation5 + $0x50c] ss:$48 sps:$4 sm:$0xff]  }
 0x266   :  { %3939 = vmatprep.subr.bf16.mxu1 %v6267_v1 }
 0x268   :  { %3913 = vmatpush2.bf16.msra.mxu0 %v6262_v5 }
 0x269   :  { %3940 = vmatpush1.bf16.msra.mxu1 %v6265_v3  ;;  %3914 = vmatprep.subr.bf16.mxu0 %v6270_v8  ;;  %v6354_v3 = vld [vmem:[#allocation8 + $0x67c] ss:$12 sps:$4 sm:$0xff]  }
 0x26a   :  { %3941 = vmatprep.subr.bf16.mxu1 %v6273_v7 }
 0x26c   :  { %3915 = vmatpush2.bf16.msra.mxu0 %v6268_v10 }
 0x26d   :  { %3942 = vmatpush1.bf16.msra.mxu1 %v6271_v9  ;;  %4013 = vmatprep.subr.bf16.mxu0 %v6300_v11  ;;  %v6313_v9 = vld [vmem:[#allocation5 + $0x508] ss:$48 sps:$4 sm:$0xff]   ;;  %v6321_v11 = vld [vmem:[#allocation5 + $0x4ac] ss:$48 sps:$4 sm:$0xff]  }
 0x26e   :  { %3970 = vmatprep.subr.bf16.mxu1 %v6276_v36 }
 0x26f   :  { %3917 = vmatmul.mubr.bf16.vlgmr.msra.gmra.mxu0 %v6756_v18  ;;  %v2472_v30 = vpop.f32.mrf.mxu0 }
 0x270   :  { %3960 = vmatmul.mubr.bf16.vlgmr.msra.gmra.mxu1 %v6753_v29  ;;  %4014 = vmatpush1.bf16.msra.mxu0 %v6298_v17 }
 0x271   :  { %3971 = vmatpush1.bf16.msra.mxu1 %v6274_v12  ;;  %4015 = vmatprep.subr.bf16.mxu0 %v6306_v15  ;;  %v2474_v40 = vpop.f32.mrf.mxu0  ;;  %v6352_v12 = vld [vmem:[#allocation8 + $0x678] ss:$12 sps:$4 sm:$0xff]  }
 0x272   :  { %3972 = vmatprep.subr.bf16.mxu1 %v6279_v13  ;;  %4045 = vmatprep.mubr.bf16.mxu0 %v6616_v0  ;;  %v6286_v0 = vld [vmem:[#allocation5 + $0x148] ss:$48 sps:$4 sm:$0xff]   ;;  %v6357_v15 = vld [vmem:[#allocation8 + $0x664] ss:$12 sps:$4 sm:$0xff]  }
 0x273   :  { %4002 = vmatprep.mubr.bf16.mxu1 %v6748_v14  ;;  %v6291_v14 = vld [vmem:[#allocation5 + $0xec] ss:$48 sps:$4 sm:$0xff]   ;;  %v2476_v45 = vpop.f32.mrf.mxu0 }
 0x274   :  { %4016 = vmatpush1.bf16.msra.mxu0 %v6304_v20  ;;  %v6360_v20 = vld [vmem:[#allocation8 + $0x64c] ss:$12 sps:$4 sm:$0xff]  }
 0x275   :  { %3973 = vmatpush1.bf16.msra.mxu1 %v6277_v59  ;;  %4017 = vmatprep.subr.bf16.mxu0 %v6312_v61  ;;  %v2478_v49 = vpop.f32.mrf.mxu0  ;;  %v6327_v59 = vld [vmem:[#allocation5 + $0x44c] ss:$48 sps:$4 sm:$0xff]   ;;  %v6325_v61 = vld [vmem:[#allocation5 + $0x448] ss:$48 sps:$4 sm:$0xff]  }
 0x276   :  { %3974 = vmatprep.subr.bf16.mxu1 %v6282_v19  ;;  %v6355_v19 = vld [vmem:[#allocation8 + $0x660] ss:$12 sps:$4 sm:$0xff]  }
 0x278   :  { %4018 = vmatpush1.bf16.msra.mxu0 %v6310_v22  ;;  %v6363_v22 = vld [vmem:[#allocation8 + $0x634] ss:$12 sps:$4 sm:$0xff]  }
 0x279   :  { %3975 = vmatpush1.bf16.msra.mxu1 %v6280_v21  ;;  %4019 = vmatprep.subr.bf16.mxu0 %v6318_v23  ;;  %v6333_v21 = vld [vmem:[#allocation5 + $0x3ec] ss:$48 sps:$4 sm:$0xff]   ;;  %v6331_v23 = vld [vmem:[#allocation5 + $0x3e8] ss:$48 sps:$4 sm:$0xff]  }
 0x27a   :  { %3976 = vmatprep.subr.bf16.mxu1 %v6285_v34  ;;  %v6358_v34 = vld [vmem:[#allocation8 + $0x648] ss:$12 sps:$4 sm:$0xff]  }
 0x27c   :  { %4020 = vmatpush1.bf16.msra.mxu0 %v6316_v35  ;;  %v6366_v35 = vld [vmem:[#allocation8 + $0x61c] ss:$12 sps:$4 sm:$0xff]  }
 0x27d   :  { %3977 = vmatpush1.bf16.msra.mxu1 %v6283_v24  ;;  %4021 = vmatprep.subr.bf16.mxu0 %v6324_v26  ;;  %v6339_v24 = vld [vmem:[#allocation5 + $0x38c] ss:$48 sps:$4 sm:$0xff]   ;;  %v6337_v26 = vld [vmem:[#allocation5 + $0x388] ss:$48 sps:$4 sm:$0xff]  }
 0x27e   :  { %3978 = vmatprep.subr.bf16.mxu1 %v6288_v25  ;;  %v6361_v25 = vld [vmem:[#allocation8 + $0x630] ss:$12 sps:$4 sm:$0xff]  }
 0x280   :  { %4022 = vmatpush1.bf16.msra.mxu0 %v6322_v28  ;;  %v6369_v28 = vld [vmem:[#allocation8 + $0x604] ss:$12 sps:$4 sm:$0xff]  }
 0x281   :  { %3979 = vmatpush1.bf16.msra.mxu1 %v6286_v0  ;;  %4023 = vmatprep.subr.bf16.mxu0 %v6330_v51  ;;  %v6345_v0 = vld [vmem:[#allocation5 + $0x32c] ss:$48 sps:$4 sm:$0xff]   ;;  %v6343_v51 = vld [vmem:[#allocation5 + $0x328] ss:$48 sps:$4 sm:$0xff]  }
 0x282   :  { %3980 = vmatprep.subr.bf16.mxu1 %v6291_v14  ;;  %v6364_v14 = vld [vmem:[#allocation8 + $0x618] ss:$12 sps:$4 sm:$0xff]  }
 0x284   :  { %4024 = vmatpush1.bf16.msra.mxu0 %v6328_v37  ;;  %v6375_v37 = vld [vmem:[#allocation8 + $0x754] ss:$12 sps:$4 sm:$0xff]  }
 0x285   :  { %3981 = vmatpush1.bf16.msra.mxu1 %v6289_v27  ;;  %4025 = vmatprep.subr.bf16.mxu0 %v6336_v38  ;;  %v6367_v27 = vld [vmem:[#allocation8 + $0x600] ss:$12 sps:$4 sm:$0xff]  }
 0x286   :  { %3982 = vmatprep.subr.bf16.mxu1 %v6294_v33  ;;  %v6370_v33 = vld [vmem:[#allocation8 + $0x768] ss:$12 sps:$4 sm:$0xff]  }
 0x288   :  { %4026 = vmatpush1.bf16.msra.mxu0 %v6334_v42  ;;  %v6378_v42 = vld [vmem:[#allocation8 + $0x73c] ss:$12 sps:$4 sm:$0xff]  }
 0x289   :  { %3983 = vmatpush1.bf16.msra.mxu1 %v6292_v39  ;;  %4027 = vmatprep.subr.bf16.mxu0 %v6342_v43 }
 0x28a   :  { %3984 = vmatprep.subr.bf16.mxu1 %v6297_v41 }
 0x28c   :  { %4028 = vmatpush1.bf16.msra.mxu0 %v6340_v47 }
 0x28d   :  { %3985 = vmatpush1.bf16.msra.mxu1 %v6295_v44  ;;  %4708 = vmatprep.subr.bf16.mxu0 %v6348_v16  ;;  %v6381_v16 = vld [vmem:[#allocation8 + $0x724] ss:$12 sps:$4 sm:$0xff]  }
 0x28e   :  { %3986 = vmatprep.subr.bf16.mxu1 %v6303_v46  ;;  %v6376_v46 = vld [vmem:[#allocation8 + $0x738] ss:$12 sps:$4 sm:$0xff]  }
 0x28f   :  { %v5525_v53 = vpop.f32.mrf.mxu0  ;;  %4046 = vmatmul.mubr.bf16.vlgmr.msra.gmra.mxu0 %v6753_v29  ;;  %v6319_v29 = vld [vmem:[#allocation5 + $0x4a8] ss:$48 sps:$4 sm:$0xff]  }
 0x290   :  { %v2515_v54 = vpop.f32.mrf.mxu1  ;;  %4709 = vmatpush1.bf16.msra.mxu0 %v6346_v6  ;;  %v6396_v6 = vld [vmem:[#allocation8 + $0x82c] ss:$12 sps:$4 sm:$0xff]  }
 0x291   :  { %v6761_v55 = vadd.f32 %v2515_v54, %v2472_v30  ;;  %3987 = vmatpush2.bf16.msra.mxu1 %v6301_v48  ;;  %v5526_v57 = vpop.f32.mrf.mxu0  ;;  %4710 = vmatprep.subr.bf16.mxu0 %v6351_v52  ;;  %v6372_v30 = vld [vmem:[#allocation8 + $0x76c] ss:$12 sps:$4 sm:$0xff]   ;;  %v6387_v52 = vld [vmem:[#allocation8 + $0x6f4] ss:$12 sps:$4 sm:$0xff]   ;;  %v6385_v54 = vld [vmem:[#allocation8 + $0x6f0] ss:$12 sps:$4 sm:$0xff]  }
 0x292   :  { %v2517_v58 = vpop.f32.mrf.mxu1  ;;  %3988 = vmatprep.subr.bf16.mxu1 %v6309_v50  ;;  %v6764_v1 = vadd.f32 %v5526_v57, %v5525_v53  ;;  %v6382_v50 = vld [vmem:[#allocation8 + $0x708] ss:$12 sps:$4 sm:$0xff]  }
 0x293   :  { %v6766_v2 = vadd.f32 %v2517_v58, %v2474_v40  ;;  %v5528_v5 = vpop.f32.mrf.mxu0  ;;  %v6373_v40 = vld [vmem:[#allocation8 + $0x750] ss:$12 sps:$4 sm:$0xff]   ;;  %v6394_v53 = vld [vmem:[#allocation8 + $0x828] ss:$12 sps:$4 sm:$0xff]  }
 0x294   :  { %v2519_v7 = vpop.f32.mrf.mxu1  ;;  %4711 = vmatpush1.bf16.msra.mxu0 %v6349_v63  ;;  %v6401_v57 = vld [vmem:[#allocation8 + $0x814] ss:$12 sps:$4 sm:$0xff]   ;;  %v6390_v58 = vld [vmem:[#allocation8 + $0x6dc] ss:$12 sps:$4 sm:$0xff]   ;;  %v6404_v63 = vld [vmem:[#allocation8 + $0x7f8] ss:$12 sps:$4 sm:$0xff]  }
 0x295   :  { %v6768_v8 = vadd.f32 %v2519_v7, %v2476_v45  ;;  %3989 = vmatpush2.bf16.msra.mxu1 %v6307_v56  ;;  %v5529_v10 = vpop.f32.mrf.mxu0  ;;  %4712 = vmatprep.subr.bf16.mxu0 %v6354_v3  ;;  %v6399_v56 = vld [vmem:[#allocation8 + $0x810] ss:$12 sps:$4 sm:$0xff]   ;;  %v6409_v7 = vld [vmem:[#allocation8 + $0x7e0] ss:$12 sps:$4 sm:$0xff]  }
 0x296   :  { %v2521_v36 = vpop.f32.mrf.mxu1  ;;  %3990 = vmatprep.subr.bf16.mxu1 %v6315_v60  ;;  %v6770_v13 = vadd.f32 %v5529_v10, %v5528_v5  ;;  %v6388_v60 = vld [vmem:[#allocation8 + $0x6d8] ss:$12 sps:$4 sm:$0xff]   ;;  %v6391_v5 = vld [vmem:[#allocation8 + $0x6c0] ss:$12 sps:$4 sm:$0xff]   ;;  %v6397_v10 = vld [vmem:[#allocation8 + $0x770] ss:$12 sps:$4 sm:$0xff]  }
 0x297   :  { %v6772_v17 = vadd.f32 %v2521_v36, %v2478_v49  ;;  %v6384_v49 = vld [vmem:[#allocation8 + $0x70c] ss:$12 sps:$4 sm:$0xff]   ;;  %v6393_v3 = vld [vmem:[#allocation8 + $0x6c4] ss:$12 sps:$4 sm:$0xff]   ;;  %v6414_v36 = vld [vmem:[#allocation8 + $0x7c8] ss:$12 sps:$4 sm:$0xff]  }
 0x298   :  { %4713 = vmatpush1.bf16.msra.mxu0 %v6352_v12 }
 0x299   :  { %3991 = vmatpush2.bf16.msra.mxu1 %v6313_v9  ;;  %4714 = vmatprep.subr.bf16.mxu0 %v6357_v15  ;;  %v6411_v9 = vld [vmem:[#allocation8 + $0x7e4] ss:$12 sps:$4 sm:$0xff]  }
 0x29a   :  { %3992 = vmatprep.subr.bf16.mxu1 %v6321_v11  ;;  %v6416_v11 = vld [vmem:[#allocation8 + $0x7cc] ss:$12 sps:$4 sm:$0xff]  }
 0x29c   :  { %4715 = vmatpush1.bf16.msra.mxu0 %v6355_v19 }
 0x29d   :  { %3993 = vmatpush2.bf16.msra.mxu1 %v6319_v29  ;;  %4716 = vmatprep.subr.bf16.mxu0 %v6360_v20  ;;  %v6419_v29 = vld [vmem:[#allocation8 + $0x7b0] ss:$12 sps:$4 sm:$0xff]  }
 0x29e   :  { %3994 = vmatprep.subr.bf16.mxu1 %v6327_v59  ;;  %v6421_v59 = vld [vmem:[#allocation8 + $0x7b4] ss:$12 sps:$4 sm:$0xff]  }
 0x2a0   :  { %4717 = vmatpush1.bf16.msra.mxu0 %v6358_v34  ;;  %v6424_v34 = vld [vmem:[#allocation8 + $0x798] ss:$12 sps:$4 sm:$0xff]  }
 0x2a1   :  { %3995 = vmatpush2.bf16.msra.mxu1 %v6325_v61  ;;  %4718 = vmatprep.subr.bf16.mxu0 %v6363_v22  ;;  %v6426_v22 = vld [vmem:[#allocation8 + $0x79c] ss:$12 sps:$4 sm:$0xff]  }
 0x2a2   :  { %3996 = vmatprep.subr.bf16.mxu1 %v6333_v21 }
 0x2a4   :  { %4719 = vmatpush1.bf16.msra.mxu0 %v6361_v25  ;;  %v6434_v25 = vld [vmem:[#allocation8 + $0x8e8] ss:$12 sps:$4 sm:$0xff]  }
 0x2a5   :  { %3997 = vmatpush2.bf16.msra.mxu1 %v6331_v23  ;;  %4720 = vmatprep.subr.bf16.mxu0 %v6366_v35  ;;  %v6436_v35 = vld [vmem:[#allocation8 + $0x8ec] ss:$12 sps:$4 sm:$0xff]  }
 0x2a6   :  { %3998 = vmatprep.subr.bf16.mxu1 %v6339_v24  ;;  %v6429_v24 = vld [vmem:[#allocation8 + $0x780] ss:$12 sps:$4 sm:$0xff]  }
 0x2a8   :  { %4721 = vmatpush1.bf16.msra.mxu0 %v6364_v14  ;;  %v6445_v14 = vld [vmem:[#allocation8 + $0x8a4] ss:$12 sps:$4 sm:$0xff]  }
 0x2a9   :  { %3999 = vmatpush2.bf16.msra.mxu1 %v6337_v26  ;;  %4722 = vmatprep.subr.bf16.mxu0 %v6369_v28  ;;  %v6439_v26 = vld [vmem:[#allocation8 + $0x8d4] ss:$12 sps:$4 sm:$0xff]   ;;  %v6448_v28 = vld [vmem:[#allocation8 + $0x88c] ss:$12 sps:$4 sm:$0xff]  }
 0x2aa   :  { %4000 = vmatprep.subr.bf16.mxu1 %v6345_v0  ;;  %v6442_v0 = vld [vmem:[#allocation8 + $0x8bc] ss:$12 sps:$4 sm:$0xff]  }
 0x2ac   :  { %4723 = vmatpush1.bf16.msra.mxu0 %v6367_v27 }
 0x2ad   :  { %4001 = vmatpush2.bf16.msra.mxu1 %v6343_v51  ;;  %4724 = vmatprep.subr.bf16.mxu0 %v6372_v30  ;;  %v6446_v51 = vld [vmem:[#allocation8 + $0x888] ss:$12 sps:$4 sm:$0xff]  }
 0x2ae   :  { %4751 = vmatprep.subr.bf16.mxu1 %v6396_v6  ;;  %v6454_v6 = vld [vmem:[#allocation8 + $0x85c] ss:$12 sps:$4 sm:$0xff]  }
 0x2b0   :  { %v5547_v38 = vpop.f32.mrf.mxu1  ;;  %4003 = vmatmul.mubr.bf16.vlgmr.msra.gmra.mxu1 %v6756_v18  ;;  %4725 = vmatpush2.bf16.msra.mxu0 %v6370_v33  ;;  %v6379_v18 = vld [vmem:[#allocation8 + $0x720] ss:$12 sps:$4 sm:$0xff]  }
 0x2b1   :  { %4726 = vmatprep.subr.bf16.mxu0 %v6375_v37  ;;  %4752 = vmatpush1.bf16.msra.mxu1 %v6394_v53 }
 0x2b2   :  { %v5548_v39 = vpop.f32.mrf.mxu1  ;;  %4753 = vmatprep.subr.bf16.mxu1 %v6401_v57 }
 0x2b3   :  { %v5549_v41 = vadd.f32 %v5548_v39, %v5547_v38 }
 0x2b4   :  { %v5550_v43 = vpop.f32.mrf.mxu1  ;;  %4727 = vmatpush2.bf16.msra.mxu0 %v6373_v40 }
 0x2b5   :  { %v6776_v44 = vadd.f32 %v5549_v41, %v6764_v1  ;;  %4728 = vmatprep.subr.bf16.mxu0 %v6378_v42  ;;  %4754 = vmatpush1.bf16.msra.mxu1 %v6399_v56  ;;  %v6406_v1 = vld [vmem:[#allocation8 + $0x7fc] ss:$12 sps:$4 sm:$0xff]   ;;  %v6451_v41 = vld [vmem:[#allocation8 + $0x874] ss:$12 sps:$4 sm:$0xff]   ;;  %v6457_v56 = vld [vmem:[#allocation8 + $0x844] ss:$12 sps:$4 sm:$0xff]  }
 0x2b6   :  { %v5551_v45 = vpop.f32.mrf.mxu1  ;;  %4755 = vmatprep.subr.bf16.mxu1 %v6406_v1 }
 0x2b7   :  { %v5552_v47 = vadd.f32 %v5551_v45, %v5550_v43  ;;  %v6449_v45 = vld [vmem:[#allocation8 + $0x870] ss:$12 sps:$4 sm:$0xff]  }
 0x2b8   :  { %4729 = vmatpush2.bf16.msra.mxu0 %v6376_v46 }
 0x2b9   :  { %v6779_v48 = vadd.f32 %v5552_v47, %v6770_v13  ;;  %4730 = vmatprep.subr.bf16.mxu0 %v6381_v16  ;;  %4756 = vmatpush1.bf16.msra.mxu1 %v6404_v63 }
 0x2ba   :  { %4757 = vmatprep.subr.bf16.mxu1 %v6411_v9  ;;  %v3382_v9 = vld [vmem:[#allocation7 + $0x8] sm:$0xf] }
 0x2bc   :  { %4731 = vmatpush2.bf16.msra.mxu0 %v6379_v18 }
 0x2bd   :  { %4732 = vmatprep.subr.bf16.mxu0 %v6384_v49  ;;  %4758 = vmatpush1.bf16.msra.mxu1 %v6409_v7 }
 0x2be   :  { %4759 = vmatprep.subr.bf16.mxu1 %v6416_v11 }
 0x2c0   :  { %4733 = vmatpush2.bf16.msra.mxu0 %v6382_v50 }
 0x2c1   :  { %4734 = vmatprep.subr.bf16.mxu0 %v6387_v52  ;;  %4760 = vmatpush1.bf16.msra.mxu1 %v6414_v36  ;;  %v6452_v52 = vld [vmem:[#allocation8 + $0x858] ss:$12 sps:$4 sm:$0xff]   ;;  %v3387_v36 = vrot.slane %v3382_v9, %v6690_v4 }
 0x2c2   :  { %4761 = vmatprep.subr.bf16.mxu1 %v6421_v59 }
 0x2c4   :  { %4735 = vmatpush2.bf16.msra.mxu0 %v6385_v54  ;;  %v6455_v54 = vld [vmem:[#allocation8 + $0x840] ss:$12 sps:$4 sm:$0xff]  }
 0x2c5   :  { %4736 = vmatprep.subr.bf16.mxu0 %v6390_v58  ;;  %4762 = vmatpush1.bf16.msra.mxu1 %v6419_v29 }
 0x2c6   :  { %4763 = vmatprep.subr.bf16.mxu1 %v6426_v22 }
 0x2c8   :  { %4737 = vmatpush2.bf16.msra.mxu0 %v6388_v60 }
 0x2c9   :  { %4738 = vmatprep.subr.bf16.mxu0 %v6393_v3  ;;  %4764 = vmatpush1.bf16.msra.mxu1 %v6424_v34 }
 0x2cc   :  { %4739 = vmatpush2.bf16.msra.mxu0 %v6391_v5 }
 0x2cd   :  { %5597 = vmatprep.subr.bf16.mxu0 %v6397_v10  ;;  %v3391_v10 = vrot.slane %v3382_v9, %v6719_v62 }
 0x2cf   :  { %v3152_v12 = vpop.f32.mrf.mxu0 }
 0x2d0   :  { %v3153_v13 = vadd.f32 %v3152_v12, %v6761_v55  ;;  %v6431_v55 = vld [vmem:[#allocation8 + $0x784] ss:$12 sps:$4 sm:$0xff]  }
 0x2d1   :  { %v3154_v15 = vpop.f32.mrf.mxu0  ;;  %4765 = vmatprep.subr.bf16.mxu1 %v6431_v55 }
 0x2d2   :  { %v3155_v19 = vadd.f32 %v3154_v15, %v6766_v2  ;;  %4766 = vmatpush1.bf16.msra.mxu1 %v6429_v24  ;;  %v6437_v2 = vld [vmem:[#allocation8 + $0x8d0] ss:$12 sps:$4 sm:$0xff]  }
 0x2d3   :  { %v3156_v20 = vpop.f32.mrf.mxu0  ;;  %4767 = vmatprep.subr.bf16.mxu1 %v6436_v35 }
 0x2d4   :  { %v3157_v61 = vadd.f32 %v3156_v20, %v6768_v8  ;;  %v6440_v8 = vld [vmem:[#allocation8 + $0x8b8] ss:$12 sps:$4 sm:$0xff]  }
 0x2d5   :  { %v3158_v21 = vpop.f32.mrf.mxu0 }
 0x2d6   :  { %v3159_v23 = vadd.f32 %v3158_v21, %v6772_v17  ;;  %4768 = vmatpush2.bf16.msra.mxu1 %v6434_v25  ;;  %v6443_v17 = vld [vmem:[#allocation8 + $0x8a0] ss:$12 sps:$4 sm:$0xff]  }
 0x2d7   :  { %4769 = vmatprep.subr.bf16.mxu1 %v6439_v26 }
 0x2da   :  { %4770 = vmatpush2.bf16.msra.mxu1 %v6437_v2 }
 0x2db   :  { %4771 = vmatprep.subr.bf16.mxu1 %v6442_v0 }
 0x2de   :  { %4772 = vmatpush2.bf16.msra.mxu1 %v6440_v8  ;;  %v6398_v8 = vld [vmem:[#allocation8 + $0x6b0] ss:$12 sps:$4 sm:$0xff]  }
 0x2df   :  { %4773 = vmatprep.subr.bf16.mxu1 %v6445_v14 }
 0x2e2   :  { %4774 = vmatpush2.bf16.msra.mxu1 %v6443_v17  ;;  %v6402_v17 = vld [vmem:[#allocation8 + $0x758] ss:$12 sps:$4 sm:$0xff]  }
 0x2e3   :  { %4775 = vmatprep.subr.bf16.mxu1 %v6448_v28  ;;  %v6403_v28 = vld [vmem:[#allocation8 + $0x698] ss:$12 sps:$4 sm:$0xff]  }
 0x2e6   :  { %4776 = vmatpush2.bf16.msra.mxu1 %v6446_v51  ;;  %v6407_v51 = vld [vmem:[#allocation8 + $0x740] ss:$12 sps:$4 sm:$0xff]  }
 0x2e7   :  { %4777 = vmatprep.subr.bf16.mxu1 %v6451_v41  ;;  %v6422_v41 = vld [vmem:[#allocation8 + $0x6f8] ss:$12 sps:$4 sm:$0xff]  }
 0x2ea   :  { %4778 = vmatpush2.bf16.msra.mxu1 %v6449_v45  ;;  %v6428_v45 = vld [vmem:[#allocation8 + $0x620] ss:$12 sps:$4 sm:$0xff]  }
 0x2eb   :  { %4779 = vmatprep.subr.bf16.mxu1 %v6454_v6 }
 0x2ee   :  { %4780 = vmatpush2.bf16.msra.mxu1 %v6452_v52  ;;  %v3395_v52 = vrot.slane %v3382_v9, %v6701_v31 }
 0x2ef   :  { %v5569_v30 = vpop.f32.mrf.mxu0  ;;  %4781 = vmatprep.subr.bf16.mxu1 %v6457_v56 }
 0x2f0   :  { %v3195_v27 = vpop.f32.mrf.mxu1 }
 0x2f1   :  { %v6785_v33 = vadd.f32 %v3195_v27, %v3153_v13  ;;  %v5570_v38 = vpop.f32.mrf.mxu0  ;;  %v6408_v27 = vld [vmem:[#allocation8 + $0x680] ss:$12 sps:$4 sm:$0xff]  }
 0x2f2   :  { %v3197_v37 = vpop.f32.mrf.mxu1  ;;  %v5571_v40 = vadd.f32 %v5570_v38, %v5569_v30  ;;  %4782 = vmatpush2.bf16.msra.mxu1 %v6455_v54  ;;  %v6412_v30 = vld [vmem:[#allocation8 + $0x728] ss:$12 sps:$4 sm:$0xff]   ;;  %v6417_v38 = vld [vmem:[#allocation8 + $0x710] ss:$12 sps:$4 sm:$0xff]  }
 0x2f3   :  { %v6787_v39 = vadd.f32 %v3197_v37, %v3155_v19  ;;  %v5572_v43 = vpop.f32.mrf.mxu0  ;;  %v6413_v37 = vld [vmem:[#allocation8 + $0x668] ss:$12 sps:$4 sm:$0xff]  }
 0x2f4   :  { %v3199_v42 = vpop.f32.mrf.mxu1  ;;  %v3239_v46 = vadd.f32 %v5571_v40, %v6776_v44  ;;  %v6458_v44 = vld [vmem:[#allocation8 + $0x8f0] ss:$12 sps:$4 sm:$0xff]  }
 0x2f5   :  { %v6790_v47 = vadd.f32 %v3199_v42, %v3157_v61  ;;  %v5573_v18 = vpop.f32.mrf.mxu0  ;;  %5619 = vmatprep.subr.bf16.mxu1 %v6458_v44  ;;  %v6418_v40 = vld [vmem:[#allocation8 + $0x650] ss:$12 sps:$4 sm:$0xff]   ;;  %v6423_v42 = vld [vmem:[#allocation8 + $0x638] ss:$12 sps:$4 sm:$0xff]  }
 0x2f6   :  { %v3201_v16 = vpop.f32.mrf.mxu1  ;;  %v5574_v50 = vadd.f32 %v5573_v18, %v5572_v43  ;;  %v6427_v43 = vld [vmem:[#allocation8 + $0x6e0] ss:$12 sps:$4 sm:$0xff]  }
 0x2f7   :  { %v6792_v49 = vadd.f32 %v3201_v16, %v3159_v23  ;;  %v6433_v16 = vld [vmem:[#allocation8 + $0x608] ss:$12 sps:$4 sm:$0xff]  }
 0x2f8   :  { %v3242_v53 = vadd.f32 %v5574_v50, %v6779_v48  ;;  %v3399_v50 = vrot.slane %v3382_v9, %v6704_v32  ;;  %v6459_v9 = vld [vmem:[#allocation8 + $0x830] ss:$12 sps:$4 sm:$0xff]  }
 0x310   :  { %v5591_v57 = vpop.f32.mrf.mxu1 }
 0x312   :  { %v5592_v58 = vpop.f32.mrf.mxu1 }
 0x313   :  { %v5593_v60 = vadd.f32 %v5592_v58, %v5591_v57 }
 0x314   :  { %v5594_v63 = vpop.f32.mrf.mxu1 }
 0x315   :  { %v6795_v1 = vadd.f32 %v5593_v60, %v3239_v46  ;;  %v6432_v46 = vld [vmem:[#allocation8 + $0x6c8] ss:$12 sps:$4 sm:$0xff]  }
 0x316   :  { %v5595_v3 = vpop.f32.mrf.mxu1 }
 0x317   :  { %v5596_v5 = vadd.f32 %v5595_v3, %v5594_v63 }
 0x319   :  { %v6797_v7 = vadd.f32 %v5596_v5, %v3242_v53 }
 0x32f   :  { %v3918_v11 = vpop.f32.mrf.mxu0 }
 0x330   :  { %v3961_v48 = vpop.f32.mrf.mxu1  ;;  %v3919_v29 = vadd.f32 %v3918_v11, %v3387_v36 }
 0x331   :  { %v3920_v13 = vpop.f32.mrf.mxu0 }
 0x332   :  { %v3963_v12 = vpop.f32.mrf.mxu1  ;;  %v3921_v15 = vadd.f32 %v3920_v13, %v3391_v10  ;;  %v3962_v23 = vadd.f32 %v3961_v48, %v3919_v29 }
 0x333   :  { %v3922_v59 = vpop.f32.mrf.mxu0 }
 0x334   :  { %v3965_v19 = vpop.f32.mrf.mxu1  ;;  %v3923_v20 = vadd.f32 %v3922_v59, %v3387_v36  ;;  %v3964_v21 = vadd.f32 %v3963_v12, %v3921_v15  ;;  %v4056_v26 = vmax.f32 %v3962_v23, 0.0  ;;  %v6466_v23 = vld [vmem:[#allocation8 + $0x890] ss:$12 sps:$4 sm:$0xff]  }
 0x335   :  { %v3924_v61 = vpop.f32.mrf.mxu0 }
 0x336   :  { %v3966_v34 = vadd.f32 %v3965_v19, %v3923_v20  ;;  %v3925_v22 = vadd.f32 %v3924_v61, %v3391_v10  ;;  %v3967_v24 = vpop.f32.mrf.mxu1  ;;  %v4057_v35 = vmax.f32 %v3964_v21, 0.0  ;;  %v6460_v19 = vld [vmem:[#allocation8 + $0x8d8] ss:$12 sps:$4 sm:$0xff]   ;;  %v6462_v61 = vld [vmem:[#allocation8 + $0x8c0] ss:$12 sps:$4 sm:$0xff]  }
 0x337   :  { %v6461_v20 = vld [vmem:[#allocation8 + $0x818] ss:$12 sps:$4 sm:$0xff]   ;;  %v6463_v21 = vld [vmem:[#allocation8 + $0x800] ss:$12 sps:$4 sm:$0xff]  }
 0x338   :  { %v3968_v55 = vadd.f32 %v3967_v24, %v3925_v22  ;;  %v4060_v25 = vmax.f32 %v3966_v34, 0.0  ;;  %v6464_v34 = vld [vmem:[#allocation8 + $0x8a8] ss:$12 sps:$4 sm:$0xff]   ;;  %v6467_v24 = vld [vmem:[#allocation8 + $0x7d0] ss:$12 sps:$4 sm:$0xff]  }
 0x339   :  { %v6465_v22 = vld [vmem:[#allocation8 + $0x7e8] ss:$12 sps:$4 sm:$0xff]  }
 0x33a   :  { %v4061_v2 = vmax.f32 %v3968_v55, 0.0  ;;  %v4064_v14 = vpack.c.bf16 %v4060_v25, %v4056_v26  ;;  %v6468_v55 = vld [vmem:[#allocation8 + $0x878] ss:$12 sps:$4 sm:$0xff]   ;;  %v6472_v26 = vld [vmem:[#allocation8 + $0x848] ss:$12 sps:$4 sm:$0xff]  }
 0x33b   :  { %v6469_v25 = vld [vmem:[#allocation8 + $0x7b8] ss:$12 sps:$4 sm:$0xff]  }
 0x33c   :  { %v4065_v0 = vpack.c.bf16 %v4061_v2, %v4057_v35  ;;  %v6470_v35 = vld [vmem:[#allocation8 + $0x860] ss:$12 sps:$4 sm:$0xff]  }
 0x33d   :  { %v6471_v2 = vld [vmem:[#allocation8 + $0x7a0] ss:$12 sps:$4 sm:$0xff]  }
 0x33e   :  { %4740 = vmatprep.mubr.bf16.mxu0 %v4065_v0 }
 0x33f   :  { %4741 = vmatmul.mubr.bf16.vlgmr.msra.gmra.mxu0 %v4064_v14 }
 0x340   :  { %5598 = vmatpush3.bf16.msra.mxu0 %v6398_v8  ;;  %4826 = vmatprep.mubr.bf16.mxu0 %v4065_v0  ;;  %v6473_v0 = vld [vmem:[#allocation8 + $0x788] ss:$12 sps:$4 sm:$0xff]  }
 0x341   :  { %5599 = vmatprep.subr.bf16.mxu0 %v6402_v17  ;;  %v4882_v17 = vld [vmem:[#allocation10] sm:$0x7] }
 0x344   :  { %5600 = vmatpush3.bf16.msra.mxu0 %v6403_v28 }
 0x345   :  { %5601 = vmatprep.subr.bf16.mxu0 %v6407_v51 }
 0x348   :  { %5602 = vmatpush3.bf16.msra.mxu0 %v6408_v27  ;;  %v4887_v27 = vrot.slane %v4882_v17, %v6690_v4 }
 0x349   :  { %5603 = vmatprep.subr.bf16.mxu0 %v6412_v30 }
 0x34c   :  { %5604 = vmatpush3.bf16.msra.mxu0 %v6413_v37 }
 0x34d   :  { %5605 = vmatprep.subr.bf16.mxu0 %v6417_v38 }
 0x34f   :  { %v4047_v18 = vpop.f32.mrf.mxu0 }
 0x350   :  { %5606 = vmatpush3.bf16.msra.mxu0 %v6418_v40 }
 0x351   :  { %5607 = vmatprep.subr.bf16.mxu0 %v6422_v41  ;;  %v4049_v6 = vpop.f32.mrf.mxu0  ;;  %v4891_v41 = vrot.slane %v4882_v17, %v6719_v62 }
 0x353   :  { %v4051_v57 = vpop.f32.mrf.mxu0 }
 0x354   :  { %5608 = vmatpush3.bf16.msra.mxu0 %v6423_v42 }
 0x355   :  { %5609 = vmatprep.subr.bf16.mxu0 %v6427_v43  ;;  %v4053_v36 = vpop.f32.mrf.mxu0 }
 0x358   :  { %5610 = vmatpush3.bf16.msra.mxu0 %v6428_v45 }
 0x359   :  { %5611 = vmatprep.subr.bf16.mxu0 %v6432_v46 }
 0x35c   :  { %5612 = vmatpush3.bf16.msra.mxu0 %v6433_v16 }
 0x35f   :  { %4827 = vmatmul.mubr.bf16.vlgmr.msra.gmra.mxu0 %v4064_v14 }
 0x370   :  { %v4004_v53 = vpop.f32.mrf.mxu1 }
 0x371   :  { %v4005_v44 = vadd.f32 %v4004_v53, %v3395_v52 }
 0x372   :  { %v4006_v54 = vpop.f32.mrf.mxu1 }
 0x373   :  { %v4007_v56 = vadd.f32 %v4006_v54, %v3399_v50  ;;  %v4048_v10 = vadd.f32 %v4047_v18, %v4005_v44 }
 0x374   :  { %v4008_v58 = vpop.f32.mrf.mxu1 }
 0x375   :  { %v4009_v60 = vadd.f32 %v4008_v58, %v3395_v52  ;;  %v4050_v3 = vadd.f32 %v4049_v6, %v4007_v56  ;;  %v4058_v15 = vmax.f32 %v4048_v10, 0.0 }
 0x376   :  { %v4010_v63 = vpop.f32.mrf.mxu1 }
 0x377   :  { %v4052_v5 = vadd.f32 %v4051_v57, %v4009_v60  ;;  %v4011_v48 = vadd.f32 %v4010_v63, %v3399_v50  ;;  %v4059_v13 = vmax.f32 %v4050_v3, 0.0 }
 0x379   :  { %v4054_v11 = vadd.f32 %v4053_v36, %v4011_v48  ;;  %v4062_v12 = vmax.f32 %v4052_v5, 0.0 }
 0x37b   :  { %v4063_v32 = vmax.f32 %v4054_v11, 0.0  ;;  %v4066_v59 = vpack.c.bf16 %v4062_v12, %v4058_v15 }
 0x37d   :  { %v4067_v29 = vpack.c.bf16 %v4063_v32, %v4059_v13 }
 0x37f   :  { %4783 = vmatprep.mubr.bf16.mxu1 %v4067_v29 }
 0x380   :  { %4784 = vmatmul.mubr.bf16.vlgmr.msra.gmra.mxu1 %v4066_v59 }
 0x381   :  { %5620 = vmatpush3.bf16.msra.mxu1 %v6459_v9  ;;  %4867 = vmatprep.mubr.bf16.mxu1 %v4067_v29 }
 0x382   :  { %5621 = vmatprep.subr.bf16.mxu1 %v6460_v19 }
 0x385   :  { %5622 = vmatpush3.bf16.msra.mxu1 %v6461_v20 }
 0x386   :  { %5623 = vmatprep.subr.bf16.mxu1 %v6462_v61 }
 0x389   :  { %5624 = vmatpush3.bf16.msra.mxu1 %v6463_v21 }
 0x38a   :  { %5625 = vmatprep.subr.bf16.mxu1 %v6464_v34 }
 0x38d   :  { %5626 = vmatpush3.bf16.msra.mxu1 %v6465_v22 }
 0x38e   :  { %5627 = vmatprep.subr.bf16.mxu1 %v6466_v23 }
 0x391   :  { %5628 = vmatpush3.bf16.msra.mxu1 %v6467_v24 }
 0x392   :  { %5629 = vmatprep.subr.bf16.mxu1 %v6468_v55 }
 0x395   :  { %5630 = vmatpush3.bf16.msra.mxu1 %v6469_v25 }
 0x396   :  { %5631 = vmatprep.subr.bf16.mxu1 %v6470_v35 }
 0x399   :  { %5632 = vmatpush3.bf16.msra.mxu1 %v6471_v2 }
 0x39a   :  { %5633 = vmatprep.subr.bf16.mxu1 %v6472_v26 }
 0x39d   :  { %5634 = vmatpush3.bf16.msra.mxu1 %v6473_v0 }
 0x3a0   :  { %4868 = vmatmul.mubr.bf16.vlgmr.msra.gmra.mxu1 %v4066_v59 }
 0x3ff   :  { %v4742_v8 = vpop.f32.mrf.mxu0 }
 0x401   :  { %v4744_v14 = vpop.f32.mrf.mxu0 }
 0x403   :  { %v4746_v30 = vpop.f32.mrf.mxu0 }
 0x405   :  { %v4748_v16 = vpop.f32.mrf.mxu0 }
 0x41f   :  { %v5613_v62 = vpop.f32.mrf.mxu0 }
 0x421   :  { %v5614_v54 = vpop.f32.mrf.mxu0 }
 0x422   :  { %v5615_v57 = vadd.f32 %v5614_v54, %v5613_v62 }
 0x423   :  { %v5616_v56 = vpop.f32.mrf.mxu0 }
 0x425   :  { %v5617_v60 = vpop.f32.mrf.mxu0 }
 0x426   :  { %v5618_v48 = vadd.f32 %v5617_v60, %v5616_v56 }
 0x440   :  { %v4785_v28 = vpop.f32.mrf.mxu1 }
 0x441   :  { %v4786_v51 = vadd.f32 %v4785_v28, %v4742_v8 }
 0x442   :  { %v4787_v37 = vpop.f32.mrf.mxu1 }
 0x443   :  { %v4876_v38 = vadd.f32 %v4786_v51, %v6785_v33  ;;  %v4788_v40 = vadd.f32 %v4787_v37, %v4744_v14 }
 0x444   :  { %v4789_v42 = vpop.f32.mrf.mxu1 }
 0x445   :  { %v4899_v43 = vadd.f32 %v4887_v27, %v4876_v38  ;;  %v4877_v45 = vadd.f32 %v4788_v40, %v6787_v39  ;;  %v4790_v46 = vadd.f32 %v4789_v42, %v4746_v30 }
 0x446   :  { %v4791_v18 = vpop.f32.mrf.mxu1 }
 0x447   :  { %4905 = vst [vmem:[#allocation11] sm:$0xff] %v4899_v43  ;;  %v4900_v50 = vadd.f32 %v4891_v41, %v4877_v45  ;;  %v4879_v6 = vadd.f32 %v4790_v46, %v6790_v47  ;;  %v4792_v52 = vadd.f32 %v4791_v18, %v4748_v16  ;;  %v4895_v47 = vrot.slane %v4882_v17, %v6701_v31 }
 0x449   :  { %4906 = vst [vmem:[#allocation11 + $0x8] sm:$0xff] %v4900_v50  ;;  %v4902_v4 = vadd.f32 %v4887_v27, %v4879_v6  ;;  %v4880_v53 = vadd.f32 %v4792_v52, %v6792_v49 }
 0x44b   :  { %4908 = vst [vmem:[#allocation11 + $0x18] sm:$0xff] %v4902_v4  ;;  %v4903_v33 = vadd.f32 %v4891_v41, %v4880_v53 }
 0x44d   :  { %4909 = vst [vmem:[#allocation11 + $0x20] sm:$0xff] %v4903_v33 }
 0x460   :  { %v5635_v44 = vpop.f32.mrf.mxu1 }
 0x462   :  { %v5636_v39 = vpop.f32.mrf.mxu1 }
 0x463   :  { %v5637_v58 = vadd.f32 %v5636_v39, %v5635_v44 }
 0x464   :  { %v5638_v63 = vpop.f32.mrf.mxu1 }
 0x465   :  { %v4870_v3 = vadd.f32 %v5637_v58, %v5615_v57 }
 0x466   :  { %v5639_v5 = vpop.f32.mrf.mxu1 }
 0x467   :  { %v4878_v10 = vadd.f32 %v4870_v3, %v6795_v1  ;;  %v5640_v49 = vadd.f32 %v5639_v5, %v5638_v63 }
 0x469   :  { %v4901_v36 = vadd.f32 %v4895_v47, %v4878_v10  ;;  %v4873_v11 = vadd.f32 %v5640_v49, %v5618_v48 }
 0x46b   :  { %4907 = vst [vmem:[#allocation11 + $0x10] sm:$0xff] %v4901_v36  ;;  %v4881_v12 = vadd.f32 %v4873_v11, %v6797_v7 }
 0x46d   :  { %v4904_v13 = vadd.f32 %v4895_v47, %v4881_v12 }
 0x46f   :  { %4910 = vst [vmem:[#allocation11 + $0x28] sm:$0xff] %v4904_v13 }
 0x470   :  { %6590 = shalt.err (!%p6587_p1)
}
 0x471   :  { %s6618_s21 = smov 384   ;;  %s6619_s22 = smov 24  }
 0x472   :  { %4922 = dma.vmem_to_hbm [thread:$0]  %s4917_s4, 768, %s6820_s5, [#allocation4], %s6618_s21, %s6618_s21, %s6619_s22  }
 0x473   :  { %6605 = dma.done.wait [#allocation4], 768  }
 0x474   :  { %6606 = vsyncadd [#allocation4], 4294966528 }
 0x475   :  { %4926 = vsyncpa [#allocation3], 1 }
 0x476   :  { %4927 = vsyncpa [#allocation6], 1 }
 0x477   :  { %4928 = vsyncpa [#allocation9], 1 }
 0x478   :  { %4929 = vsyncpa [#allocation4], 1 }

</bundles_post_ra>
